<compile_context>
chip_gen: v7x
topology: tpu7x:2x2x1
jax: 0.10.0
libtpu: 0.0.40
codegen_flags: <defaults>
</compile_context>

<pallas_src>
import functools

import jax
import jax.numpy as jnp
from jax import lax
from jax.experimental import pallas as pl
from jax.experimental.pallas import tpu as pltpu


def _round_up(x, m):
    return ((x + m - 1) // m) * m


def _chip_config():
    """Trace-time, generation-aware knobs (safe fallbacks everywhere)."""
    kind = ""
    try:
        kind = jax.devices()[0].device_kind.lower()
    except Exception:
        pass
    is_v7 = "v7" in kind
    # bf16 VPU elementwise only on v6e / v7x (v5e and older have no bf16 VALU).
    use_bf16_att = ("v6" in kind) or is_v7
    try:
        vmem_cap = int(pltpu.get_tpu_info().vmem_capacity_bytes)
    except Exception:
        vmem_cap = (64 << 20) if is_v7 else (128 << 20)
    return {"kind": kind, "is_v7": is_v7, "use_bf16_att": use_bf16_att,
            "vmem_cap": vmem_cap}


# ---------------------------------------------------------------------------
# Pallas kernel: one decode timestep (for one batch block) per grid iteration.
# ---------------------------------------------------------------------------
def _decoder_step_kernel(
    # inputs (VMEM)
    enc_ref,        # (Bb, Pp, E)   bf16  encoder features (pixel-padded)
    att1_ref,       # (Bb, Pp, A)   bf16  precomputed encoder_att(enc)
    emb_ref,        # (1, Bb, Emb)  bf16  embedding at step t
    h0_ref, c0_ref,         # (Bb, D) f32  init_hidden_state
    w_h_all_ref,    # (D, A+E+4D)   bf16  [decoder_att | f_beta | lstm w_hh]
    b_h_all_ref,    # (1, A+E+4D)   f32   [b_dec_att | b_f_beta | b_ih+b_hh]
    w_fa_ref,       # (1, A)              full_att weight (bias dropped)
    w_ih_emb_ref,   # (Emb, 4D)     bf16
    w_ih_ctx_ref,   # (E, 4D)       bf16
    # outputs
    h_out_ref,      # (1, Bb, D)    bf16  hidden state at step t (fc applied in wrapper)
    alpha_out_ref,  # (1, Bb, Pp)   f32   attention weights at step t
    # scratch (carried across the time axis)
    h_sc, c_sc,     # (Bb, D) f32
    *, num_pixels, att_dim, enc_dim, use_bf16_att,
):
    t = pl.program_id(1)
    Bb, D = h_sc.shape
    Pp = enc_ref.shape[1]
    A, E = att_dim, enc_dim
    bf16, f32 = jnp.bfloat16, jnp.float32

    # init_hidden_state was computed in the wrapper; just seed the carried state.
    @pl.when(t == 0)
    def _():
        h_sc[...] = h0_ref[...]
        c_sc[...] = c0_ref[...]

    h = h_sc[...]
    c = c_sc[...]
    h_b = h.astype(bf16)

    # ---- one fused h-driven matmul: [att2 | f_beta pre-act | lstm h-gates] ----
    h_all = (jnp.dot(h_b, w_h_all_ref[...], preferred_element_type=f32)
             + b_h_all_ref[...])                              # (Bb, A+E+4D) f32
    att2 = h_all[:, :A]                                       # includes b_dec_att
    gate = jax.nn.sigmoid(h_all[:, A:A + E])                  # includes b_f_beta
    gates_h = h_all[:, A + E:]                                # includes b_ih + b_hh

    # ---- attention scores: relu(att1 + att2) . w_fa  (full_att bias dropped:
    #      softmax(score + const) == softmax(score)) ----
    if use_bf16_att:
        # bf16 VPU path (v6e/v7x): halve VALU work / temp footprint, upcast at reduce.
        att = jax.nn.relu(att1_ref[...] + att2.astype(bf16)[:, None, :])   # bf16
        score = jnp.sum(att * w_fa_ref[...][None], axis=-1, dtype=f32)     # (Bb, Pp)
    else:
        # f32 path (v5e: no bf16 VPU/EUP).
        att = jax.nn.relu(att1_ref[...].astype(f32) + att2[:, None, :])
        score = jnp.sum(att * w_fa_ref[...][None], axis=-1)                # (Bb, Pp)

    if num_pixels < Pp:      # keep padded pixels out of the softmax
        pix = lax.broadcasted_iota(jnp.int32, (Bb, Pp), 1)
        score = jnp.where(pix < num_pixels, score, jnp.float32(-1e30))

    m = jnp.max(score, axis=1, keepdims=True)
    e = jnp.exp(score - m)
    alpha = e / jnp.sum(e, axis=1, keepdims=True)                          # (Bb, Pp) f32

    # attention-weighted encoding: contraction routed through the MXU
    awe = jnp.einsum("bqp,bpe->bqe",
                     alpha.astype(bf16)[:, None, :], enc_ref[...],
                     preferred_element_type=f32)[:, 0, :]                  # (Bb, E)
    awe = gate * awe                                                       # f_beta gate

    # ---- LSTMCell (concat-free: split input weights) ----
    gates = (gates_h
             + jnp.dot(emb_ref[0], w_ih_emb_ref[...], preferred_element_type=f32)
             + jnp.dot(awe.astype(bf16), w_ih_ctx_ref[...],
                       preferred_element_type=f32))                        # (Bb, 4D)
    i_g = jax.nn.sigmoid(gates[:, 0:D])
    f_g = jax.nn.sigmoid(gates[:, D:2 * D])
    g_g = jnp.tanh(gates[:, 2 * D:3 * D])
    o_g = jax.nn.sigmoid(gates[:, 3 * D:4 * D])
    c_new = f_g * c + i_g * g_g
    h_new = o_g * jnp.tanh(c_new)
    h_sc[...] = h_new
    c_sc[...] = c_new

    # fc head + validity masking are applied in the wrapper (one big matmul).
    h_out_ref[0] = h_new.astype(bf16)
    alpha_out_ref[0] = alpha


# ---------------------------------------------------------------------------
# Wrapper (sorting, embedding lookup, hoisted projections, fc head = glue)
# ---------------------------------------------------------------------------
def decoder_with_attention_forward(params, encoder_out, encoded_captions,
                                   caption_lengths):
    f32, bf16 = jnp.float32, jnp.bfloat16
    cfg = _chip_config()
    use_bf16_att = cfg["use_bf16_att"]

    B = encoder_out.shape[0]
    E = encoder_out.shape[-1]
    enc = encoder_out.reshape(B, -1, E).astype(f32)            # (B, P, E)
    P = enc.shape[1]
    V, Emb = params["embedding"].shape
    D = params["w_init_h"].shape[0]
    A = params["w_enc_att"].shape[0]

    # sort by caption length, descending
    lengths = caption_lengths[:, 0]
    sort_ind = jnp.argsort(-lengths)
    lengths_sorted = lengths[sort_ind]
    enc = enc[sort_ind]
    caps_sorted = encoded_captions[sort_ind]
    decode_lengths = lengths_sorted - 1
    # NOTE: host sync to get a static T (wrapper is not jittable with traced lengths).
    T = int(jax.device_get(jnp.max(decode_lengths)))

    embeddings = params["embedding"][caps_sorted]              # (B, L, Emb)
    emb_tbe = jnp.transpose(embeddings[:, :T, :], (1, 0, 2)).astype(bf16)

    # init_hidden_state hoisted out of the kernel
    mean_enc = jnp.mean(enc, axis=1)                           # (B, E)
    h0 = (mean_enc @ params["w_init_h"].T + params["b_init_h"]).astype(f32)
    c0 = (mean_enc @ params["w_init_c"].T + params["b_init_c"]).astype(f32)

    # loop-invariant encoder-side attention projection hoisted out of the kernel
    att1 = enc @ params["w_enc_att"].T + params["b_enc_att"]   # (B, P, A)

    # pad the pixel axis so per-step alpha stores are lane-dense
    P_pad = _round_up(P, 128)
    enc_p = jnp.pad(enc, ((0, 0), (0, P_pad - P), (0, 0))).astype(bf16)
    att1_p = jnp.pad(att1, ((0, 0), (0, P_pad - P), (0, 0))).astype(bf16)

    # fused h-driven projection: [decoder_att | f_beta | lstm w_hh], biases folded
    w_h_all = jnp.concatenate(
        [params["w_dec_att"].T, params["w_f_beta"].T, params["w_hh"].T],
        axis=1).astype(bf16)                                   # (D, A+E+4D)
    b_h_all = jnp.concatenate(
        [params["b_dec_att"], params["b_f_beta"],
         params["b_ih"] + params["b_hh"]]).reshape(1, -1).astype(f32)
    w_ih = params["w_ih"]                                      # (4D, Emb+E)
    w_fa = params["w_full_att"].astype(bf16 if use_bf16_att else f32)  # (1, A)

    weight_args = (
        w_h_all, b_h_all, w_fa,
        jnp.transpose(w_ih[:, :Emb]).astype(bf16),             # (Emb, 4D)
        jnp.transpose(w_ih[:, Emb:]).astype(bf16),             # (E, 4D)
    )
    weight_bytes = sum(int(w.size) * w.dtype.itemsize for w in weight_args)

    # ---- generation-aware VMEM budgeting & batch blocking -------------------
    def resident_bytes(bb, inv_buf):
        inv = inv_buf * (bb * P_pad * E * 2 + bb * P_pad * A * 2    # enc, att1 (bf16)
                         + 2 * bb * D * 4 + weight_bytes)           # h0/c0, weights
        tv = 2 * (bb * Emb * 2 + bb * D * 2 + bb * P_pad * 4)       # emb, h_out, alpha
        scratch = 2 * bb * D * 4
        elem = 2 if use_bf16_att else 4
        temps = 2 * bb * P_pad * A * elem + 4 * bb * P_pad * 4      # attention-chain temps
        return inv + tv + scratch + temps

    usable = int(cfg["vmem_cap"] * (0.75 if cfg["is_v7"] else 0.78))

    # Only v7x has 2 TensorCores worth sharding the "parallel" batch axis across;
    # on single-TC v5e/v6e the split is a serial loop (pure overhead). Require
    # Bb % 16 == 0 (bf16 sublane packing) and shrink Bb until the resident set fits.
    NB = 1
    if cfg["is_v7"]:
        for cand in (2, 4, 8, 16, 32):
            if B % cand != 0 or (B // cand) % 16 != 0:
                continue
            NB = cand
            if resident_bytes(B // cand, 1) <= usable:
                break
    Bb = B // NB

    vmem_limit = int(min(usable, max(32 << 20, resident_bytes(Bb, 2) + (4 << 20))))

    # ---- specs ---------------------------------------------------------------
    def build_specs(single_buffer_invariants):
        def inv(shape, index_map):
            # time-invariant blocks: request single buffering to halve VMEM footprint
            if single_buffer_invariants:
                try:
                    return pl.BlockSpec(shape, index_map,
                                        pipeline_mode=pl.Buffered(1))
                except TypeError:
                    pass
            return pl.BlockSpec(shape, index_map)

        def const_map(ndim):
            return lambda b, t: (0,) * ndim

        in_specs = [
            inv((Bb, P_pad, E), lambda b, t: (b, 0, 0)),            # enc
            inv((Bb, P_pad, A), lambda b, t: (b, 0, 0)),            # att1 (hoisted)
            pl.BlockSpec((1, Bb, Emb), lambda b, t: (t, b, 0)),     # embeddings[t]
            inv((Bb, D), lambda b, t: (b, 0)),                      # h0
            inv((Bb, D), lambda b, t: (b, 0)),                      # c0
        ] + [inv(w.shape, const_map(w.ndim)) for w in weight_args]

        out_specs = [
            pl.BlockSpec((1, Bb, D), lambda b, t: (t, b, 0)),       # h_t
            pl.BlockSpec((1, Bb, P_pad), lambda b, t: (t, b, 0)),   # alpha_t
        ]
        return in_specs, out_specs

    def run(single_buffer_invariants):
        in_specs, out_specs = build_specs(single_buffer_invariants)
        grid_spec = pltpu.PrefetchScalarGridSpec(
            num_scalar_prefetch=0,
            grid=(NB, T),
            in_specs=in_specs,
            out_specs=out_specs,
            scratch_shapes=[pltpu.VMEM((Bb, D), f32),    # h carry
                            pltpu.VMEM((Bb, D), f32)],   # c carry
        )
        return pl.pallas_call(
            functools.partial(_decoder_step_kernel,
                              num_pixels=P, att_dim=A, enc_dim=E,
                              use_bf16_att=use_bf16_att),
            grid_spec=grid_spec,
            out_shape=(jax.ShapeDtypeStruct((T, B, D), bf16),
                       jax.ShapeDtypeStruct((T, B, P_pad), f32)),
            compiler_params=pltpu.CompilerParams(
                dimension_semantics=("parallel", "arbitrary"),
                vmem_limit_bytes=vmem_limit),
        )(enc_p, att1_p, emb_tbe, h0, c0, *weight_args)

    try:
        h_tbd, alphas_tbp = jax.block_until_ready(run(True))
    except Exception:
        # TODO(synk): pipeline_mode=pl.Buffered(1) not supported by this jax/backend;
        #             falling back to default double-buffering of invariant blocks.
        h_tbd, alphas_tbp = run(False)

    # ---- fc head hoisted out of the kernel: one big matmul at full MXU M,
    #      producing predictions directly in (B, T, V) layout (no big transpose).
    h_btd = jnp.transpose(h_tbd, (1, 0, 2))                    # (B, T, D), small
    w_fc_b = jnp.transpose(params["w_fc"]).astype(bf16)        # (D, V)
    preds = jnp.dot(h_btd, w_fc_b, preferred_element_type=f32) + params["b_fc"]
    # rows >= batch_size_t stay zero (lengths are sorted descending, so a row
    # never re-activates once it goes inactive) -- matches the PyTorch loop.
    valid = (decode_lengths[:, None] > jnp.arange(T)[None, :]).astype(f32)[:, :, None]
    predictions = preds * valid                                # (B, T, V)
    alphas = jnp.transpose(alphas_tbp[:, :, :P], (1, 0, 2)) * valid   # (B, T, P)
    return predictions, caps_sorted, decode_lengths, alphas, sort_ind


# ---------------------------------------------------------------------------
# Pure-JAX reference mirroring the kernel's mixed-precision recipe
# (bf16 matmul operands, f32 accumulation; bf16 attention chain where enabled).
# ---------------------------------------------------------------------------
def reference_forward(params, encoder_out, encoded_captions, caption_lengths,
                      use_bf16_att):
    f32, bf16 = jnp.float32, jnp.bfloat16
    B = encoder_out.shape[0]
    E = encoder_out.shape[-1]
    enc = encoder_out.reshape(B, -1, E).astype(f32)
    P = enc.shape[1]
    lengths = caption_lengths[:, 0]
    sort_ind = jnp.argsort(-lengths)
    lengths_sorted = lengths[sort_ind]
    enc = enc[sort_ind]
    caps_sorted = encoded_captions[sort_ind]
    decode_lengths = lengths_sorted - 1
    T = int(jax.device_get(jnp.max(decode_lengths)))
    V = params["w_fc"].shape[0]
    D = params["w_init_h"].shape[0]
    Emb = params["embedding"].shape[1]

    embeddings = params["embedding"][caps_sorted].astype(bf16)

    mean_enc = jnp.mean(enc, axis=1)
    h = (mean_enc @ params["w_init_h"].T + params["b_init_h"]).astype(f32)
    c = (mean_enc @ params["w_init_c"].T + params["b_init_c"]).astype(f32)

    att1_b = (enc @ params["w_enc_att"].T + params["b_enc_att"]).astype(bf16)
    enc_b = enc.astype(bf16)
    w_da = params["w_dec_att"].T.astype(bf16)
    w_fb = params["w_f_beta"].T.astype(bf16)
    w_fa_b = params["w_full_att"].astype(bf16)
    w_ih_emb = params["w_ih"][:, :Emb].T.astype(bf16)
    w_ih_ctx = params["w_ih"][:, Emb:].T.astype(bf16)
    w_hh = params["w_hh"].T.astype(bf16)
    w_fc = params["w_fc"].T.astype(bf16)
    b_lstm = params["b_ih"] + params["b_hh"]

    preds_all = jnp.zeros((B, T, V), f32)
    alphas_all = jnp.zeros((B, T, P), f32)
    for t in range(T):
        hb = h.astype(bf16)
        att2 = jnp.dot(hb, w_da, preferred_element_type=f32) + params["b_dec_att"]
        if use_bf16_att:
            att = jax.nn.relu(att1_b + att2.astype(bf16)[:, None, :])
            score = jnp.sum(att * w_fa_b[None], axis=-1, dtype=f32)
        else:
            att = jax.nn.relu(att1_b.astype(f32) + att2[:, None, :])
            score = jnp.sum(att * params["w_full_att"][None], axis=-1)
        m = jnp.max(score, axis=1, keepdims=True)
        e = jnp.exp(score - m)
        alpha = e / jnp.sum(e, axis=1, keepdims=True)
        awe = jnp.einsum("bqp,bpe->bqe", alpha.astype(bf16)[:, None, :], enc_b,
                         preferred_element_type=f32)[:, 0, :]
        gate = jax.nn.sigmoid(jnp.dot(hb, w_fb, preferred_element_type=f32)
                              + params["b_f_beta"])
        awe = gate * awe
        gates = (jnp.dot(hb, w_hh, preferred_element_type=f32) + b_lstm
                 + jnp.dot(embeddings[:, t, :], w_ih_emb, preferred_element_type=f32)
                 + jnp.dot(awe.astype(bf16), w_ih_ctx, preferred_element_type=f32))
        i_g = jax.nn.sigmoid(gates[:, 0:D])
        f_g = jax.nn.sigmoid(gates[:, D:2 * D])
        g_g = jnp.tanh(gates[:, 2 * D:3 * D])
        o_g = jax.nn.sigmoid(gates[:, 3 * D:4 * D])
        c = f_g * c + i_g * g_g
        h = o_g * jnp.tanh(c)
        preds = jnp.dot(h.astype(bf16), w_fc, preferred_element_type=f32) + params["b_fc"]
        valid = (decode_lengths > t)[:, None].astype(f32)
        preds_all = preds_all.at[:, t, :].set(preds * valid)
        alphas_all = alphas_all.at[:, t, :].set(alpha * valid)
    return preds_all, caps_sorted, decode_lengths, alphas_all, sort_ind


# ---------------------------------------------------------------------------
# Parameter construction (deterministic, synthetic)
# ---------------------------------------------------------------------------
def make_params(key, attention_dim, embed_dim, decoder_dim, vocab_size, encoder_dim):
    ks = iter(jax.random.split(key, 32))
    u = lambda shape, s=0.1: jax.random.uniform(next(ks), shape, jnp.float32, -s, s)
    return {
        "embedding": u((vocab_size, embed_dim)),
        "w_enc_att": u((attention_dim, encoder_dim)),
        "b_enc_att": u((attention_dim,)),
        "w_dec_att": u((attention_dim, decoder_dim)),
        "b_dec_att": u((attention_dim,)),
        "w_full_att": u((1, attention_dim)),
        "b_full_att": u((1,)),
        "w_f_beta": u((encoder_dim, decoder_dim)),
        "b_f_beta": u((encoder_dim,)),
        "w_ih": u((4 * decoder_dim, embed_dim + encoder_dim)),
        "b_ih": u((4 * decoder_dim,)),
        "w_hh": u((4 * decoder_dim, decoder_dim)),
        "b_hh": u((4 * decoder_dim,)),
        "w_fc": u((vocab_size, decoder_dim)),
        "b_fc": jnp.zeros((vocab_size,), jnp.float32),
        "w_init_h": u((decoder_dim, encoder_dim)),
        "b_init_h": u((decoder_dim,)),
        "w_init_c": u((decoder_dim, encoder_dim)),
        "b_init_c": u((decoder_dim,)),
    }


if __name__ == "__main__":
    # small shapes consistent with the module
    B, HW, E = 4, 4, 32          # encoder_out (B, 4, 4, 32) -> P = 16 pixels
    A, Emb, D, V = 32, 32, 32, 64
    max_cap_len = 9

    key = jax.random.PRNGKey(0)
    k_par, k_enc, k_cap = jax.random.split(key, 3)

    params = make_params(k_par, A, Emb, D, V, E)

    encoder_out = jax.random.normal(k_enc, (B, HW, HW, E), jnp.float32)
    encoded_captions = jax.random.randint(k_cap, (B, max_cap_len), 1, V, jnp.int32)
    caption_lengths = jnp.array([[9], [5], [7], [3]], jnp.int32)

    preds, caps_sorted, dec_lens, alphas, sort_ind = decoder_with_attention_forward(
        params, encoder_out, encoded_captions, caption_lengths)
    jax.block_until_ready((preds, alphas))

    # sanity check vs the pure-JAX reference (same mixed-precision recipe)
    use_bf16_att = _chip_config()["use_bf16_att"]
    r_preds, r_caps, r_lens, r_alphas, r_sort = reference_forward(
        params, encoder_out, encoded_captions, caption_lengths, use_bf16_att)

    assert preds.shape == r_preds.shape and alphas.shape == r_alphas.shape
    assert jnp.allclose(preds, r_preds, atol=3e-3, rtol=3e-2), \
        float(jnp.max(jnp.abs(preds - r_preds)))
    assert jnp.allclose(alphas, r_alphas, atol=3e-3, rtol=3e-2), \
        float(jnp.max(jnp.abs(alphas - r_alphas)))
    assert jnp.array_equal(caps_sorted, r_caps)
    assert jnp.array_equal(dec_lens, r_lens)
    assert jnp.array_equal(sort_ind, r_sort)

    print("KERNEL_OK")
</pallas_src>

<mosaic_0001>
module attributes {stable_mosaic.version = 11 : i64} {
  func.func @_decoder_step_kernel(%arg0: i32, %arg1: i32, %arg2: memref<4x128x32xbf16, #tpu.memory_space<vmem>>, %arg3: memref<4x128x32xbf16, #tpu.memory_space<vmem>>, %arg4: memref<1x4x32xbf16, #tpu.memory_space<vmem>>, %arg5: memref<4x32xf32, #tpu.memory_space<vmem>>, %arg6: memref<4x32xf32, #tpu.memory_space<vmem>>, %arg7: memref<32x192xbf16, #tpu.memory_space<vmem>>, %arg8: memref<1x192xf32, #tpu.memory_space<vmem>>, %arg9: memref<1x32xf32, #tpu.memory_space<vmem>>, %arg10: memref<32x128xbf16, #tpu.memory_space<vmem>>, %arg11: memref<32x128xbf16, #tpu.memory_space<vmem>>, %arg12: memref<1x4x32xbf16, #tpu.memory_space<vmem>>, %arg13: memref<1x4x128xf32, #tpu.memory_space<vmem>>, %arg14: memref<4x32xf32, #tpu.memory_space<vmem>>, %arg15: memref<4x32xf32, #tpu.memory_space<vmem>>) attributes {dimension_semantics = [#tpu.dimension_semantics<parallel>, #tpu.dimension_semantics<arbitrary>], iteration_bounds = array<i64: 1, 8>, scalar_prefetch = 0 : i64, scratch_operands = 2 : i64, tpu.core_type = #tpu.core_type<tc>, window_params = [{pipeline_mode = #tpu.pipeline_mode<synchronous>, transform_indices = @transform_0, window_bounds = array<i64: 4, 128, 32>}, {pipeline_mode = #tpu.pipeline_mode<synchronous>, transform_indices = @transform_1, window_bounds = array<i64: 4, 128, 32>}, {transform_indices = @transform_2, window_bounds = array<i64: 1, 4, 32>}, {pipeline_mode = #tpu.pipeline_mode<synchronous>, transform_indices = @transform_3, window_bounds = array<i64: 4, 32>}, {pipeline_mode = #tpu.pipeline_mode<synchronous>, transform_indices = @transform_4, window_bounds = array<i64: 4, 32>}, {pipeline_mode = #tpu.pipeline_mode<synchronous>, transform_indices = @transform_5, window_bounds = array<i64: 32, 192>}, {pipeline_mode = #tpu.pipeline_mode<synchronous>, transform_indices = @transform_6, window_bounds = array<i64: 1, 192>}, {pipeline_mode = #tpu.pipeline_mode<synchronous>, transform_indices = @transform_7, window_bounds = array<i64: 1, 32>}, {pipeline_mode = #tpu.pipeline_mode<synchronous>, transform_indices = @transform_8, window_bounds = array<i64: 32, 128>}, {pipeline_mode = #tpu.pipeline_mode<synchronous>, transform_indices = @transform_9, window_bounds = array<i64: 32, 128>}, {transform_indices = @transform_10, window_bounds = array<i64: 1, 4, 32>}, {transform_indices = @transform_11, window_bounds = array<i64: 1, 4, 128>}]} {
    %c0_i32 = arith.constant 0 : i32
    %0 = arith.cmpi eq, %arg1, %c0_i32 : i32
    %1 = arith.extui %0 : i1 to i32
    %c0_i32_0 = arith.constant 0 : i32
    %2 = arith.cmpi ne, %1, %c0_i32_0 : i32
    scf.if %2 {
      %c0_45 = arith.constant 0 : index
      %c0_46 = arith.constant 0 : index
      %94 = vector.load %arg5[%c0_45, %c0_46] : memref<4x32xf32, #tpu.memory_space<vmem>>, vector<4x32xf32>
      %c0_47 = arith.constant 0 : index
      %c0_48 = arith.constant 0 : index
      %95 = vector.load %arg14[%c0_47, %c0_48] : memref<4x32xf32, #tpu.memory_space<vmem>>, vector<4x32xf32>
      tpu.vector_store %arg14[%c0_47, %c0_48], %94 {strides = array<i32>} : memref<4x32xf32, #tpu.memory_space<vmem>>, vector<4x32xf32>,
      %c0_49 = arith.constant 0 : index
      %c0_50 = arith.constant 0 : index
      %96 = vector.load %arg6[%c0_49, %c0_50] : memref<4x32xf32, #tpu.memory_space<vmem>>, vector<4x32xf32>
      %c0_51 = arith.constant 0 : index
      %c0_52 = arith.constant 0 : index
      %97 = vector.load %arg15[%c0_51, %c0_52] : memref<4x32xf32, #tpu.memory_space<vmem>>, vector<4x32xf32>
      tpu.vector_store %arg15[%c0_51, %c0_52], %96 {strides = array<i32>} : memref<4x32xf32, #tpu.memory_space<vmem>>, vector<4x32xf32>,
    } else {
    }
    %c0 = arith.constant 0 : index
    %c0_1 = arith.constant 0 : index
    %3 = vector.load %arg14[%c0, %c0_1] : memref<4x32xf32, #tpu.memory_space<vmem>>, vector<4x32xf32>
    %c0_2 = arith.constant 0 : index
    %c0_3 = arith.constant 0 : index
    %4 = vector.load %arg15[%c0_2, %c0_3] : memref<4x32xf32, #tpu.memory_space<vmem>>, vector<4x32xf32>
    %5 = arith.truncf %3 : vector<4x32xf32> to vector<4x32xbf16>
    %c0_4 = arith.constant 0 : index
    %c0_5 = arith.constant 0 : index
    %6 = vector.load %arg7[%c0_4, %c0_5] : memref<32x192xbf16, #tpu.memory_space<vmem>>, vector<32x192xbf16>
    %cst = arith.constant dense<0.000000e+00> : vector<4x192xf32>
    %7 = tpu.matmul %5, %6, %cst {dimension_numbers = #tpu.dot_dimension_numbers<[1], [0], [0], [1], [0, 0, 1, 1], [], []>} : vector<4x32xbf16>, vector<32x192xbf16>, vector<4x192xf32> -> vector<4x192xf32>
    %c0_6 = arith.constant 0 : index
    %c0_7 = arith.constant 0 : index
    %8 = vector.load %arg8[%c0_6, %c0_7] : memref<1x192xf32, #tpu.memory_space<vmem>>, vector<1x192xf32>
    %9 = vector.broadcast %8 : vector<1x192xf32> to vector<4x192xf32>
    %10 = arith.addf %7, %9 : vector<4x192xf32>
    %11 = vector.extract_strided_slice %10 {offsets = [0, 0], sizes = [4, 32], strides = [1, 1]} : vector<4x192xf32> to vector<4x32xf32>
    %12 = vector.extract_strided_slice %10 {offsets = [0, 32], sizes = [4, 32], strides = [1, 1]} : vector<4x192xf32> to vector<4x32xf32>
    %13 = arith.negf %12 : vector<4x32xf32>
    %14 = math.exp %13 : vector<4x32xf32>
    %cst_8 = arith.constant 1.000000e+00 : f32
    %15 = vector.broadcast %cst_8 : f32 to vector<4x32xf32>
    %16 = arith.addf %15, %14 : vector<4x32xf32>
    %17 = arith.divf %15, %16 : vector<4x32xf32>
    %18 = vector.extract_strided_slice %10 {offsets = [0, 64], sizes = [4, 128], strides = [1, 1]} : vector<4x192xf32> to vector<4x128xf32>
    %c0_9 = arith.constant 0 : index
    %c0_10 = arith.constant 0 : index
    %c0_11 = arith.constant 0 : index
    %19 = vector.load %arg3[%c0_9, %c0_10, %c0_11] : memref<4x128x32xbf16, #tpu.memory_space<vmem>>, vector<4x128x32xbf16>
    %20 = arith.extf %19 : vector<4x128x32xbf16> to vector<4x128x32xf32>
    %21 = vector.shape_cast %11 : vector<4x32xf32> to vector<4x1x32xf32>
    %22 = vector.broadcast %21 : vector<4x1x32xf32> to vector<4x128x32xf32>
    %23 = arith.addf %20, %22 : vector<4x128x32xf32>
    %cst_12 = arith.constant 0.000000e+00 : f32
    %24 = vector.broadcast %cst_12 : f32 to vector<4x128x32xf32>
    %25 = arith.maximumf %23, %24 : vector<4x128x32xf32>
    %c0_13 = arith.constant 0 : index
    %c0_14 = arith.constant 0 : index
    %26 = vector.load %arg9[%c0_13, %c0_14] : memref<1x32xf32, #tpu.memory_space<vmem>>, vector<1x32xf32>
    %27 = vector.shape_cast %26 : vector<1x32xf32> to vector<1x1x32xf32>
    %28 = vector.broadcast %27 : vector<1x1x32xf32> to vector<4x128x32xf32>
    %29 = arith.mulf %25, %28 : vector<4x128x32xf32>
    %cst_15 = arith.constant dense<0.000000e+00> : vector<4x128xf32>
    %30 = vector.multi_reduction <add>, %29, %cst_15 [2] : vector<4x128x32xf32> to vector<4x128xf32>
    %31 = tpu.iota {dimensions = array<i32: 1>} : vector<4x128xi32>
    %c16_i32 = arith.constant 16 : i32
    %32 = vector.broadcast %c16_i32 : i32 to vector<4x128xi32>
    %33 = arith.cmpi slt, %31, %32 : vector<4x128xi32>
    %cst_16 = arith.constant -1.000000e+30 : f32
    %34 = vector.broadcast %cst_16 : f32 to vector<4x128xf32>
    %35 = arith.select %33, %30, %34 : vector<4x128xi1>, vector<4x128xf32>
    %cst_17 = arith.constant dense<0xFF800000> : vector<4xf32>
    %36 = vector.multi_reduction <maximumf>, %35, %cst_17 [1] : vector<4x128xf32> to vector<4xf32>
    %37 = vector.shape_cast %36 : vector<4xf32> to vector<4x1xf32>
    %38 = vector.broadcast %37 : vector<4x1xf32> to vector<4x128xf32>
    %39 = arith.subf %35, %38 : vector<4x128xf32>
    %40 = math.exp %39 : vector<4x128xf32>
    %cst_18 = arith.constant dense<0.000000e+00> : vector<4xf32>
    %41 = vector.multi_reduction <add>, %40, %cst_18 [1] : vector<4x128xf32> to vector<4xf32>
    %42 = vector.shape_cast %41 : vector<4xf32> to vector<4x1xf32>
    %43 = vector.broadcast %42 : vector<4x1xf32> to vector<4x128xf32>
    %44 = arith.divf %40, %43 : vector<4x128xf32>
    %45 = arith.truncf %44 : vector<4x128xf32> to vector<4x128xbf16>
    %46 = vector.shape_cast %45 : vector<4x128xbf16> to vector<4x1x128xbf16>
    %c0_19 = arith.constant 0 : index
    %c0_20 = arith.constant 0 : index
    %c0_21 = arith.constant 0 : index
    %47 = vector.load %arg2[%c0_19, %c0_20, %c0_21] : memref<4x128x32xbf16, #tpu.memory_space<vmem>>, vector<4x128x32xbf16>
    "tpu.trace_start"() <{level = 10 : i32, message = "bqp,bpe->bqe"}> : () -> ()
    %cst_22 = arith.constant dense<0.000000e+00> : vector<4x1x32xf32>
    %48 = tpu.matmul %46, %47, %cst_22 {dimension_numbers = #tpu.dot_dimension_numbers<[2], [1], [1], [2], [0, 0, 0, 1, 1, 2], [0], [0]>} : vector<4x1x128xbf16>, vector<4x128x32xbf16>, vector<4x1x32xf32> -> vector<4x1x32xf32>
    "tpu.trace_stop"() : () -> ()
    %49 = vector.shape_cast %48 : vector<4x1x32xf32> to vector<4x32xf32>
    %50 = arith.mulf %17, %49 : vector<4x32xf32>
    %c0_23 = arith.constant 0 : index
    %c0_24 = arith.constant 0 : index
    %c0_25 = arith.constant 0 : index
    %51 = vector.load %arg4[%c0_23, %c0_24, %c0_25] : memref<1x4x32xbf16, #tpu.memory_space<vmem>>, vector<1x4x32xbf16>
    %52 = vector.shape_cast %51 : vector<1x4x32xbf16> to vector<4x32xbf16>
    %c0_26 = arith.constant 0 : index
    %c0_27 = arith.constant 0 : index
    %53 = vector.load %arg10[%c0_26, %c0_27] : memref<32x128xbf16, #tpu.memory_space<vmem>>, vector<32x128xbf16>
    %cst_28 = arith.constant dense<0.000000e+00> : vector<4x128xf32>
    %54 = tpu.matmul %52, %53, %cst_28 {dimension_numbers = #tpu.dot_dimension_numbers<[1], [0], [0], [1], [0, 0, 1, 1], [], []>} : vector<4x32xbf16>, vector<32x128xbf16>, vector<4x128xf32> -> vector<4x128xf32>
    %55 = arith.addf %18, %54 : vector<4x128xf32>
    %56 = arith.truncf %50 : vector<4x32xf32> to vector<4x32xbf16>
    %c0_29 = arith.constant 0 : index
    %c0_30 = arith.constant 0 : index
    %57 = vector.load %arg11[%c0_29, %c0_30] : memref<32x128xbf16, #tpu.memory_space<vmem>>, vector<32x128xbf16>
    %cst_31 = arith.constant dense<0.000000e+00> : vector<4x128xf32>
    %58 = tpu.matmul %56, %57, %cst_31 {dimension_numbers = #tpu.dot_dimension_numbers<[1], [0], [0], [1], [0, 0, 1, 1], [], []>} : vector<4x32xbf16>, vector<32x128xbf16>, vector<4x128xf32> -> vector<4x128xf32>
    %59 = arith.addf %55, %58 : vector<4x128xf32>
    %60 = vector.extract_strided_slice %59 {offsets = [0, 0], sizes = [4, 32], strides = [1, 1]} : vector<4x128xf32> to vector<4x32xf32>
    %61 = arith.negf %60 : vector<4x32xf32>
    %62 = math.exp %61 : vector<4x32xf32>
    %cst_32 = arith.constant 1.000000e+00 : f32
    %63 = vector.broadcast %cst_32 : f32 to vector<4x32xf32>
    %64 = arith.addf %63, %62 : vector<4x32xf32>
    %65 = arith.divf %63, %64 : vector<4x32xf32>
    %66 = vector.extract_strided_slice %59 {offsets = [0, 32], sizes = [4, 32], strides = [1, 1]} : vector<4x128xf32> to vector<4x32xf32>
    %67 = arith.negf %66 : vector<4x32xf32>
    %68 = math.exp %67 : vector<4x32xf32>
    %cst_33 = arith.constant 1.000000e+00 : f32
    %69 = vector.broadcast %cst_33 : f32 to vector<4x32xf32>
    %70 = arith.addf %69, %68 : vector<4x32xf32>
    %71 = arith.divf %69, %70 : vector<4x32xf32>
    %72 = vector.extract_strided_slice %59 {offsets = [0, 64], sizes = [4, 32], strides = [1, 1]} : vector<4x128xf32> to vector<4x32xf32>
    %73 = math.tanh %72 : vector<4x32xf32>
    %74 = vector.extract_strided_slice %59 {offsets = [0, 96], sizes = [4, 32], strides = [1, 1]} : vector<4x128xf32> to vector<4x32xf32>
    %75 = arith.negf %74 : vector<4x32xf32>
    %76 = math.exp %75 : vector<4x32xf32>
    %cst_34 = arith.constant 1.000000e+00 : f32
    %77 = vector.broadcast %cst_34 : f32 to vector<4x32xf32>
    %78 = arith.addf %77, %76 : vector<4x32xf32>
    %79 = arith.divf %77, %78 : vector<4x32xf32>
    %80 = arith.mulf %71, %4 : vector<4x32xf32>
    %81 = arith.mulf %65, %73 : vector<4x32xf32>
    %82 = arith.addf %80, %81 : vector<4x32xf32>
    %83 = math.tanh %82 : vector<4x32xf32>
    %84 = arith.mulf %79, %83 : vector<4x32xf32>
    %c0_35 = arith.constant 0 : index
    %c0_36 = arith.constant 0 : index
    %85 = vector.load %arg14[%c0_35, %c0_36] : memref<4x32xf32, #tpu.memory_space<vmem>>, vector<4x32xf32>
    tpu.vector_store %arg14[%c0_35, %c0_36], %84 {strides = array<i32>} : memref<4x32xf32, #tpu.memory_space<vmem>>, vector<4x32xf32>,
    %c0_37 = arith.constant 0 : index
    %c0_38 = arith.constant 0 : index
    %86 = vector.load %arg15[%c0_37, %c0_38] : memref<4x32xf32, #tpu.memory_space<vmem>>, vector<4x32xf32>
    tpu.vector_store %arg15[%c0_37, %c0_38], %82 {strides = array<i32>} : memref<4x32xf32, #tpu.memory_space<vmem>>, vector<4x32xf32>,
    %87 = arith.truncf %84 : vector<4x32xf32> to vector<4x32xbf16>
    %c0_39 = arith.constant 0 : index
    %c0_40 = arith.constant 0 : index
    %c0_41 = arith.constant 0 : index
    %88 = vector.load %arg12[%c0_39, %c0_40, %c0_41] : memref<1x4x32xbf16, #tpu.memory_space<vmem>>, vector<1x4x32xbf16>
    %89 = vector.shape_cast %88 : vector<1x4x32xbf16> to vector<4x32xbf16>
    %90 = vector.shape_cast %87 : vector<4x32xbf16> to vector<1x4x32xbf16>
    tpu.vector_store %arg12[%c0_39, %c0_40, %c0_41], %90 {strides = array<i32>} : memref<1x4x32xbf16, #tpu.memory_space<vmem>>, vector<1x4x32xbf16>,
    %c0_42 = arith.constant 0 : index
    %c0_43 = arith.constant 0 : index
    %c0_44 = arith.constant 0 : index
    %91 = vector.load %arg13[%c0_42, %c0_43, %c0_44] : memref<1x4x128xf32, #tpu.memory_space<vmem>>, vector<1x4x128xf32>
    %92 = vector.shape_cast %91 : vector<1x4x128xf32> to vector<4x128xf32>
    %93 = vector.shape_cast %44 : vector<4x128xf32> to vector<1x4x128xf32>
    tpu.vector_store %arg13[%c0_42, %c0_43, %c0_44], %93 {strides = array<i32>} : memref<1x4x128xf32, #tpu.memory_space<vmem>>, vector<1x4x128xf32>,
    return
  }
  func.func @transform_0(%arg0: i32, %arg1: i32) -> (i32, i32, i32) {
    %c0_i32 = arith.constant 0 : i32
    %c0_i32_0 = arith.constant 0 : i32
    %c0_i32_1 = arith.constant 0 : i32
    return %arg0, %c0_i32, %c0_i32_0 : i32, i32, i32
  }
  func.func @transform_1(%arg0: i32, %arg1: i32) -> (i32, i32, i32) {
    %c0_i32 = arith.constant 0 : i32
    %c0_i32_0 = arith.constant 0 : i32
    %c0_i32_1 = arith.constant 0 : i32
    return %arg0, %c0_i32, %c0_i32_0 : i32, i32, i32
  }
  func.func @transform_2(%arg0: i32, %arg1: i32) -> (i32, i32, i32) {
    %c0_i32 = arith.constant 0 : i32
    %c0_i32_0 = arith.constant 0 : i32
    return %arg1, %arg0, %c0_i32 : i32, i32, i32
  }
  func.func @transform_3(%arg0: i32, %arg1: i32) -> (i32, i32) {
    %c0_i32 = arith.constant 0 : i32
    %c0_i32_0 = arith.constant 0 : i32
    return %arg0, %c0_i32 : i32, i32
  }
  func.func @transform_4(%arg0: i32, %arg1: i32) -> (i32, i32) {
    %c0_i32 = arith.constant 0 : i32
    %c0_i32_0 = arith.constant 0 : i32
    return %arg0, %c0_i32 : i32, i32
  }
  func.func @transform_5(%arg0: i32, %arg1: i32) -> (i32, i32) {
    %c0_i32 = arith.constant 0 : i32
    %c0_i32_0 = arith.constant 0 : i32
    %c0_i32_1 = arith.constant 0 : i32
    return %c0_i32, %c0_i32_0 : i32, i32
  }
  func.func @transform_6(%arg0: i32, %arg1: i32) -> (i32, i32) {
    %c0_i32 = arith.constant 0 : i32
    %c0_i32_0 = arith.constant 0 : i32
    %c0_i32_1 = arith.constant 0 : i32
    return %c0_i32, %c0_i32_0 : i32, i32
  }
  func.func @transform_7(%arg0: i32, %arg1: i32) -> (i32, i32) {
    %c0_i32 = arith.constant 0 : i32
    %c0_i32_0 = arith.constant 0 : i32
    %c0_i32_1 = arith.constant 0 : i32
    return %c0_i32, %c0_i32_0 : i32, i32
  }
  func.func @transform_8(%arg0: i32, %arg1: i32) -> (i32, i32) {
    %c0_i32 = arith.constant 0 : i32
    %c0_i32_0 = arith.constant 0 : i32
    %c0_i32_1 = arith.constant 0 : i32
    return %c0_i32, %c0_i32_0 : i32, i32
  }
  func.func @transform_9(%arg0: i32, %arg1: i32) -> (i32, i32) {
    %c0_i32 = arith.constant 0 : i32
    %c0_i32_0 = arith.constant 0 : i32
    %c0_i32_1 = arith.constant 0 : i32
    return %c0_i32, %c0_i32_0 : i32, i32
  }
  func.func @transform_10(%arg0: i32, %arg1: i32) -> (i32, i32, i32) {
    %c0_i32 = arith.constant 0 : i32
    %c0_i32_0 = arith.constant 0 : i32
    return %arg1, %arg0, %c0_i32 : i32, i32, i32
  }
  func.func @transform_11(%arg0: i32, %arg1: i32) -> (i32, i32, i32) {
    %c0_i32 = arith.constant 0 : i32
    %c0_i32_0 = arith.constant 0 : i32
    return %arg1, %arg0, %c0_i32 : i32, i32, i32
  }
}

module attributes {stable_mosaic.version = 11 : i64} {
  func.func @_decoder_step_kernel(%arg0: i32, %arg1: i32, %arg2: memref<4x128x32xbf16, #tpu.memory_space<vmem>>, %arg3: memref<4x128x32xbf16, #tpu.memory_space<vmem>>, %arg4: memref<1x4x32xbf16, #tpu.memory_space<vmem>>, %arg5: memref<4x32xf32, #tpu.memory_space<vmem>>, %arg6: memref<4x32xf32, #tpu.memory_space<vmem>>, %arg7: memref<32x192xbf16, #tpu.memory_space<vmem>>, %arg8: memref<1x192xf32, #tpu.memory_space<vmem>>, %arg9: memref<1x32xf32, #tpu.memory_space<vmem>>, %arg10: memref<32x128xbf16, #tpu.memory_space<vmem>>, %arg11: memref<32x128xbf16, #tpu.memory_space<vmem>>, %arg12: memref<1x4x32xbf16, #tpu.memory_space<vmem>>, %arg13: memref<1x4x128xf32, #tpu.memory_space<vmem>>, %arg14: memref<4x32xf32, #tpu.memory_space<vmem>>, %arg15: memref<4x32xf32, #tpu.memory_space<vmem>>) attributes {dimension_semantics = [#tpu.dimension_semantics<parallel>, #tpu.dimension_semantics<arbitrary>], iteration_bounds = array<i64: 1, 8>, scalar_prefetch = 0 : i64, scratch_operands = 2 : i64, tpu.core_type = #tpu.core_type<tc>, window_params = [{transform_indices = @transform_0, window_bounds = array<i64: 4, 128, 32>}, {transform_indices = @transform_1, window_bounds = array<i64: 4, 128, 32>}, {transform_indices = @transform_2, window_bounds = array<i64: 1, 4, 32>}, {transform_indices = @transform_3, window_bounds = array<i64: 4, 32>}, {transform_indices = @transform_4, window_bounds = array<i64: 4, 32>}, {pipeline_mode = #tpu.pipeline_mode<synchronous>, transform_indices = @transform_5, window_bounds = array<i64: 32, 192>}, {pipeline_mode = #tpu.pipeline_mode<synchronous>, transform_indices = @transform_6, window_bounds = array<i64: 1, 192>}, {pipeline_mode = #tpu.pipeline_mode<synchronous>, transform_indices = @transform_7, window_bounds = array<i64: 1, 32>}, {pipeline_mode = #tpu.pipeline_mode<synchronous>, transform_indices = @transform_8, window_bounds = array<i64: 32, 128>}, {pipeline_mode = #tpu.pipeline_mode<synchronous>, transform_indices = @transform_9, window_bounds = array<i64: 32, 128>}, {transform_indices = @transform_10, window_bounds = array<i64: 1, 4, 32>}, {transform_indices = @transform_11, window_bounds = array<i64: 1, 4, 128>}]} {
    %c0_i32 = arith.constant 0 : i32
    %0 = arith.cmpi eq, %arg1, %c0_i32 : i32
    %1 = arith.extui %0 : i1 to i32
    %c0_i32_0 = arith.constant 0 : i32
    %2 = arith.cmpi ne, %1, %c0_i32_0 : i32
    scf.if %2 {
      %c0_45 = arith.constant 0 : index
      %c0_46 = arith.constant 0 : index
      %94 = vector.load %arg5[%c0_45, %c0_46] : memref<4x32xf32, #tpu.memory_space<vmem>>, vector<4x32xf32>
      %c0_47 = arith.constant 0 : index
      %c0_48 = arith.constant 0 : index
      %95 = vector.load %arg14[%c0_47, %c0_48] : memref<4x32xf32, #tpu.memory_space<vmem>>, vector<4x32xf32>
      tpu.vector_store %arg14[%c0_47, %c0_48], %94 {strides = array<i32>} : memref<4x32xf32, #tpu.memory_space<vmem>>, vector<4x32xf32>,
      %c0_49 = arith.constant 0 : index
      %c0_50 = arith.constant 0 : index
      %96 = vector.load %arg6[%c0_49, %c0_50] : memref<4x32xf32, #tpu.memory_space<vmem>>, vector<4x32xf32>
      %c0_51 = arith.constant 0 : index
      %c0_52 = arith.constant 0 : index
      %97 = vector.load %arg15[%c0_51, %c0_52] : memref<4x32xf32, #tpu.memory_space<vmem>>, vector<4x32xf32>
      tpu.vector_store %arg15[%c0_51, %c0_52], %96 {strides = array<i32>} : memref<4x32xf32, #tpu.memory_space<vmem>>, vector<4x32xf32>,
    } else {
    }
    %c0 = arith.constant 0 : index
    %c0_1 = arith.constant 0 : index
    %3 = vector.load %arg14[%c0, %c0_1] : memref<4x32xf32, #tpu.memory_space<vmem>>, vector<4x32xf32>
    %c0_2 = arith.constant 0 : index
    %c0_3 = arith.constant 0 : index
    %4 = vector.load %arg15[%c0_2, %c0_3] : memref<4x32xf32, #tpu.memory_space<vmem>>, vector<4x32xf32>
    %5 = arith.truncf %3 : vector<4x32xf32> to vector<4x32xbf16>
    %c0_4 = arith.constant 0 : index
    %c0_5 = arith.constant 0 : index
    %6 = vector.load %arg7[%c0_4, %c0_5] : memref<32x192xbf16, #tpu.memory_space<vmem>>, vector<32x192xbf16>
    %cst = arith.constant dense<0.000000e+00> : vector<4x192xf32>
    %7 = tpu.matmul %5, %6, %cst {dimension_numbers = #tpu.dot_dimension_numbers<[1], [0], [0], [1], [0, 0, 1, 1], [], []>} : vector<4x32xbf16>, vector<32x192xbf16>, vector<4x192xf32> -> vector<4x192xf32>
    %c0_6 = arith.constant 0 : index
    %c0_7 = arith.constant 0 : index
    %8 = vector.load %arg8[%c0_6, %c0_7] : memref<1x192xf32, #tpu.memory_space<vmem>>, vector<1x192xf32>
    %9 = vector.broadcast %8 : vector<1x192xf32> to vector<4x192xf32>
    %10 = arith.addf %7, %9 : vector<4x192xf32>
    %11 = vector.extract_strided_slice %10 {offsets = [0, 0], sizes = [4, 32], strides = [1, 1]} : vector<4x192xf32> to vector<4x32xf32>
    %12 = vector.extract_strided_slice %10 {offsets = [0, 32], sizes = [4, 32], strides = [1, 1]} : vector<4x192xf32> to vector<4x32xf32>
    %13 = arith.negf %12 : vector<4x32xf32>
    %14 = math.exp %13 : vector<4x32xf32>
    %cst_8 = arith.constant 1.000000e+00 : f32
    %15 = vector.broadcast %cst_8 : f32 to vector<4x32xf32>
    %16 = arith.addf %15, %14 : vector<4x32xf32>
    %17 = arith.divf %15, %16 : vector<4x32xf32>
    %18 = vector.extract_strided_slice %10 {offsets = [0, 64], sizes = [4, 128], strides = [1, 1]} : vector<4x192xf32> to vector<4x128xf32>
    %c0_9 = arith.constant 0 : index
    %c0_10 = arith.constant 0 : index
    %c0_11 = arith.constant 0 : index
    %19 = vector.load %arg3[%c0_9, %c0_10, %c0_11] : memref<4x128x32xbf16, #tpu.memory_space<vmem>>, vector<4x128x32xbf16>
    %20 = arith.extf %19 : vector<4x128x32xbf16> to vector<4x128x32xf32>
    %21 = vector.shape_cast %11 : vector<4x32xf32> to vector<4x1x32xf32>
    %22 = vector.broadcast %21 : vector<4x1x32xf32> to vector<4x128x32xf32>
    %23 = arith.addf %20, %22 : vector<4x128x32xf32>
    %cst_12 = arith.constant 0.000000e+00 : f32
    %24 = vector.broadcast %cst_12 : f32 to vector<4x128x32xf32>
    %25 = arith.maximumf %23, %24 : vector<4x128x32xf32>
    %c0_13 = arith.constant 0 : index
    %c0_14 = arith.constant 0 : index
    %26 = vector.load %arg9[%c0_13, %c0_14] : memref<1x32xf32, #tpu.memory_space<vmem>>, vector<1x32xf32>
    %27 = vector.shape_cast %26 : vector<1x32xf32> to vector<1x1x32xf32>
    %28 = vector.broadcast %27 : vector<1x1x32xf32> to vector<4x128x32xf32>
    %29 = arith.mulf %25, %28 : vector<4x128x32xf32>
    %cst_15 = arith.constant dense<0.000000e+00> : vector<4x128xf32>
    %30 = vector.multi_reduction <add>, %29, %cst_15 [2] : vector<4x128x32xf32> to vector<4x128xf32>
    %31 = tpu.iota {dimensions = array<i32: 1>} : vector<4x128xi32>
    %c16_i32 = arith.constant 16 : i32
    %32 = vector.broadcast %c16_i32 : i32 to vector<4x128xi32>
    %33 = arith.cmpi slt, %31, %32 : vector<4x128xi32>
    %cst_16 = arith.constant -1.000000e+30 : f32
    %34 = vector.broadcast %cst_16 : f32 to vector<4x128xf32>
    %35 = arith.select %33, %30, %34 : vector<4x128xi1>, vector<4x128xf32>
    %cst_17 = arith.constant dense<0xFF800000> : vector<4xf32>
    %36 = vector.multi_reduction <maximumf>, %35, %cst_17 [1] : vector<4x128xf32> to vector<4xf32>
    %37 = vector.shape_cast %36 : vector<4xf32> to vector<4x1xf32>
    %38 = vector.broadcast %37 : vector<4x1xf32> to vector<4x128xf32>
    %39 = arith.subf %35, %38 : vector<4x128xf32>
    %40 = math.exp %39 : vector<4x128xf32>
    %cst_18 = arith.constant dense<0.000000e+00> : vector<4xf32>
    %41 = vector.multi_reduction <add>, %40, %cst_18 [1] : vector<4x128xf32> to vector<4xf32>
    %42 = vector.shape_cast %41 : vector<4xf32> to vector<4x1xf32>
    %43 = vector.broadcast %42 : vector<4x1xf32> to vector<4x128xf32>
    %44 = arith.divf %40, %43 : vector<4x128xf32>
    %45 = arith.truncf %44 : vector<4x128xf32> to vector<4x128xbf16>
    %46 = vector.shape_cast %45 : vector<4x128xbf16> to vector<4x1x128xbf16>
    %c0_19 = arith.constant 0 : index
    %c0_20 = arith.constant 0 : index
    %c0_21 = arith.constant 0 : index
    %47 = vector.load %arg2[%c0_19, %c0_20, %c0_21] : memref<4x128x32xbf16, #tpu.memory_space<vmem>>, vector<4x128x32xbf16>
    "tpu.trace_start"() <{level = 10 : i32, message = "bqp,bpe->bqe"}> : () -> ()
    %cst_22 = arith.constant dense<0.000000e+00> : vector<4x1x32xf32>
    %48 = tpu.matmul %46, %47, %cst_22 {dimension_numbers = #tpu.dot_dimension_numbers<[2], [1], [1], [2], [0, 0, 0, 1, 1, 2], [0], [0]>} : vector<4x1x128xbf16>, vector<4x128x32xbf16>, vector<4x1x32xf32> -> vector<4x1x32xf32>
    "tpu.trace_stop"() : () -> ()
    %49 = vector.shape_cast %48 : vector<4x1x32xf32> to vector<4x32xf32>
    %50 = arith.mulf %17, %49 : vector<4x32xf32>
    %c0_23 = arith.constant 0 : index
    %c0_24 = arith.constant 0 : index
    %c0_25 = arith.constant 0 : index
    %51 = vector.load %arg4[%c0_23, %c0_24, %c0_25] : memref<1x4x32xbf16, #tpu.memory_space<vmem>>, vector<1x4x32xbf16>
    %52 = vector.shape_cast %51 : vector<1x4x32xbf16> to vector<4x32xbf16>
    %c0_26 = arith.constant 0 : index
    %c0_27 = arith.constant 0 : index
    %53 = vector.load %arg10[%c0_26, %c0_27] : memref<32x128xbf16, #tpu.memory_space<vmem>>, vector<32x128xbf16>
    %cst_28 = arith.constant dense<0.000000e+00> : vector<4x128xf32>
    %54 = tpu.matmul %52, %53, %cst_28 {dimension_numbers = #tpu.dot_dimension_numbers<[1], [0], [0], [1], [0, 0, 1, 1], [], []>} : vector<4x32xbf16>, vector<32x128xbf16>, vector<4x128xf32> -> vector<4x128xf32>
    %55 = arith.addf %18, %54 : vector<4x128xf32>
    %56 = arith.truncf %50 : vector<4x32xf32> to vector<4x32xbf16>
    %c0_29 = arith.constant 0 : index
    %c0_30 = arith.constant 0 : index
    %57 = vector.load %arg11[%c0_29, %c0_30] : memref<32x128xbf16, #tpu.memory_space<vmem>>, vector<32x128xbf16>
    %cst_31 = arith.constant dense<0.000000e+00> : vector<4x128xf32>
    %58 = tpu.matmul %56, %57, %cst_31 {dimension_numbers = #tpu.dot_dimension_numbers<[1], [0], [0], [1], [0, 0, 1, 1], [], []>} : vector<4x32xbf16>, vector<32x128xbf16>, vector<4x128xf32> -> vector<4x128xf32>
    %59 = arith.addf %55, %58 : vector<4x128xf32>
    %60 = vector.extract_strided_slice %59 {offsets = [0, 0], sizes = [4, 32], strides = [1, 1]} : vector<4x128xf32> to vector<4x32xf32>
    %61 = arith.negf %60 : vector<4x32xf32>
    %62 = math.exp %61 : vector<4x32xf32>
    %cst_32 = arith.constant 1.000000e+00 : f32
    %63 = vector.broadcast %cst_32 : f32 to vector<4x32xf32>
    %64 = arith.addf %63, %62 : vector<4x32xf32>
    %65 = arith.divf %63, %64 : vector<4x32xf32>
    %66 = vector.extract_strided_slice %59 {offsets = [0, 32], sizes = [4, 32], strides = [1, 1]} : vector<4x128xf32> to vector<4x32xf32>
    %67 = arith.negf %66 : vector<4x32xf32>
    %68 = math.exp %67 : vector<4x32xf32>
    %cst_33 = arith.constant 1.000000e+00 : f32
    %69 = vector.broadcast %cst_33 : f32 to vector<4x32xf32>
    %70 = arith.addf %69, %68 : vector<4x32xf32>
    %71 = arith.divf %69, %70 : vector<4x32xf32>
    %72 = vector.extract_strided_slice %59 {offsets = [0, 64], sizes = [4, 32], strides = [1, 1]} : vector<4x128xf32> to vector<4x32xf32>
    %73 = math.tanh %72 : vector<4x32xf32>
    %74 = vector.extract_strided_slice %59 {offsets = [0, 96], sizes = [4, 32], strides = [1, 1]} : vector<4x128xf32> to vector<4x32xf32>
    %75 = arith.negf %74 : vector<4x32xf32>
    %76 = math.exp %75 : vector<4x32xf32>
    %cst_34 = arith.constant 1.000000e+00 : f32
    %77 = vector.broadcast %cst_34 : f32 to vector<4x32xf32>
    %78 = arith.addf %77, %76 : vector<4x32xf32>
    %79 = arith.divf %77, %78 : vector<4x32xf32>
    %80 = arith.mulf %71, %4 : vector<4x32xf32>
    %81 = arith.mulf %65, %73 : vector<4x32xf32>
    %82 = arith.addf %80, %81 : vector<4x32xf32>
    %83 = math.tanh %82 : vector<4x32xf32>
    %84 = arith.mulf %79, %83 : vector<4x32xf32>
    %c0_35 = arith.constant 0 : index
    %c0_36 = arith.constant 0 : index
    %85 = vector.load %arg14[%c0_35, %c0_36] : memref<4x32xf32, #tpu.memory_space<vmem>>, vector<4x32xf32>
    tpu.vector_store %arg14[%c0_35, %c0_36], %84 {strides = array<i32>} : memref<4x32xf32, #tpu.memory_space<vmem>>, vector<4x32xf32>,
    %c0_37 = arith.constant 0 : index
    %c0_38 = arith.constant 0 : index
    %86 = vector.load %arg15[%c0_37, %c0_38] : memref<4x32xf32, #tpu.memory_space<vmem>>, vector<4x32xf32>
    tpu.vector_store %arg15[%c0_37, %c0_38], %82 {strides = array<i32>} : memref<4x32xf32, #tpu.memory_space<vmem>>, vector<4x32xf32>,
    %87 = arith.truncf %84 : vector<4x32xf32> to vector<4x32xbf16>
    %c0_39 = arith.constant 0 : index
    %c0_40 = arith.constant 0 : index
    %c0_41 = arith.constant 0 : index
    %88 = vector.load %arg12[%c0_39, %c0_40, %c0_41] : memref<1x4x32xbf16, #tpu.memory_space<vmem>>, vector<1x4x32xbf16>
    %89 = vector.shape_cast %88 : vector<1x4x32xbf16> to vector<4x32xbf16>
    %90 = vector.shape_cast %87 : vector<4x32xbf16> to vector<1x4x32xbf16>
    tpu.vector_store %arg12[%c0_39, %c0_40, %c0_41], %90 {strides = array<i32>} : memref<1x4x32xbf16, #tpu.memory_space<vmem>>, vector<1x4x32xbf16>,
    %c0_42 = arith.constant 0 : index
    %c0_43 = arith.constant 0 : index
    %c0_44 = arith.constant 0 : index
    %91 = vector.load %arg13[%c0_42, %c0_43, %c0_44] : memref<1x4x128xf32, #tpu.memory_space<vmem>>, vector<1x4x128xf32>
    %92 = vector.shape_cast %91 : vector<1x4x128xf32> to vector<4x128xf32>
    %93 = vector.shape_cast %44 : vector<4x128xf32> to vector<1x4x128xf32>
    tpu.vector_store %arg13[%c0_42, %c0_43, %c0_44], %93 {strides = array<i32>} : memref<1x4x128xf32, #tpu.memory_space<vmem>>, vector<1x4x128xf32>,
    return
  }
  func.func @transform_0(%arg0: i32, %arg1: i32) -> (i32, i32, i32) {
    %c0_i32 = arith.constant 0 : i32
    %c0_i32_0 = arith.constant 0 : i32
    %c0_i32_1 = arith.constant 0 : i32
    return %arg0, %c0_i32, %c0_i32_0 : i32, i32, i32
  }
  func.func @transform_1(%arg0: i32, %arg1: i32) -> (i32, i32, i32) {
    %c0_i32 = arith.constant 0 : i32
    %c0_i32_0 = arith.constant 0 : i32
    %c0_i32_1 = arith.constant 0 : i32
    return %arg0, %c0_i32, %c0_i32_0 : i32, i32, i32
  }
  func.func @transform_2(%arg0: i32, %arg1: i32) -> (i32, i32, i32) {
    %c0_i32 = arith.constant 0 : i32
    %c0_i32_0 = arith.constant 0 : i32
    return %arg1, %arg0, %c0_i32 : i32, i32, i32
  }
  func.func @transform_3(%arg0: i32, %arg1: i32) -> (i32, i32) {
    %c0_i32 = arith.constant 0 : i32
    %c0_i32_0 = arith.constant 0 : i32
    return %arg0, %c0_i32 : i32, i32
  }
  func.func @transform_4(%arg0: i32, %arg1: i32) -> (i32, i32) {
    %c0_i32 = arith.constant 0 : i32
    %c0_i32_0 = arith.constant 0 : i32
    return %arg0, %c0_i32 : i32, i32
  }
  func.func @transform_5(%arg0: i32, %arg1: i32) -> (i32, i32) {
    %c0_i32 = arith.constant 0 : i32
    %c0_i32_0 = arith.constant 0 : i32
    %c0_i32_1 = arith.constant 0 : i32
    return %c0_i32, %c0_i32_0 : i32, i32
  }
  func.func @transform_6(%arg0: i32, %arg1: i32) -> (i32, i32) {
    %c0_i32 = arith.constant 0 : i32
    %c0_i32_0 = arith.constant 0 : i32
    %c0_i32_1 = arith.constant 0 : i32
    return %c0_i32, %c0_i32_0 : i32, i32
  }
  func.func @transform_7(%arg0: i32, %arg1: i32) -> (i32, i32) {
    %c0_i32 = arith.constant 0 : i32
    %c0_i32_0 = arith.constant 0 : i32
    %c0_i32_1 = arith.constant 0 : i32
    return %c0_i32, %c0_i32_0 : i32, i32
  }
  func.func @transform_8(%arg0: i32, %arg1: i32) -> (i32, i32) {
    %c0_i32 = arith.constant 0 : i32
    %c0_i32_0 = arith.constant 0 : i32
    %c0_i32_1 = arith.constant 0 : i32
    return %c0_i32, %c0_i32_0 : i32, i32
  }
  func.func @transform_9(%arg0: i32, %arg1: i32) -> (i32, i32) {
    %c0_i32 = arith.constant 0 : i32
    %c0_i32_0 = arith.constant 0 : i32
    %c0_i32_1 = arith.constant 0 : i32
    return %c0_i32, %c0_i32_0 : i32, i32
  }
  func.func @transform_10(%arg0: i32, %arg1: i32) -> (i32, i32, i32) {
    %c0_i32 = arith.constant 0 : i32
    %c0_i32_0 = arith.constant 0 : i32
    return %arg1, %arg0, %c0_i32 : i32, i32, i32
  }
  func.func @transform_11(%arg0: i32, %arg1: i32) -> (i32, i32, i32) {
    %c0_i32 = arith.constant 0 : i32
    %c0_i32_0 = arith.constant 0 : i32
    return %arg1, %arg0, %c0_i32 : i32, i32, i32
  }
}

</mosaic_0001>

<bundles_post_ra>
// kernel: tpu_custom_call.1
= control target key start
LH: loop header
LB: loop body
LE: loop exit
PB: predicated region body
PF: predicated region fallthrough
CT: control target
= control target key end

     0   :  { %17 = vsyncpa [#allocation5], 0  ;;  %s4129_s0 = inlined_call_operand.vmem [shape: bf16[4,128,32], index: 0, kind: input, shape index: {}]   ;;  %s4130_s1 = inlined_call_operand.vmem [shape: bf16[4,128,32], index: 1, kind: input, shape index: {}]   ;;  %s4131_s2 = inlined_call_operand.vmem [shape: bf16[8,4,32], index: 2, kind: input, shape index: {}]   ;;  %s4132_s3 = inlined_call_operand.vmem [shape: f32[4,32], index: 3, kind: input, shape index: {}]   ;;  %s4133_s4 = inlined_call_operand.vmem [shape: f32[4,32], index: 4, kind: input, shape index: {}]   ;;  %s4134_s5 = inlined_call_operand.vmem [shape: bf16[32,192], index: 5, kind: input, shape index: {}]   ;;  %s4135_s6 = inlined_call_operand.vmem [shape: f32[1,192], index: 6, kind: input, shape index: {}]   ;;  %s4136_s7 = inlined_call_operand.vmem [shape: f32[1,32], index: 7, kind: input, shape index: {}]   ;;  %s4137_s8 = inlined_call_operand.vmem [shape: bf16[32,128], index: 8, kind: input, shape index: {}]   ;;  %s4138_s9 = inlined_call_operand.vmem [shape: bf16[32,128], index: 9, kind: input, shape index: {}]   ;;  %s4139_s10 = inlined_call_operand.hbm [shape: bf16[8,4,32], index: 10, kind: output, shape index: {0}]   ;;  %s4140_s11 = inlined_call_operand.hbm [shape: f32[8,4,128], index: 11, kind: output, shape index: {1}]  }
   0x1   :  { %19 = vsyncpa [#allocation5 + $0x1], 0 }
   0x2   :  { %20 = vsyncpa [#allocation7], 0 }
   0x3   :  { %22 = vsyncpa [#allocation7 + $0x1], 0  ;;  %s3154_s17 = smov 0   ;;  %s3156_s18 = smov 0  }
   0x4   :  { %s3158_s19 = smov 0   ;;  %s3160_s20 = smov 0  }
   0x5   :  { %s3162_s21 = smov 0   ;;  %s3164_s22 = smov 0  }
   0x6 LB: > { %4147 = sst [smem:[#allocation10_spill]] %s3066_s18  ;;  %s2476_s23 = sadd.s32 4294967295, %s3082_s22   ;;  %s3082_s22 = sphi %s3164_s22, %s28_s22   ;;  %s3078_s21 = sphi %s3162_s21, %s4161_s21   ;;  %s3074_s20 = sphi %s3160_s20, %s4160_s20   ;;  %s3070_s19 = sphi %s3158_s19, %s4159_s19   ;;  %s3066_s18 = sphi %s3156_s18, %s4158_s18   ;;  %s3062_s17 = sphi %s3154_s17, %s4157_s17  }
   0x7   : > { %4148 = sst [smem:[#allocation11_spill]] %s3070_s19  ;;  %s2477_s24 = sadd.s32 4294967294, %s3082_s22  }
   0x8   : > { %4149 = sst [smem:[#allocation12_spill]] %s3078_s21  ;;  %s37_s25 = sadd.s32 1, %s3078_s21 }
   0x9   : > { %s286_s26 = sadd.s32 1, %s3070_s19  ;;  %p38_p0 = scmp.ge.s32.totalorder %s37_s25, 8 }
   0xa   : > { %p296_p1 = scmp.ne.s32.totalorder %s3070_s19, %s3066_s18  ;;  %p297_p2 = scmp.eq.s32.totalorder %s2476_s23, 7 }
   0xb   : > { %p302_p3 = scmp.ne.s32.totalorder %s3066_s18, %s3062_s17  ;;  %s4163_s25 = smov (%p38_p0, %s37_s25), 0 }
   0xc   : > { %4150 = sst [smem:[#allocation13_spill]] %s4163_s25  ;;  %p3194_p4 = por %p297_p2, %p296_p1 }
   0xd   : > { %p303_p5 = scmp.eq.s32.totalorder %s2477_s24, 7  ;;  %s281_s28 = ssub.s32 %s3078_s21, %s4163_s25 }
   0xe   : > { %p2484_p6 = scmp.ge.s32.totalorder %s3082_s22, 1  ;;  %p284_p7 = scmp.eq.s32.totalorder %s281_s28, 0 }
   0xf   : > { %p3201_p8 = por %p303_p5, %p302_p3  ;;  %p408_p9 = scmp.lt.s32.totalorder %s3082_s22, 9 }
  0x10   : > { %s3207_s30 = scalar_select %p284_p7, %s3070_s19, %s286_s26  }
  0x11   : > { %p409_p10 = pnand %p2484_p6, %p408_p9 }
  0x12   : > { %4153 = sst [smem:[#allocation14_spill]] %s3207_s30  ;;  %s3210_s12 = sand.u32 (!%p409_p10), 1, %s3066_s18  }
  0x13   : > { %412 = sbr.rel (%p409_p10) target bundleno = 2196 (0x894), region = 60  ;;  %p489_p11 = scmp.lt.s32.totalorder (!%p409_p10), %s3074_s20, 7 }
  0x14   : > { %s2485_s13 = sshll.u32 (!%p409_p10), %s3210_s12, 1  ;;  %s2486_s14 = sshll.u32 (!%p409_p10), %s3210_s12, 2 }
  0x15   : > { %s3221_s26 = scalar_lea.vmem (!%p409_p10), [#allocation4], %s2485_s13  ;;  %s3223_s25 = scalar_lea.vmem (!%p409_p10), [#allocation6], %s2486_s14 }
  0x16   : > { %p2488_p12 = scmp.ne.s32.totalorder (!%p409_p10), %s3074_s20, 0 }
  0x1a   : > { %s490_s15 = scalar_select %p489_p11, %s3074_s20, 7 }
  0x1b   : > { %508 = sbr.rel (%p2488_p12) target bundleno = 34 (0x22), region = 64  ;;  %v509_v0 = vld [vmem:[%s4132_s3] sm:$0xf] (!%p2488_p12)  ;;  %vm510_vm0 = vcmask (!%p2488_p12), 257024  }
  0x1c   : > { %s2487_s16 = sshll.u32 %s490_s15, 1  ;;  %v512_v1 = vld [vmem:[%s4133_s4] sm:$0xf] (!%p2488_p12)  ;;  %511 = vst.msk [vmem:[#allocation2] sm:$0xf] (!%p2488_p12), %vm510_vm0, %v509_v0 }
  0x1d   : > { %s3219_s28 = scalar_lea.vmem %s4131_s2, %s2487_s16  ;;  %513 = vst.msk [vmem:[#allocation3] sm:$0xf] (!%p2488_p12), %vm510_vm0, %v512_v1 }
  0x22 PF: > { %v2909_v2 = vld [vmem:[%s4134_s5 + $0x4] ss:$8 sps:$4 sm:$0xff]   ;;  %v2911_v3 = vld [vmem:[%s4134_s5] ss:$8 sps:$4 sm:$0xff]   ;;  %v3084_v4 = vmov 0   ;;  %vm4145_vm1 = vcmask 261120   ;;  %v523_v9 = vlaneseq }
  0x23   : > { %589 = vmatprep.mubr.bf16.mxu0 %v3084_v4  ;;  %557 = vmatprep.subr.bf16.mxu0 %v2909_v2  ;;  %v2912_v5 = vld [vmem:[%s4134_s5 + $0x14] ss:$8 sps:$4 sm:$0xff]   ;;  %v2914_v6 = vld [vmem:[%s4134_s5 + $0x10] ss:$8 sps:$4 sm:$0xff]   ;;  %v514_v7 = vld [vmem:[#allocation2] sm:$0xf] }
  0x24   : > { %558 = vmatpush1.bf16.msra.mxu0 %v2911_v3  ;;  %v516_v8 = vpack.c.bf16 %v514_v7, %v514_v7  ;;  %v3246_v10 = vshrl.u32 %v523_v9, 7  ;;  %v3085_v11 = vmov 1966171168   ;;  %v521_v14 = vld [vmem:[%s4135_s6] sm:$0x3]  ;;  %v2673_v22 = vld [vmem:[%s4130_s1 + $0x10] sm:$0xff]  }
  0x25   : > { %559 = vmatprep.subr.bf16.mxu0 %v2912_v5  ;;  %v734_v12 = vunpack.c.l.s4 %v3085_v11  ;;  %v2545_v25 = vld [vmem:[%s4130_s1] sm:$0xff]   ;;  %v2674_v26 = vld [vmem:[%s4130_s1 + $0x18] sm:$0xff]   ;;  %v2554_v28 = vunpack.c.l.bf16 %v2673_v22  ;;  %v2672_v29 = vld [vmem:[%s4130_s1 + $0x8] sm:$0xff]   ;;  %v2555_v31 = vunpack.c.h.bf16 %v2673_v22  ;;  %vm1244_vm2 = vcmask 130112   ;;  %s4146_s19 = smov 32   ;;  %s3089_s23 = smov 96  }
  0x26   : > { %v3249_v13 = vsub.s32 0, %v3246_v10  ;;  %v2546_v30 = vunpack.c.l.bf16 %v2545_v25  ;;  %v2547_v32 = vunpack.c.h.bf16 %v2545_v25  ;;  %v2558_v34 = vunpack.c.l.bf16 %v2674_v26  ;;  %v3284_v38 = vld [vmem:[%s4136_s7] ss:$0 sm:$0xff]  ;;  %v3311_v62 = vld [vmem:[%s4130_s1 + $0x88] sm:$0xff]   ;;  %s3090_s24 = smov 64   ;;  %s2541_s14 = sshll.u32 %s3074_s20, 6 }
  0x27   : > { %v735_v15 = vunpack.c.0.s8 %v734_v12  ;;  %v2550_v35 = vunpack.c.l.bf16 %v2672_v29  ;;  %v2675_v42 = vld [vmem:[%s4130_s1 + $0x20] sm:$0xff]   ;;  %v2559_v45 = vunpack.c.h.bf16 %v2674_v26  ;;  %v2551_v46 = vunpack.c.h.bf16 %v2672_v29  ;;  %v2676_v12 = vld [vmem:[%s4130_s1 + $0x28] sm:$0xff]   ;;  %s2312_s16 = sshll.u32 %s3223_s25, 4  ;;  %s2284_s18 = scalar_lea.sflag [#allocation7], %s3210_s12  ;;  %s4046_s16 = int_to_ptr.vmem [resolvable:$true] %s2312_s16 }
  0x28   : > { %560 = vmatpush1.bf16.msra.mxu0 %v2914_v6  ;;  %v526_v16 = vrot.slane %v521_v14, %v3249_v13  ;;  %v3296_v47 = vld [vmem:[%s4130_s1 + $0x80] sm:$0xff]   ;;  %v2562_v53 = vunpack.c.l.bf16 %v2675_v42  ;;  %v2563_v4 = vunpack.c.h.bf16 %v2675_v42  ;;  %v2614_v5 = vunpack.c.l.bf16 %v3311_v62  ;;  %v2681_v14 = vld [vmem:[%s4130_s1 + $0x50] sm:$0xff]  }
  0x29   : > { %v3256_v17 = vsub.s32 %v735_v15, %v3246_v10  ;;  %v2610_v57 = vunpack.c.l.bf16 %v3296_v47  ;;  %vm1251_vm3 = vcmask 195712   ;;  %vm1258_vm4 = vcmask 261312  }
  0x2a   : > { %vm1265_vm5 = vcmask 326912   ;;  %vm1272_vm6 = vcmask 392512   ;;  %vm1279_vm7 = vcmask 458112   ;;  %vm1286_vm8 = vcmask 523712  }
  0x2b   : > { %2493 = vmatmul.mubr.msk.bf16.vlgmr.msra.gmra.mrb[0].mxu0 %vm4145_vm1, %v516_v8  ;;  %vm1293_vm9 = vcmask 589312   ;;  %vm1300_vm10 = vcmask 654912   ;;  %vm1307_vm11 = vcmask 720512   ;;  %vm1314_vm12 = vcmask 786112  }
  0x2c   : > { %vm1321_vm13 = vcmask 851712   ;;  %vm1328_vm14 = vcmask 917312   ;;  %vm1335_vm15 = vcmask 982912   ;;  %vm1342_vm0 = vcmask 1048512  }
  0xfe   : > { %v591_v18 = vpop.f32.mrb[0].mxu0 }
  0xff   : > { %v3258_v19 = vadd.f32 %v591_v18, %v526_v16  ;;  %v3260_v20 = vpop.f32.mrb[1].mxu0 }
 0x100   : > { %v595_v21 = vpop.f32.mrb[2].mxu0 }
 0x101   : > { %v739_v23 = vrot.slane %v3258_v19, %v3256_v17  ;;  %v596_v24 = vpop.f32.mrb[3].mxu0 }
 0x102   : > { %v2586_v24 = vunpack.c.l.bf16 %v2681_v14 }
 0x103   : > { %v747_v27 = vrot.slane %v739_v23, %v3256_v17  ;;  %v740_v54 = vcombine.high %v739_v23, %v739_v23  ;;  %v2566_v23 = vunpack.c.l.bf16 %v2676_v12 }
 0x105   : > { %v3278_v33 = vrot.slane %v747_v27, %v3249_v13  ;;  %v755_v37 = vcombine.high %v747_v27, %v747_v27  ;;  %v3317_v3 = vrot.slane %v740_v54, %v3256_v17 }
 0x107   : > { %v781_v36 = vadd.f32 %v2554_v28, %v3278_v33  ;;  %v777_v39 = vadd.f32 %v2546_v30, %v3278_v33  ;;  %v782_v40 = vadd.f32 %v2555_v31, %v3278_v33  ;;  %v778_v41 = vadd.f32 %v2547_v32, %v3278_v33 }
 0x108   : > { %v783_v44 = vadd.f32 %v2558_v34, %v3278_v33  ;;  %v779_v51 = vadd.f32 %v2550_v35, %v3278_v33  ;;  %v3301_v55 = vrot.slane %v755_v37, %v3249_v13  ;;  %v784_v61 = vadd.f32 %v2559_v45, %v3278_v33 }
 0x109   : > { %v845_v43 = vmax.f32 %v781_v36, 0.0  ;;  %v841_v48 = vmax.f32 %v777_v39, 0.0  ;;  %v846_v49 = vmax.f32 %v782_v40, 0.0  ;;  %v842_v50 = vmax.f32 %v778_v41, 0.0  ;;  %v2677_v41 = vld [vmem:[%s4130_s1 + $0x30] sm:$0xff]  }
 0x10a   : > { %v847_v60 = vmax.f32 %v783_v44, 0.0  ;;  %v843_v1 = vmax.f32 %v779_v51, 0.0  ;;  %v780_v2 = vadd.f32 %v2551_v46, %v3278_v33  ;;  %v848_v8 = vmax.f32 %v784_v61, 0.0  ;;  %v2682_v46 = vld [vmem:[%s4130_s1 + $0x58] sm:$0xff]  }
 0x10b   : > { %v916_v52 = vmul.f32 %v3284_v38, %v845_v43  ;;  %v912_v56 = vmul.f32 %v3284_v38, %v841_v48  ;;  %v917_v59 = vmul.f32 %v3284_v38, %v846_v49  ;;  %v913_v0 = vmul.f32 %v3284_v38, %v842_v50  ;;  %v3363_v61 = vld [vmem:[%s4130_s1 + $0x38] sm:$0xff]  }
 0x10c   : > { %v918_v7 = vmul.f32 %v3284_v38, %v847_v60  ;;  %v785_v11 = vadd.f32 %v2562_v53, %v3278_v33  ;;  %v914_v16 = vmul.f32 %v3284_v38, %v843_v1  ;;  %v844_v18 = vmax.f32 %v780_v2, 0.0 }
 0x10d   : > { %v988_v58 = vsel %vm4145_vm1, %v916_v52, 0.0  ;;  %v976_v63 = vsel %vm4145_vm1, %v912_v56, 0.0  ;;  %v991_v6 = vsel %vm4145_vm1, %v917_v59, 0.0  ;;  %v979_v15 = vsel %vm4145_vm1, %v913_v0, 0.0 }
 0x10e   : > { %989 = vadd.xlane.f32.xlu1 %v988_v58  ;;  %977 = vadd.xlane.f32.xlu0 %v976_v63  ;;  %v809_v21 = vadd.f32 %v2610_v57, %v3301_v55  ;;  %v3334_v22 = vrot.slane %v3317_v3, %v3249_v13  ;;  %v994_v25 = vsel %vm4145_vm1, %v918_v7, 0.0  ;;  %v919_v26 = vmul.f32 %v3284_v38, %v848_v8 }
 0x10f   : > { %v849_v27 = vmax.f32 %v785_v11, 0.0  ;;  %v786_v28 = vadd.f32 %v2563_v4, %v3278_v33  ;;  %v982_v29 = vsel %vm4145_vm1, %v914_v16, 0.0  ;;  %v915_v30 = vmul.f32 %v3284_v38, %v844_v18  ;;  %v2683_v4 = vld [vmem:[%s4130_s1 + $0x60] sm:$0xff]  }
 0x110   : > { %v873_v31 = vmax.f32 %v809_v21, 0.0  ;;  %v811_v32 = vadd.f32 %v2614_v5, %v3301_v55  ;;  %v2567_v34 = vunpack.c.h.bf16 %v2676_v12  ;;  %v2587_v35 = vunpack.c.h.bf16 %v2681_v14 }
 0x111   : > { %v997_v36 = vsel %vm4145_vm1, %v919_v26, 0.0  ;;  %v920_v37 = vmul.f32 %v3284_v38, %v849_v27  ;;  %v850_v39 = vmax.f32 %v786_v28, 0.0  ;;  %v787_v40 = vadd.f32 %v2566_v23, %v3278_v33  ;;  %v2679_v23 = vld [vmem:[%s4130_s1 + $0x40] sm:$0xff]  }
 0x112   : > { %992 = vadd.xlane.f32.xlu1 %v991_v6  ;;  %980 = vadd.xlane.f32.xlu0 %v979_v15  ;;  %v985_v42 = vsel %vm4145_vm1, %v915_v30, 0.0  ;;  %v944_v43 = vmul.f32 %v3284_v38, %v873_v31  ;;  %v875_v44 = vmax.f32 %v811_v32, 0.0  ;;  %v797_v45 = vadd.f32 %v2586_v24, %v3334_v22 }
 0x113   : > { %v788_v48 = vadd.f32 %v2567_v34, %v3278_v33  ;;  %v2570_v49 = vunpack.c.l.bf16 %v2677_v41  ;;  %v1000_v50 = vsel %vm4145_vm1, %v920_v37, 0.0  ;;  %v921_v51 = vmul.f32 %v3284_v38, %v850_v39  ;;  %v3396_v37 = vld [vmem:[%s4130_s1 + $0x98] sm:$0xff]   ;;  %v2691_v39 = vld [vmem:[%s4130_s1 + $0xa0] sm:$0xff]  }
 0x114   : > { %v851_v52 = vmax.f32 %v787_v40, 0.0  ;;  %v2590_v53 = vunpack.c.l.bf16 %v2682_v46  ;;  %v1072_v54 = vsel %vm4145_vm1, %v944_v43, 0.0  ;;  %v946_v56 = vmul.f32 %v3284_v38, %v875_v44 }
 0x115   : > { %v861_v57 = vmax.f32 %v797_v45, 0.0  ;;  %v798_v58 = vadd.f32 %v2587_v35, %v3334_v22  ;;  %v852_v59 = vmax.f32 %v788_v48, 0.0  ;;  %v2571_v60 = vunpack.c.h.bf16 %v2677_v41  ;;  %v3409_v48 = vld [vmem:[%s4130_s1 + $0x48] sm:$0xff]  }
 0x116   : > { %995 = vadd.xlane.f32.xlu1 %v994_v25  ;;  %983 = vadd.xlane.f32.xlu0 %v982_v29  ;;  %v1003_v63 = vsel %vm4145_vm1, %v921_v51, 0.0  ;;  %v922_v0 = vmul.f32 %v3284_v38, %v851_v52  ;;  %v789_v1 = vadd.f32 %v2570_v49, %v3278_v33  ;;  %v2591_v2 = vunpack.c.h.bf16 %v2682_v46  ;;  %v3388_v29 = vld [vmem:[%s4130_s1 + $0x68] sm:$0xff]   ;;  %v3414_v49 = vld [vmem:[%s4130_s1 + $0x70] sm:$0xff]  }
 0x117   : > { %v1078_v5 = vsel %vm4145_vm1, %v946_v56, 0.0  ;;  %v932_v6 = vmul.f32 %v3284_v38, %v861_v57  ;;  %v862_v7 = vmax.f32 %v798_v58, 0.0  ;;  %v799_v8 = vadd.f32 %v2590_v53, %v3334_v22 }
 0x118   : > { %v2574_v11 = vunpack.c.l.bf16 %v3363_v61  ;;  %v923_v12 = vmul.f32 %v3284_v38, %v852_v59  ;;  %v2594_v14 = vunpack.c.l.bf16 %v2683_v4  ;;  %v1006_v15 = vsel %vm4145_vm1, %v922_v0, 0.0 }
 0x119   : > { %v853_v16 = vmax.f32 %v789_v1, 0.0  ;;  %v790_v18 = vadd.f32 %v2571_v60, %v3278_v33  ;;  %v800_v21 = vadd.f32 %v2591_v2, %v3334_v22  ;;  %v1036_v24 = vsel %vm4145_vm1, %v932_v6, 0.0 }
 0x11a   : > { %998 = vadd.xlane.f32.xlu1 %v997_v36  ;;  %986 = vadd.xlane.f32.xlu0 %v985_v42  ;;  %v933_v25 = vmul.f32 %v3284_v38, %v862_v7  ;;  %v863_v26 = vmax.f32 %v799_v8, 0.0  ;;  %v791_v27 = vadd.f32 %v2574_v11, %v3278_v33  ;;  %v2595_v28 = vunpack.c.h.bf16 %v2683_v4 }
 0x11b   : > { %v801_v30 = vadd.f32 %v2594_v14, %v3334_v22  ;;  %v2578_v31 = vunpack.c.l.bf16 %v2679_v23  ;;  %v1009_v32 = vsel %vm4145_vm1, %v923_v12, 0.0  ;;  %v924_v34 = vmul.f32 %v3284_v38, %v853_v16  ;;  %v2693_v14 = vld [vmem:[%s4130_s1 + $0xb0] sm:$0xff]  }
 0x11c   : > { %v854_v35 = vmax.f32 %v790_v18, 0.0  ;;  %v864_v36 = vmax.f32 %v800_v21, 0.0  ;;  %v1039_v40 = vsel %vm4145_vm1, %v933_v25, 0.0  ;;  %v934_v41 = vmul.f32 %v3284_v38, %v863_v26 }
 0x11d   : > { %v2598_v42 = vunpack.c.l.bf16 %v3388_v29  ;;  %v855_v43 = vmax.f32 %v791_v27, 0.0  ;;  %v802_v44 = vadd.f32 %v2595_v28, %v3334_v22  ;;  %v2579_v45 = vunpack.c.h.bf16 %v2679_v23 }
 0x11e   : > { %1001 = vadd.xlane.f32.xlu1 %v1000_v50  ;;  %1073 = vadd.xlane.f32.xlu0 %v1072_v54  ;;  %v2599_v46 = vunpack.c.h.bf16 %v3388_v29  ;;  %v2692_v50 = vld [vmem:[%s4130_s1 + $0xa8] sm:$0xff]   ;;  %v865_v51 = vmax.f32 %v801_v30, 0.0  ;;  %v793_v52 = vadd.f32 %v2578_v31, %v3334_v22  ;;  %v2623_v53 = vunpack.c.h.bf16 %v3396_v37 }
 0x11f   : > { %v2626_v54 = vunpack.c.l.bf16 %v2691_v39  ;;  %v1012_v56 = vsel %vm4145_vm1, %v924_v34, 0.0  ;;  %v925_v57 = vmul.f32 %v3284_v38, %v854_v35  ;;  %v935_v58 = vmul.f32 %v3284_v38, %v864_v36 }
 0x120   : > { %v2627_v59 = vunpack.c.h.bf16 %v2691_v39  ;;  %v1042_v60 = vsel %vm4145_vm1, %v934_v41, 0.0  ;;  %v2602_v0 = vunpack.c.l.bf16 %v3414_v49  ;;  %v2630_v1 = vunpack.c.l.bf16 %v2692_v50 }
 0x121   : > { %v926_v2 = vmul.f32 %v3284_v38, %v855_v43  ;;  %v866_v4 = vmax.f32 %v802_v44, 0.0  ;;  %v2631_v6 = vunpack.c.h.bf16 %v2692_v50  ;;  %v936_v7 = vmul.f32 %v3284_v38, %v865_v51 }
 0x122   : > { %1004 = vadd.xlane.f32.xlu1 %v1003_v63  ;;  %1079 = vadd.xlane.f32.xlu0 %v1078_v5  ;;  %v2582_v63 = vunpack.c.l.bf16 %v3409_v48  ;;  %v2611_v5 = vunpack.c.h.bf16 %v3296_v47  ;;  %v857_v8 = vmax.f32 %v793_v52, 0.0  ;;  %v816_v11 = vadd.f32 %v2623_v53, %v3301_v55 }
 0x123   : > { %v817_v12 = vadd.f32 %v2626_v54, %v3301_v55  ;;  %v1045_v16 = vsel %vm4145_vm1, %v935_v58, 0.0  ;;  %v794_v18 = vadd.f32 %v2579_v45, %v3334_v22  ;;  %v818_v47 = vadd.f32 %v2627_v59, %v3301_v55 }
 0x124   : > { %v803_v21 = vadd.f32 %v2598_v42, %v3334_v22  ;;  %v880_v23 = vmax.f32 %v816_v11, 0.0  ;;  %v819_v25 = vadd.f32 %v2630_v1, %v3301_v55  ;;  %v937_v26 = vmul.f32 %v3284_v38, %v866_v4  ;;  %v2686_v4 = vld [vmem:[%s4130_s1 + $0x78] sm:$0xff]   ;;  %v2689_v11 = vld [vmem:[%s4130_s1 + $0x90] sm:$0xff]  }
 0x125   : > { %v882_v27 = vmax.f32 %v818_v47, 0.0  ;;  %v2634_v28 = vunpack.c.l.bf16 %v2693_v14  ;;  %v2635_v29 = vunpack.c.h.bf16 %v2693_v14  ;;  %v928_v30 = vmul.f32 %v3284_v38, %v857_v8 }
 0x126   : > { %1007 = vadd.xlane.f32.xlu1 %v1006_v15  ;;  %1037 = vadd.xlane.f32.xlu0 %v1036_v24  ;;  %v1015_v15 = vsel %vm4145_vm1, %v925_v57, 0.0  ;;  %v881_v24 = vmax.f32 %v817_v12, 0.0  ;;  %v3444_v31 = vmul.f32 %v3284_v38, %v880_v23  ;;  %v883_v34 = vmax.f32 %v819_v25, 0.0  ;;  %v2694_v57 = vld [vmem:[%s4130_s1 + $0xb8] sm:$0xff]  }
 0x127   : > { %v1018_v35 = vsel %vm4145_vm1, %v926_v2, 0.0  ;;  %v858_v36 = vmax.f32 %v794_v18, 0.0  ;;  %v795_v39 = vadd.f32 %v2582_v63, %v3334_v22  ;;  %v1048_v41 = vsel %vm4145_vm1, %v936_v7, 0.0 }
 0x128   : > { %v867_v42 = vmax.f32 %v803_v21, 0.0  ;;  %v804_v43 = vadd.f32 %v2599_v46, %v3334_v22  ;;  %v3457_v44 = vmul.f32 %v3284_v38, %v883_v34  ;;  %v1051_v45 = vsel %vm4145_vm1, %v937_v26, 0.0  ;;  %v3502_v34 = vld [vmem:[%s4130_s1 + $0xc0] sm:$0xff]  }
 0x129   : > { %v2603_v50 = vunpack.c.h.bf16 %v3414_v49  ;;  %v2583_v51 = vunpack.c.h.bf16 %v3409_v48  ;;  %v2615_v52 = vunpack.c.h.bf16 %v3311_v62  ;;  %v1024_v53 = vsel %vm4145_vm1, %v928_v30, 0.0 }
 0x12a   : > { %1010 = vadd.xlane.f32.xlu1 %v1009_v32  ;;  %1040 = vadd.xlane.f32.xlu0 %v1039_v40  ;;  %v3447_v32 = vmul.f32 %v3284_v38, %v881_v24  ;;  %v3452_v40 = vmul.f32 %v3284_v38, %v882_v27  ;;  %v810_v54 = vadd.f32 %v2611_v5, %v3301_v55  ;;  %v859_v59 = vmax.f32 %v795_v39, 0.0 }
 0x12b   : > { %v821_v46 = vadd.f32 %v2634_v28, %v3301_v55  ;;  %v929_v58 = vmul.f32 %v3284_v38, %v858_v36  ;;  %v805_v49 = vadd.f32 %v2602_v0, %v3334_v22  ;;  %v822_v48 = vadd.f32 %v2635_v29, %v3301_v55 }
 0x12c   : > { %v938_v62 = vmul.f32 %v3284_v38, %v867_v42  ;;  %v806_v2 = vadd.f32 %v2603_v50, %v3334_v22  ;;  %v2638_v7 = vunpack.c.l.bf16 %v2694_v57  ;;  %v874_v0 = vmax.f32 %v810_v54, 0.0 }
 0x12d   : > { %v885_v1 = vmax.f32 %v821_v46, 0.0  ;;  %v886_v5 = vmax.f32 %v822_v48, 0.0  ;;  %v796_v8 = vadd.f32 %v2583_v51, %v3334_v22  ;;  %v2639_v18 = vunpack.c.h.bf16 %v2694_v57 }
 0x12e   : > { %1013 = vadd.xlane.f32.xlu1 %v1012_v56  ;;  %1043 = vadd.xlane.f32.xlu0 %v1042_v60  ;;  %v820_v56 = vadd.f32 %v2631_v6, %v3301_v55  ;;  %v868_v60 = vmax.f32 %v804_v43, 0.0  ;;  %v2575_v6 = vunpack.c.h.bf16 %v3363_v61  ;;  %v1054_v47 = vsel %vm4145_vm1, %v938_v62, 0.0 }
 0x12f   : > { %v3487_v14 = vmul.f32 %v3284_v38, %v885_v1  ;;  %v3492_v61 = vmul.f32 %v3284_v38, %v886_v5  ;;  %v869_v23 = vmax.f32 %v805_v49, 0.0  ;;  %v2606_v24 = vunpack.c.l.bf16 %v2686_v4  ;;  %v2696_v49 = vld [vmem:[%s4130_s1 + $0xc8] sm:$0xff]  }
 0x130   : > { %v884_v63 = vmax.f32 %v820_v56, 0.0  ;;  %v939_v21 = vmul.f32 %v3284_v38, %v868_v60  ;;  %v756_v25 = vcombine.high %v3317_v3, %v3317_v3  ;;  %v2607_v26 = vunpack.c.h.bf16 %v2686_v4 }
 0x131   : > { %v2618_v27 = vunpack.c.l.bf16 %v2689_v11  ;;  %v945_v28 = vmul.f32 %v3284_v38, %v874_v0  ;;  %v870_v29 = vmax.f32 %v806_v2, 0.0  ;;  %v860_v30 = vmax.f32 %v796_v8, 0.0 }
 0x132   : > { %1016 = vadd.xlane.f32.xlu1 %v1015_v15  ;;  %1046 = vadd.xlane.f32.xlu0 %v1045_v16  ;;  %v3484_v12 = vmul.f32 %v3284_v38, %v884_v63  ;;  %v1027_v15 = vsel %vm4145_vm1, %v929_v58, 0.0  ;;  %v930_v16 = vmul.f32 %v3284_v38, %v859_v59  ;;  %v812_v39 = vadd.f32 %v2615_v52, %v3301_v55 }
 0x133   : > { %v823_v3 = vadd.f32 %v2638_v7, %v3301_v55  ;;  %v1057_v42 = vsel %vm4145_vm1, %v939_v21, 0.0  ;;  %v940_v43 = vmul.f32 %v3284_v38, %v869_v23  ;;  %v2619_v51 = vunpack.c.h.bf16 %v2689_v11 }
 0x134   : > { %v1030_v36 = vsel %vm4145_vm1, %v930_v16, 0.0  ;;  %v3514_v52 = vrot.slane %v756_v25, %v3249_v13  ;;  %v1075_v56 = vsel %vm4145_vm1, %v945_v28, 0.0  ;;  %v931_v46 = vmul.f32 %v3284_v38, %v860_v30  ;;  %v2697_v28 = vld [vmem:[%s4130_s1 + $0xd0] sm:$0xff]  }
 0x135   : > { %v876_v58 = vmax.f32 %v812_v39, 0.0  ;;  %v813_v59 = vadd.f32 %v2618_v27, %v3301_v55  ;;  %v1060_v60 = vsel %vm4145_vm1, %v940_v43, 0.0  ;;  %v941_v63 = vmul.f32 %v3284_v38, %v870_v29 }
 0x136   : > { %1019 = vadd.xlane.f32.xlu1 %v1018_v35  ;;  %1049 = vadd.xlane.f32.xlu0 %v1048_v41  ;;  %v792_v35 = vadd.f32 %v2575_v6, %v3278_v33  ;;  %v824_v41 = vadd.f32 %v2639_v18, %v3301_v55  ;;  %v2643_v33 = vunpack.c.h.bf16 %v3502_v34  ;;  %v808_v2 = vadd.f32 %v2607_v26, %v3334_v22 }
 0x137   : > { %v2622_v4 = vunpack.c.l.bf16 %v3396_v37  ;;  %v2646_v5 = vunpack.c.l.bf16 %v2696_v49  ;;  %v1033_v6 = vsel %vm4145_vm1, %v931_v46, 0.0  ;;  %v947_v7 = vmul.f32 %v3284_v38, %v876_v58 }
 0x138   : > { %v856_v50 = vmax.f32 %v792_v35, 0.0  ;;  %v888_v54 = vmax.f32 %v824_v41, 0.0  ;;  %v877_v0 = vmax.f32 %v813_v59, 0.0  ;;  %v814_v8 = vadd.f32 %v2619_v51, %v3301_v55 }
 0x139   : > { %v1063_v11 = vsel %vm4145_vm1, %v941_v63, 0.0  ;;  %v872_v16 = vmax.f32 %v808_v2, 0.0  ;;  %v826_v18 = vadd.f32 %v2643_v33, %v3514_v52  ;;  %v1081_v37 = vsel %vm4145_vm1, %v947_v7, 0.0  ;;  %v2699_v7 = vld [vmem:[%s4130_s1 + $0xe0] sm:$0xff]  }
 0x13a   : > { %1025 = vadd.xlane.f32.xlu1 %v1024_v53  ;;  %1052 = vadd.xlane.f32.xlu0 %v1051_v45  ;;  %v807_v45 = vadd.f32 %v2606_v24, %v3334_v22  ;;  %v887_v53 = vmax.f32 %v823_v3, 0.0  ;;  %v3519_v57 = vmul.f32 %v3284_v38, %v856_v50  ;;  %v3529_v62 = vmul.f32 %v3284_v38, %v888_v54  ;;  %v2698_v54 = vld [vmem:[%s4130_s1 + $0xd8] sm:$0xff]  }
 0x13b   : > { %v2647_v22 = vunpack.c.h.bf16 %v2696_v49  ;;  %v878_v21 = vmax.f32 %v814_v8, 0.0  ;;  %v815_v23 = vadd.f32 %v2622_v4, %v3301_v55  ;;  %v943_v25 = vmul.f32 %v3284_v38, %v872_v16 }
 0x13c   : > { %v3526_v48 = vmul.f32 %v3284_v38, %v887_v53  ;;  %v871_v1 = vmax.f32 %v807_v45, 0.0  ;;  %v890_v26 = vmax.f32 %v826_v18, 0.0  ;;  %v827_v27 = vadd.f32 %v2646_v5, %v3514_v52 }
 0x13d   : > { %v949_v30 = vmul.f32 %v3284_v38, %v878_v21  ;;  %v879_v35 = vmax.f32 %v815_v23, 0.0  ;;  %v1069_v55 = vsel %vm4145_vm1, %v943_v25, 0.0  ;;  %v828_v41 = vadd.f32 %v2647_v22, %v3514_v52  ;;  %v2700_v23 = vld [vmem:[%s4130_s1 + $0xe8] sm:$0xff]  }
 0x13e   : > { %1028 = vadd.xlane.f32.xlu1 %v1027_v15  ;;  %1055 = vadd.xlane.f32.xlu0 %v1054_v47  ;;  %v942_v15 = vmul.f32 %v3284_v38, %v871_v1  ;;  %v948_v47 = vmul.f32 %v3284_v38, %v877_v0  ;;  %v961_v39 = vmul.f32 %v3284_v38, %v890_v26  ;;  %v891_v3 = vmax.f32 %v827_v27, 0.0 }
 0x13f   : > { %v950_v43 = vmul.f32 %v3284_v38, %v879_v35  ;;  %v2651_v45 = vunpack.c.h.bf16 %v2697_v28  ;;  %v892_v33 = vmax.f32 %v828_v41, 0.0  ;;  %v2654_v46 = vunpack.c.l.bf16 %v2698_v54 }
 0x140   : > { %v1066_v24 = vsel %vm4145_vm1, %v942_v15, 0.0  ;;  %v1084_v29 = vsel %vm4145_vm1, %v948_v47, 0.0  ;;  %v1123_v50 = vsel %vm4145_vm1, %v961_v39, 0.0  ;;  %v962_v51 = vmul.f32 %v3284_v38, %v891_v3  ;;  %v2701_v3 = vld [vmem:[%s4130_s1 + $0xf0] sm:$0xff]  }
 0x141   : > { %v963_v59 = vmul.f32 %v3284_v38, %v892_v33  ;;  %v1093_v63 = vsel %vm4145_vm1, %v3444_v31, 0.0  ;;  %v2655_v1 = vunpack.c.h.bf16 %v2698_v54  ;;  %v1096_v0 = vsel %vm4145_vm1, %v3447_v32, 0.0 }
 0x142   : > { %1031 = vadd.xlane.f32.xlu1 %v1030_v36  ;;  %1058 = vadd.xlane.f32.xlu0 %v1057_v42  ;;  %v2650_v36 = vunpack.c.l.bf16 %v2697_v28  ;;  %v1087_v42 = vsel %vm4145_vm1, %v949_v30, 0.0  ;;  %v1126_v58 = vsel %vm4145_vm1, %v962_v51, 0.0  ;;  %v2658_v8 = vunpack.c.l.bf16 %v2699_v7 }
 0x143   : > { %v1129_v2 = vsel %vm4145_vm1, %v963_v59, 0.0  ;;  %v832_v16 = vadd.f32 %v2655_v1, %v3514_v52  ;;  %v1099_v18 = vsel %vm4145_vm1, %v3452_v40, 0.0  ;;  %v2659_v22 = vunpack.c.h.bf16 %v2699_v7  ;;  %v2702_v59 = vld [vmem:[%s4130_s1 + $0xf8] sm:$0xff]  }
 0x144   : > { %v829_v53 = vadd.f32 %v2650_v36, %v3514_v52  ;;  %v833_v21 = vadd.f32 %v2658_v8, %v3514_v52  ;;  %v2662_v25 = vunpack.c.l.bf16 %v2700_v23  ;;  %v2642_v40 = vunpack.c.l.bf16 %v3502_v34 }
 0x145   : > { %v896_v32 = vmax.f32 %v832_v16, 0.0  ;;  %v1105_v30 = vsel %vm4145_vm1, %v3484_v12, 0.0  ;;  %v2663_v36 = vunpack.c.h.bf16 %v2700_v23  ;;  %v1108_v41 = vsel %vm4145_vm1, %v3487_v14, 0.0 }
 0x146   : > { %1076 = vadd.xlane.f32.xlu1 %v1075_v56  ;;  %1061 = vadd.xlane.f32.xlu0 %v1060_v60  ;;  %v1090_v56 = vsel %vm4145_vm1, %v950_v43, 0.0  ;;  %v893_v49 = vmax.f32 %v829_v53, 0.0  ;;  %v830_v60 = vadd.f32 %v2651_v45, %v3514_v52  ;;  %v897_v28 = vmax.f32 %v833_v21, 0.0 }
 0x147   : > { %v967_v27 = vmul.f32 %v3284_v38, %v896_v32  ;;  %v825_v35 = vadd.f32 %v2642_v40, %v3514_v52  ;;  %v835_v39 = vadd.f32 %v2662_v25, %v3514_v52  ;;  %v836_v51 = vadd.f32 %v2663_v36, %v3514_v52 }
 0x148   : > { %v964_v4 = vmul.f32 %v3284_v38, %v893_v49  ;;  %v894_v5 = vmax.f32 %v830_v60, 0.0  ;;  %v968_v34 = vmul.f32 %v3284_v38, %v897_v28  ;;  %v1111_v33 = vsel %vm4145_vm1, %v3492_v61, 0.0 }
 0x149   : > { %v889_v12 = vmax.f32 %v825_v35, 0.0  ;;  %v2667_v54 = vunpack.c.h.bf16 %v2701_v3  ;;  %v2670_v60 = vunpack.c.l.bf16 %v2702_v59  ;;  %v2671_v61 = vunpack.c.h.bf16 %v2702_v59 }
 0x14a   : > { %1034 = vadd.xlane.f32.xlu1 %v1033_v6  ;;  %1064 = vadd.xlane.f32.xlu0 %v1063_v11  ;;  %v831_v6 = vadd.f32 %v2654_v46, %v3514_v52  ;;  %v1132_v31 = vsel %vm4145_vm1, %v964_v4, 0.0  ;;  %v965_v11 = vmul.f32 %v3284_v38, %v894_v5  ;;  %v1144_v43 = vsel %vm4145_vm1, %v968_v34, 0.0 }
 0x14b   : > { %v960_v53 = vmul.f32 %v3284_v38, %v889_v12  ;;  %v900_v46 = vmax.f32 %v836_v51, 0.0  ;;  %v838_v4 = vadd.f32 %v2667_v54, %v3514_v52  ;;  %v1021_v5 = vsel %vm4145_vm1, %v3519_v57, 0.0 }
 0x14c   : > { %v895_v15 = vmax.f32 %v831_v6, 0.0  ;;  %v840_v6 = vadd.f32 %v2671_v61, %v3514_v52  ;;  %v3639_v21 = vand.u32 127, %v523_v9 }
 0x14d   : > { %v1120_v49 = vsel %vm4145_vm1, %v960_v53, 0.0  ;;  %v971_v1 = vmul.f32 %v3284_v38, %v900_v46  ;;  %v902_v8 = vmax.f32 %v838_v4, 0.0 }
 0x14e   : > { %1082 = vadd.xlane.f32.xlu1 %v1081_v37  ;;  %1067 = vadd.xlane.f32.xlu0 %v1066_v24  ;;  %v1135_v37 = vsel %vm4145_vm1, %v965_v11, 0.0  ;;  %v966_v47 = vmul.f32 %v3284_v38, %v895_v15  ;;  %v1102_v24 = vsel %vm4145_vm1, %v3457_v44, 0.0  ;;  %v1141_v44 = vsel %vm4145_vm1, %v967_v27, 0.0 }
 0x14f   : > { %v1153_v7 = vsel %vm4145_vm1, %v971_v1, 0.0  ;;  %v1114_v11 = vsel %vm4145_vm1, %v3526_v48, 0.0  ;;  %v904_v15 = vmax.f32 %v840_v6, 0.0  ;;  %v973_v57 = vmul.f32 %v3284_v38, %v902_v8 }
 0x150   : > { %v1138_v26 = vsel %vm4145_vm1, %v966_v47, 0.0  ;;  %v1239_v23 = vadd.s32 4294967288, %v3639_v21  ;;  %v3644_v25 = vsub.s32 %v3639_v21, %v3246_v10  ;;  %v1246_v40 = vadd.s32 4294967280, %v3639_v21 }
 0x151   : > { %v1159_v47 = vsel %vm4145_vm1, %v973_v57, 0.0  ;;  %v1260_v35 = vadd.s32 4294967264, %v3639_v21  ;;  %v1267_v36 = vadd.s32 4294967256, %v3639_v21  ;;  %v1281_v12 = vadd.s32 4294967240, %v3639_v21 }
 0x152   : > { %1085 = vadd.xlane.f32.xlu1 %v1084_v29  ;;  %1070 = vadd.xlane.f32.xlu0 %v1069_v55  ;;  %v834_v29 = vadd.f32 %v2659_v22, %v3514_v52  ;;  %v1117_v22 = vsel %vm4145_vm1, %v3529_v62, 0.0  ;;  %v1302_v61 = vadd.s32 4294967216, %v3639_v21 }
 0x154   : > { %v898_v55 = vmax.f32 %v834_v29, 0.0  ;;  %v3653_v29 = vsub.s32 %v1246_v40, %v3246_v10  ;;  %v3703_v57 = vsub.s32 %v1302_v61, %v3246_v10 }
 0x156   : > { %1088 = vadd.xlane.f32.xlu1 %v1087_v42  ;;  %1124 = vadd.xlane.f32.xlu0 %v1123_v50  ;;  %v2666_v42 = vunpack.c.l.bf16 %v2701_v3  ;;  %v969_v45 = vmul.f32 %v3284_v38, %v898_v55  ;;  %v899_v50 = vmax.f32 %v835_v39, 0.0  ;;  %v1274_v55 = vadd.s32 4294967248, %v3639_v21 }
 0x157   : > { %v1288_v3 = vadd.s32 4294967232, %v3639_v21 }
 0x158   : > { %v1147_v14 = vsel %vm4145_vm1, %v969_v45, 0.0  ;;  %v3670_v45 = vsub.s32 %v1267_v36, %v3246_v10 }
 0x159   : > { %v3677_v54 = vsub.s32 %v1288_v3, %v3246_v10 }
 0x15a   : > { %1091 = vadd.xlane.f32.xlu1 %v1090_v56  ;;  %1127 = vadd.xlane.f32.xlu0 %v1126_v58  ;;  %v970_v56 = vmul.f32 %v3284_v38, %v899_v50  ;;  %v837_v58 = vadd.f32 %v2666_v42, %v3514_v52 }
 0x15e   : > { %1094 = vadd.xlane.f32.xlu1 %v1093_v63  ;;  %1130 = vadd.xlane.f32.xlu0 %v1129_v2  ;;  %v1150_v63 = vsel %vm4145_vm1, %v970_v56, 0.0  ;;  %v901_v2 = vmax.f32 %v837_v58, 0.0  ;;  %v3681_v56 = vsub.s32 %v1281_v12, %v3246_v10 }
 0x162   : > { %1097 = vadd.xlane.f32.xlu1 %v1096_v0  ;;  %1133 = vadd.xlane.f32.xlu0 %v1132_v31  ;;  %v972_v0 = vmul.f32 %v3284_v38, %v901_v2  ;;  %v839_v31 = vadd.f32 %v2670_v60, %v3514_v52 }
 0x164   : > { %v1156_v16 = vsel %vm4145_vm1, %v972_v0, 0.0 }
 0x166   : > { %1100 = vadd.xlane.f32.xlu1 %v1099_v18  ;;  %1136 = vadd.xlane.f32.xlu0 %v1135_v37  ;;  %v903_v18 = vmax.f32 %v839_v31, 0.0  ;;  %v975_v37 = vmul.f32 %v3284_v38, %v904_v15 }
 0x168   : > { %v974_v52 = vmul.f32 %v3284_v38, %v903_v18  ;;  %v1165_v48 = vsel %vm4145_vm1, %v975_v37, 0.0  ;;  %v3647_v38 = vsub.s32 %v1239_v23, %v3246_v10  ;;  %v1309_v18 = vadd.s32 4294967208, %v3639_v21 }
 0x16a   : > { %1103 = vadd.xlane.f32.xlu1 %v1102_v24  ;;  %1139 = vadd.xlane.f32.xlu0 %v1138_v26  ;;  %v1162_v32 = vsel %vm4145_vm1, %v974_v52, 0.0  ;;  %vm1581_vm1 = vcmask 1041409  }
 0x16e   : > { %1106 = vadd.xlane.f32.xlu1 %v1105_v30  ;;  %1142 = vadd.xlane.f32.xlu0 %v1141_v44  ;;  %v1253_v30 = vadd.s32 4294967272, %v3639_v21 }
 0x170   : > { %v3664_v42 = vsub.s32 %v1253_v30, %v3246_v10 }
 0x172   : > { %1109 = vadd.xlane.f32.xlu1 %v1108_v41  ;;  %1145 = vadd.xlane.f32.xlu0 %v1144_v43  ;;  %v3667_v43 = vsub.s32 %v1260_v35, %v3246_v10 }
 0x176   : > { %1112 = vadd.xlane.f32.xlu1 %v1111_v33  ;;  %1148 = vadd.xlane.f32.xlu0 %v1147_v14  ;;  %v3674_v33 = vsub.s32 %v1274_v55, %v3246_v10  ;;  %v1295_v14 = vadd.s32 4294967224, %v3639_v21 }
 0x17a   : > { %1121 = vadd.xlane.f32.xlu1 %v1120_v49  ;;  %1151 = vadd.xlane.f32.xlu0 %v1150_v63 }
 0x17e   : > { %1022 = vadd.xlane.f32.xlu1 %v1021_v5  ;;  %1154 = vadd.xlane.f32.xlu0 %v1153_v7  ;;  %v3694_v5 = vsub.s32 %v1295_v14, %v3246_v10 }
 0x182   : > { %1115 = vadd.xlane.f32.xlu1 %v1114_v11  ;;  %1157 = vadd.xlane.f32.xlu0 %v1156_v16 }
 0x186   : > { %1118 = vadd.xlane.f32.xlu1 %v1117_v22  ;;  %1160 = vadd.xlane.f32.xlu0 %v1159_v47 }
 0x18a   : > { %1166 = vadd.xlane.f32.xlu1 %v1165_v48  ;;  %1163 = vadd.xlane.f32.xlu0 %v1162_v32  ;;  %v3709_v48 = vsub.s32 %v1309_v18, %v3246_v10  ;;  %v1316_v32 = vadd.s32 4294967200, %v3639_v21 }
 0x19b   : > { %v990_v62 = vpop.xlane.xlu1 %989  ;;  %v978_v24 = vpop.xlane.xlu0 %977 }
 0x19c   : > { %v1238_v28 = vrot.slane %v978_v24, %v3644_v25  ;;  %v1264_v58 = vrot.slane %v990_v62, %v3667_v43 }
 0x19f   : > { %v993_v26 = vpop.xlane.xlu1 %992  ;;  %v981_v27 = vpop.xlane.xlu0 %980 }
 0x1a0   : > { %v1243_v9 = vrot.slane %v981_v27, %v3647_v38  ;;  %v1271_v59 = vrot.slane %v993_v26, %v3670_v45  ;;  %v3715_v26 = vsub.s32 %v1316_v32, %v3246_v10  ;;  %v1323_v27 = vadd.s32 4294967192, %v3639_v21 }
 0x1a2   : > { %v1245_v44 = vsel %vm1244_vm2, %v1243_v9, %v1238_v28  ;;  %v3721_v36 = vsub.s32 %v1323_v27, %v3246_v10 }
 0x1a3   : > { %v996_v34 = vpop.xlane.xlu1 %995  ;;  %v984_v39 = vpop.xlane.xlu0 %983 }
 0x1a4   : > { %v1250_v41 = vrot.slane %v984_v39, %v3653_v29  ;;  %v1278_v63 = vrot.slane %v996_v34, %v3674_v33 }
 0x1a6   : > { %v1252_v50 = vsel %vm1251_vm3, %v1250_v41, %v1245_v44  ;;  %v1330_v44 = vadd.s32 4294967184, %v3639_v21 }
 0x1a7   : > { %v999_v51 = vpop.xlane.xlu1 %998  ;;  %v987_v53 = vpop.xlane.xlu0 %986 }
 0x1a8   : > { %v1257_v46 = vrot.slane %v987_v53, %v3664_v42  ;;  %v1285_v6 = vrot.slane %v999_v51, %v3681_v56  ;;  %v3727_v41 = vsub.s32 %v1330_v44, %v3246_v10 }
 0x1aa   : > { %v1259_v49 = vsel %vm1258_vm4, %v1257_v46, %v1252_v50 }
 0x1ab   : > { %v1002_v60 = vpop.xlane.xlu1 %1001  ;;  %v1266_v1 = vsel %vm1265_vm5, %v1264_v58, %v1259_v49  ;;  %v3691_v4 = vpop.xlane.xlu0 %1073 }
 0x1ac   : > { %v1292_v2 = vrot.slane %v1002_v60, %v3677_v54  ;;  %v1273_v7 = vsel %vm1272_vm6, %v1271_v59, %v1266_v1  ;;  %v1426_v1 = vrot.slane %v3691_v4, %v3644_v25 }
 0x1ad   : > { %v1280_v0 = vsel %vm1279_vm7, %v1278_v63, %v1273_v7 }
 0x1ae   : > { %v1287_v8 = vsel %vm1286_vm8, %v1285_v6, %v1280_v0 }
 0x1af   : > { %v1005_v31 = vpop.xlane.xlu1 %1004  ;;  %v1294_v11 = vsel %vm1293_vm9, %v1292_v2, %v1287_v8  ;;  %v1080_v16 = vpop.xlane.xlu0 %1079 }
 0x1b0   : > { %v1299_v15 = vrot.slane %v1005_v31, %v3694_v5  ;;  %v1435_v0 = vrot.slane %v1080_v16, %v3653_v29 }
 0x1b2   : > { %v1301_v22 = vsel %vm1300_vm10, %v1299_v15, %v1294_v11 }
 0x1b3   : > { %v1008_v37 = vpop.xlane.xlu1 %1007  ;;  %v1038_v52 = vpop.xlane.xlu0 %1037 }
 0x1b4   : > { %v1306_v47 = vrot.slane %v1008_v37, %v3703_v57 }
 0x1b6   : > { %v1308_v23 = vsel %vm1307_vm11, %v1306_v47, %v1301_v22  ;;  %v1366_v47 = vrot.slane %v1038_v52, %v3667_v43 }
 0x1b7   : > { %v1011_v62 = vpop.xlane.xlu1 %1010  ;;  %v1041_v40 = vpop.xlane.xlu0 %1040 }
 0x1b8   : > { %v1313_v24 = vrot.slane %v1011_v62, %v3709_v48  ;;  %v1371_v16 = vrot.slane %v1041_v40, %v3670_v45 }
 0x1ba   : > { %v1315_v28 = vsel %vm1314_vm12, %v1313_v24, %v1308_v23 }
 0x1bb   : > { %v1014_v9 = vpop.xlane.xlu1 %1013  ;;  %v1044_v35 = vpop.xlane.xlu0 %1043 }
 0x1bc   : > { %v1320_v30 = vrot.slane %v1014_v9, %v3715_v26  ;;  %v1376_v62 = vrot.slane %v1044_v35, %v3674_v33 }
 0x1be   : > { %v1322_v34 = vsel %vm1321_vm13, %v1320_v30, %v1315_v28 }
 0x1bf   : > { %v1017_v55 = vpop.xlane.xlu1 %1016  ;;  %v1047_v3 = vpop.xlane.xlu0 %1046 }
 0x1c0   : > { %v1327_v39 = vrot.slane %v1017_v55, %v3721_v36  ;;  %v1381_v28 = vrot.slane %v1047_v3, %v3681_v56 }
 0x1c2   : > { %v1329_v12 = vsel %vm1328_vm14, %v1327_v39, %v1322_v34 }
 0x1c3   : > { %v1020_v50 = vpop.xlane.xlu1 %1019  ;;  %v1050_v53 = vpop.xlane.xlu0 %1049 }
 0x1c4   : > { %v1334_v51 = vrot.slane %v1020_v50, %v3727_v41  ;;  %v1386_v44 = vrot.slane %v1050_v53, %v3677_v54 }
 0x1c6   : > { %v3732_v14 = vsel %vm1335_vm15, %v1334_v51, %v1329_v12 }
 0x1c7   : > { %v1026_v46 = vpop.xlane.xlu1 %1025  ;;  %v1053_v58 = vpop.xlane.xlu0 %1052 }
 0x1c8   : > { %v1347_v31 = vrot.slane %v1026_v46, %v3644_v25  ;;  %v1391_v34 = vrot.slane %v1053_v58, %v3694_v5 }
 0x1cb   : > { %v1029_v59 = vpop.xlane.xlu1 %1028  ;;  %v1056_v49 = vpop.xlane.xlu0 %1055 }
 0x1cc   : > { %v1351_v2 = vrot.slane %v1029_v59, %v3647_v38  ;;  %v1396_v55 = vrot.slane %v1056_v49, %v3703_v57 }
 0x1ce   : > { %v1352_v22 = vsel %vm1244_vm2, %v1351_v2, %v1347_v31 }
 0x1cf   : > { %v1032_v60 = vpop.xlane.xlu1 %1031  ;;  %v1059_v61 = vpop.xlane.xlu0 %1058 }
 0x1d0   : > { %v1356_v8 = vrot.slane %v1032_v60, %v3653_v29  ;;  %v1401_v12 = vrot.slane %v1059_v61, %v3709_v48 }
 0x1d2   : > { %v1357_v32 = vsel %vm1251_vm3, %v1356_v8, %v1352_v22 }
 0x1d3   : > { %v1077_v63 = vpop.xlane.xlu1 %1076  ;;  %v1062_v6 = vpop.xlane.xlu0 %1061 }
 0x1d4   : > { %v1430_v7 = vrot.slane %v1077_v63, %v3647_v38  ;;  %v1406_v51 = vrot.slane %v1062_v6, %v3715_v26 }
 0x1d6   : > { %v1431_v11 = vsel %vm1244_vm2, %v1430_v7, %v1426_v1 }
 0x1d7   : > { %v1035_v15 = vpop.xlane.xlu1 %1034  ;;  %v1436_v18 = vsel %vm1251_vm3, %v1435_v0, %v1431_v11  ;;  %v1065_v37 = vpop.xlane.xlu0 %1064 }
 0x1d8   : > { %v1361_v4 = vrot.slane %v1035_v15, %v3664_v42 }
 0x1da   : > { %v1362_v23 = vsel %vm1258_vm4, %v1361_v4, %v1357_v32  ;;  %v1411_v32 = vrot.slane %v1065_v37, %v3721_v36 }
 0x1db   : > { %v1367_v24 = vsel %vm1265_vm5, %v1366_v47, %v1362_v23  ;;  %v1083_v27 = vpop.xlane.xlu1 %1082  ;;  %v1068_v30 = vpop.xlane.xlu0 %1067  ;;  %v1337_v47 = vadd.s32 4294967176, %v3639_v21 }
 0x1dc   : > { %v1372_v9 = vsel %vm1272_vm6, %v1371_v16, %v1367_v24  ;;  %v1440_v16 = vrot.slane %v1083_v27, %v3664_v42 }
 0x1dd   : > { %v1377_v52 = vsel %vm1279_vm7, %v1376_v62, %v1372_v9  ;;  %v3779_v9 = vsub.s32 %v1337_v47, %v3246_v10 }
 0x1de   : > { %v1382_v40 = vsel %vm1286_vm8, %v1381_v28, %v1377_v52  ;;  %v1416_v52 = vrot.slane %v1068_v30, %v3727_v41  ;;  %v1441_v37 = vsel %vm1258_vm4, %v1440_v16, %v1436_v18 }
 0x1df   : > { %v1387_v35 = vsel %vm1293_vm9, %v1386_v44, %v1382_v40  ;;  %v1086_v39 = vpop.xlane.xlu1 %1085  ;;  %v1071_v50 = vpop.xlane.xlu0 %1070 }
 0x1e0   : > { %v1392_v3 = vsel %vm1300_vm10, %v1391_v34, %v1387_v35  ;;  %v1445_v62 = vrot.slane %v1086_v39, %v3667_v43 }
 0x1e1   : > { %v1397_v53 = vsel %vm1307_vm11, %v1396_v55, %v1392_v3 }
 0x1e2   : > { %v1402_v46 = vsel %vm1314_vm12, %v1401_v12, %v1397_v53  ;;  %v1446_v35 = vsel %vm1265_vm5, %v1445_v62, %v1441_v37 }
 0x1e3   : > { %v1407_v58 = vsel %vm1321_vm13, %v1406_v51, %v1402_v46  ;;  %v1089_v59 = vpop.xlane.xlu1 %1088  ;;  %v1125_v60 = vpop.xlane.xlu0 %1124  ;;  %v1421_v51 = vrot.slane %v1071_v50, %v3779_v9 }
 0x1e4   : > { %v1412_v28 = vsel %vm1328_vm14, %v1411_v32, %v1407_v58  ;;  %v1450_v44 = vrot.slane %v1089_v59, %v3670_v45  ;;  %v1509_v39 = vrot.slane %v1125_v60, %v3647_v38 }
 0x1e5   : > { %v1417_v55 = vsel %vm1335_vm15, %v1416_v52, %v1412_v28 }
 0x1e6   : > { %v1451_v30 = vsel %vm1272_vm6, %v1450_v44, %v1446_v35  ;;  %v1422_v38 = vsel %vm1342_vm0, %v1421_v51, %v1417_v55 }
 0x1e7   : > { %v1092_v63 = vpop.xlane.xlu1 %1091  ;;  %v1128_v49 = vpop.xlane.xlu0 %1127 }
 0x1e8   : > { %v1455_v34 = vrot.slane %v1092_v63, %v3674_v33  ;;  %v1514_v53 = vrot.slane %v1128_v49, %v3653_v29 }
 0x1ea   : > { %v1456_v46 = vsel %vm1279_vm7, %v1455_v34, %v1451_v30 }
 0x1eb   : > { %v1095_v1 = vpop.xlane.xlu1 %1094  ;;  %v1131_v2 = vpop.xlane.xlu0 %1130 }
 0x1ec   : > { %v1460_v27 = vrot.slane %v1095_v1, %v3681_v56  ;;  %v1519_v58 = vrot.slane %v1131_v2, %v3664_v42 }
 0x1ee   : > { %v1461_v60 = vsel %vm1286_vm8, %v1460_v27, %v1456_v46 }
 0x1ef   : > { %v1098_v7 = vpop.xlane.xlu1 %1097  ;;  %v1134_v0 = vpop.xlane.xlu0 %1133 }
 0x1f0   : > { %v1465_v18 = vrot.slane %v1098_v7, %v3677_v54 }
 0x1f2   : > { %v1466_v2 = vsel %vm1293_vm9, %v1465_v18, %v1461_v60 }
 0x1f3   : > { %v1101_v61 = vpop.xlane.xlu1 %1100  ;;  %v1137_v8 = vpop.xlane.xlu0 %1136 }
 0x1f4   : > { %v1470_v29 = vrot.slane %v1101_v61, %v3694_v5  ;;  %v1529_v49 = vrot.slane %v1137_v8, %v3670_v45 }
 0x1f6   : > { %v1471_v28 = vsel %vm1300_vm10, %v1470_v29, %v1466_v2  ;;  %v2920_v2 = vld [vmem:[%s4129_s0 + $0x50] sm:$0xff]  }
 0x1f7   : > { %v3765_v31 = vpop.xlane.xlu1 %1103  ;;  %v1140_v11 = vpop.xlane.xlu0 %1139 }
 0x1f8   : > { %v1475_v47 = vrot.slane %v3765_v31, %v3703_v57  ;;  %v1534_v32 = vrot.slane %v1140_v11, %v3674_v33 }
 0x1fa   : > { %v1476_v44 = vsel %vm1307_vm11, %v1475_v47, %v1471_v28  ;;  %v2921_v47 = vld [vmem:[%s4129_s0 + $0x18] sm:$0xff]  }
 0x1fb   : > { %v3767_v6 = vpop.xlane.xlu1 %1106  ;;  %v1143_v15 = vpop.xlane.xlu0 %1142 }
 0x1fc   : > { %v1539_v61 = vrot.slane %v1143_v15, %v3681_v56 }
 0x1ff   : > { %v3769_v22 = vpop.xlane.xlu1 %1109  ;;  %v1146_v4 = vpop.xlane.xlu0 %1145 }
 0x200   : > { %v1485_v16 = vrot.slane %v3769_v22, %v3715_v26  ;;  %v1544_v62 = vrot.slane %v1146_v4, %v3677_v54 }
 0x203   : > { %v3774_v23 = vpop.xlane.xlu1 %1112  ;;  %v1149_v24 = vpop.xlane.xlu0 %1148 }
 0x204   : > { %v1490_v56 = vrot.slane %v3774_v23, %v3721_v36 }
 0x207   : > { %v1122_v40 = vpop.xlane.xlu1 %1121  ;;  %v1152_v12 = vpop.xlane.xlu0 %1151 }
 0x208   : > { %v1505_v3 = vrot.slane %v1122_v40, %v3644_v25  ;;  %v1524_v25 = vrot.slane %v1134_v0, %v3667_v43  ;;  %v1480_v0 = vrot.slane %v3767_v6, %v3709_v48  ;;  %v1549_v6 = vrot.slane %v1149_v24, %v3694_v5 }
 0x209   : > { %v1554_v22 = vrot.slane %v1152_v12, %v3703_v57 }
 0x20a   : > { %v1510_v59 = vsel %vm1244_vm2, %v1509_v39, %v1505_v3  ;;  %v1481_v52 = vsel %vm1314_vm12, %v1480_v0, %v1476_v44  ;;  %vm1583_vm2 = vcmask 1042434   ;;  %v2924_v0 = vld [vmem:[%s4129_s0 + $0x60] sm:$0xff]  }
 0x20b   : > { %v1515_v50 = vsel %vm1251_vm3, %v1514_v53, %v1510_v59  ;;  %v1023_v63 = vpop.xlane.xlu1 %1022  ;;  %v1155_v7 = vpop.xlane.xlu0 %1154  ;;  %v1486_v23 = vsel %vm1321_vm13, %v1485_v16, %v1481_v52  ;;  %vm1585_vm3 = vcmask 1043459   ;;  %v2928_v16 = vld [vmem:[%s4129_s0 + $0x70] sm:$0xff]   ;;  %v2932_v52 = vld [vmem:[%s4129_s0 + $0xc0] sm:$0xff]  }
 0x20c   : > { %v1520_v1 = vsel %vm1258_vm4, %v1519_v58, %v1515_v50  ;;  %v1341_v42 = vrot.slane %v1023_v63, %v3779_v9  ;;  %v1559_v37 = vrot.slane %v1155_v7, %v3709_v48  ;;  %v1491_v27 = vsel %vm1328_vm14, %v1490_v56, %v1486_v23  ;;  %v2918_v50 = vld [vmem:[%s4129_s0 + $0x48] sm:$0xff]   ;;  %v2919_v63 = vld [vmem:[%s4129_s0 + $0x10] sm:$0xff]  }
 0x20d   : > { %v1525_v43 = vsel %vm1265_vm5, %v1524_v25, %v1520_v1  ;;  %vm1170_vm4 = vcmp.lt.s32.totalorder %v3639_v21, 16  ;;  %vm1589_vm5 = vcmask 1043456   ;;  %v3086_v25 = vmov 0.0   ;;  %v2917_v21 = vld [vmem:[%s4129_s0 + $0x8] sm:$0xff]  }
 0x20e   : > { %v1530_v45 = vsel %vm1272_vm6, %v1529_v49, %v1525_v43  ;;  %v1343_v8 = vsel %vm1342_vm0, %v1341_v42, %v3732_v14  ;;  %2745 = vmatprep.subr.bf16.mxu1 %v3086_v25  ;;  %2765 = vmatprep.subr.bf16.mxu0 %v3086_v25  ;;  %vm3087_vm6 = vmmov 0   ;;  %v2923_v43 = vld [vmem:[%s4129_s0 + $0x20] sm:$0xff]   ;;  %v2934_v23 = vld [vmem:[%s4129_s0 + $0xc8] sm:$0xff]  }
 0x20f   : > { %v1535_v31 = vsel %vm1279_vm7, %v1534_v32, %v1530_v45  ;;  %v1116_v33 = vpop.xlane.xlu1 %1115  ;;  %v1582_v11 = vsel %vm1581_vm1, %v1422_v38, %v1343_v8  ;;  %v1158_v14 = vpop.xlane.xlu0 %1157  ;;  %2761 = vmatprep.mubr.msk.bf16.mxu1 %vm3087_vm6, %v3086_v25  ;;  %2781 = vmatprep.mubr.msk.bf16.mxu0 %vm3087_vm6, %v3086_v25  ;;  %v2922_v32 = vld [vmem:[%s4129_s0 + $0x58] sm:$0xff]   ;;  %v2926_v45 = vld [vmem:[%s4129_s0 + $0x68] sm:$0xff]   ;;  %v2927_v8 = vld [vmem:[%s4129_s0 + $0x30] sm:$0xff]   ;;  %vm4154_vm7 = vcmask 261120  }
 0x210   : > { %v1540_v15 = vsel %vm1286_vm8, %v1539_v61, %v1535_v31  ;;  %v1495_v4 = vrot.slane %v1116_v33, %v3727_v41  ;;  %v1564_v35 = vrot.slane %v1158_v14, %v3715_v26  ;;  %v2925_v61 = vld [vmem:[%s4129_s0 + $0x28] sm:$0xff]   ;;  %v2930_v31 = vld [vmem:[%s4129_s0 + $0x78] sm:$0xff]  }
 0x211   : > { %v1545_v54 = vsel %vm1293_vm9, %v1544_v62, %v1540_v15  ;;  %v2929_v62 = vld [vmem:[%s4129_s0 + $0x38] sm:$0xff]  }
 0x212   : > { %v1550_v34 = vsel %vm1300_vm10, %v1549_v6, %v1545_v54  ;;  %v1496_v39 = vsel %vm1335_vm15, %v1495_v4, %v1491_v27  ;;  %v2937_v27 = vld [vmem:[%s4129_s0 + $0x98] sm:$0xff]  }
 0x213   : > { %v1555_v5 = vsel %vm1307_vm11, %v1554_v22, %v1550_v34  ;;  %v1119_v24 = vpop.xlane.xlu1 %1118  ;;  %v1161_v57 = vpop.xlane.xlu0 %1160  ;;  %v2931_v22 = vld [vmem:[%s4129_s0 + $0x80] sm:$0xff]  }
 0x214   : > { %v1560_v40 = vsel %vm1314_vm12, %v1559_v37, %v1555_v5  ;;  %v1500_v55 = vrot.slane %v1119_v24, %v3779_v9  ;;  %v1569_v12 = vrot.slane %v1161_v57, %v3721_v36  ;;  %v2933_v37 = vld [vmem:[%s4129_s0 + $0x88] sm:$0xff]   ;;  %v2935_v5 = vld [vmem:[%s4129_s0 + $0x90] sm:$0xff]   ;;  %v2939_v57 = vld [vmem:[%s4129_s0 + $0xa0] sm:$0xff]  }
 0x215   : > { %v1565_v3 = vsel %vm1321_vm13, %v1564_v35, %v1560_v40  ;;  %v2936_v24 = vld [vmem:[%s4129_s0 + $0xd0] sm:$0xff]   ;;  %v2938_v40 = vld [vmem:[%s4129_s0 + $0xd8] sm:$0xff]  }
 0x216   : > { %v1501_v48 = vsel %vm1342_vm0, %v1500_v55, %v1496_v39  ;;  %v1570_v58 = vsel %vm1328_vm14, %v1569_v12, %v1565_v3  ;;  %v2940_v55 = vld [vmem:[%s4129_s0 + $0xe0] sm:$0xff]   ;;  %v2941_v39 = vld [vmem:[%s4129_s0 + $0xa8] sm:$0xff]   ;;  %v2943_v3 = vld [vmem:[%s4129_s0 + $0xb0] sm:$0xff]  }
 0x217   : > { %v1167_v51 = vpop.xlane.xlu1 %1166  ;;  %v1584_v30 = vsel %vm1583_vm2, %v1501_v48, %v1582_v11  ;;  %v1164_v53 = vpop.xlane.xlu0 %1163  ;;  %v2942_v12 = vld [vmem:[%s4129_s0 + $0xe8] sm:$0xff]  }
 0x218   : > { %v1579_v18 = vrot.slane %v1167_v51, %v3779_v9  ;;  %v1574_v46 = vrot.slane %v1164_v53, %v3727_v41  ;;  %v2915_v41 = vld [vmem:[%s4129_s0] sm:$0xff]   ;;  %v2944_v51 = vld [vmem:[%s4129_s0 + $0xf0] sm:$0xff]  }
 0x219   : > { %v2916_v9 = vld [vmem:[%s4129_s0 + $0x40] sm:$0xff]   ;;  %2746 = vmatpush3.bf16.msra.mxu1 %v2915_v41 }
 0x21a   : > { %v1575_v26 = vsel %vm1335_vm15, %v1574_v46, %v1570_v58  ;;  %2766 = vmatpush3.bf16.msra.mxu0 %v2916_v9  ;;  %2747 = vmatprep.subr.bf16.mxu1 %v3086_v25  ;;  %v2947_v58 = vld [vmem:[%s4137_s8] sm:$0xff]  }
 0x21b   : > { %v1580_v36 = vsel %vm1342_vm0, %v1579_v18, %v1575_v26  ;;  %2767 = vmatprep.subr.bf16.mxu0 %v3086_v25  ;;  %v2946_v18 = vld [vmem:[%s4129_s0 + $0xf8] sm:$0xff]  }
 0x21c   : > { %v1586_v59 = vsel %vm1585_vm3, %v1580_v36, %v1584_v30 }
 0x21d   : > { %v1588_v38 = vsel %vm1170_vm4, %v1586_v59, -1e+30  ;;  %2748 = vmatpush3.bf16.msra.mxu1 %v2917_v21  ;;  %v2948_v59 = vld [vmem:[%s4137_s8 + $0x8] sm:$0xff]  }
 0x21e   : > { %v1590_v60 = vsel %vm1589_vm5, %v1588_v38, -inf  ;;  %2768 = vmatpush3.bf16.msra.mxu0 %v2918_v50  ;;  %2749 = vmatprep.subr.bf16.mxu1 %v3086_v25 }
 0x21f   : > { %1591 = vmax.xlane.f32.xlu0 %v1590_v60  ;;  %2769 = vmatprep.subr.bf16.mxu0 %v3086_v25 }
 0x221   : > { %2750 = vmatpush3.bf16.msra.mxu1 %v2919_v63 }
 0x222   : > { %2751 = vmatprep.subr.bf16.mxu1 %v3086_v25  ;;  %2770 = vmatpush3.bf16.msra.mxu0 %v2920_v2 }
 0x223   : > { %2771 = vmatprep.subr.bf16.mxu0 %v3086_v25 }
 0x225   : > { %2752 = vmatpush3.bf16.msra.mxu1 %v2921_v47  ;;  %v2949_v47 = vld [vmem:[%s4138_s9] sm:$0xff]  }
 0x226   : > { %2753 = vmatprep.subr.bf16.mxu1 %v3086_v25  ;;  %2772 = vmatpush3.bf16.msra.mxu0 %v2922_v32 }
 0x227   : > { %2773 = vmatprep.subr.bf16.mxu0 %v3086_v25 }
 0x229   : > { %2754 = vmatpush3.bf16.msra.mxu1 %v2923_v43 }
 0x22a   : > { %2755 = vmatprep.subr.bf16.mxu1 %v3086_v25  ;;  %2774 = vmatpush3.bf16.msra.mxu0 %v2924_v0 }
 0x22b   : > { %2775 = vmatprep.subr.bf16.mxu0 %v3086_v25 }
 0x22d   : > { %2756 = vmatpush3.bf16.msra.mxu1 %v2925_v61 }
 0x22e   : > { %2757 = vmatprep.subr.bf16.mxu1 %v3086_v25  ;;  %2776 = vmatpush3.bf16.msra.mxu0 %v2926_v45 }
 0x22f   : > { %2777 = vmatprep.subr.bf16.mxu0 %v3086_v25 }
 0x231   : > { %2758 = vmatpush3.bf16.msra.mxu1 %v2927_v8 }
 0x232   : > { %2759 = vmatprep.subr.bf16.mxu1 %v3086_v25  ;;  %2778 = vmatpush3.bf16.msra.mxu0 %v2928_v16  ;;  %v2950_v16 = vld [vmem:[%s4138_s9 + $0x8] sm:$0xff]  }
 0x233   : > { %2779 = vmatprep.subr.bf16.mxu0 %v3086_v25 }
 0x235   : > { %2760 = vmatpush3.bf16.msra.mxu1 %v2929_v62 }
 0x236   : > { %2785 = vmatprep.subr.bf16.mxu1 %v3086_v25  ;;  %2780 = vmatpush3.bf16.msra.mxu0 %v2930_v31 }
 0x237   : > { %2805 = vmatprep.subr.bf16.mxu0 %v3086_v25 }
 0x2ac   : > { %v1592_v29 = vpop.xlane.xlu0 %1591 }
 0x2ad   : > { %v1593_v49 = vsub.f32 %v1588_v38, %v1592_v29  ;;  %v2083_v38 = vld [vmem:[%s3219_s28] sm:$0x3]  ;;  %s4044_s28 = scalar_lea.hbm %s4140_s11, %s2541_s14 }
 0x2af   : > { %v1594_v1 = vmul.f32 1.442695, %v1593_v49 }
 0x2b1   : > { %2951 = vpow2.f32 %v1594_v1 }
 0x2bb   : > { %v2952_v7 = vpop.eup %2951 }
 0x2bc   : > { %v1596_v42 = vsel %vm1589_vm5, %v2952_v7, 0.0 }
 0x2bd   : > { %1597 = vadd.xlane.f32.xlu1 %v1596_v42 }
 0x34a   : > { %v1598_v33 = vpop.xlane.xlu1 %1597 }
 0x34b   : > { %2953 = vrcp.f32 %v1598_v33 }
 0x355   : > { %v2954_v11 = vpop.eup %2953 }
 0x356   : > { %v1600_v28 = vmul.f32 %v2954_v11, %v2952_v7 }
 0x358   : > { %2277 = vst [vmem:[%s3223_s25] sm:$0xf] %v1600_v28  ;;  %v1601_v56 = vpack.c.bf16 %v1600_v28, %v1600_v28  ;;  %s3092_s25 = smov [#allocation6]  }
 0x359   : > { %s2976_s15 = sshll.u32 %s3092_s25, 4  ;;  %s2977_s15 = int_to_ptr.vmem [resolvable:$false] %s2976_s15 }
 0x35a   : > { %v1609_v6 = vrot.slane %v1601_v56, %v3256_v17  ;;  %s2978_s13 = scalar_lea.vmem %s2977_s15, 128  ;;  %p2979_p2 = scmp.lt.s32.totalorder %s4046_s16, %s2977_s15 }
 0x35c   : > { %v1617_v15 = vrot.slane %v1609_v6, %v3256_v17  ;;  %v1610_v35 = vcombine.high %v1609_v6, %v1609_v6 }
 0x35e   : > { %v2496_v14 = vpack.i.b16 %v1617_v15, %v1617_v15  ;;  %v1626_v44 = vunpack.i.h.s16 %v1617_v15  ;;  %v1624_v48 = vrot.slane %v1610_v35, %v3256_v17  ;;  %v2945_v17 = vld [vmem:[%s4129_s0 + $0xb8] sm:$0xff]   ;;  %v2494_v15 = vmul.f32 -1.442695, %v3258_v19 }
 0x360   : > { %v1697_v54 = vrot.slane %v2496_v14, %v3249_v13  ;;  %v1787_v4 = vpack.i.b16 %v1626_v44, %v1626_v44  ;;  %v1628_v30 = vunpack.i.h.s16 %v1624_v48  ;;  %v2513_v53 = vpack.i.b16 %v1624_v48, %v1624_v48 }
 0x361   : > { %2955 = vpow2.f32 %v2494_v15 }
 0x362   : > { %2762 = vmatmul.mubr.bf16.vlgmr.msra.gmra.mrb[0].mxu1 %v1697_v54  ;;  %v1791_v34 = vrot.slane %v1787_v4, %v3249_v13  ;;  %v1975_v46 = vpack.i.b16 %v1628_v30, %v1628_v30  ;;  %v1885_v26 = vrot.slane %v2513_v53, %v3249_v13 }
 0x363   : > { %2786 = vmatpush3.bf16.msra.mxu1 %v2931_v22  ;;  %2801 = vmatprep.mubr.msk.bf16.mxu1 %vm3087_vm6, %v3086_v25 }
 0x364   : > { %2782 = vmatmul.mubr.bf16.vlgmr.msra.gmra.mrb[4].mxu0 %v1791_v34  ;;  %2787 = vmatprep.subr.bf16.mxu1 %v3086_v25  ;;  %v1979_v36 = vrot.slane %v1975_v46, %v3249_v13 }
 0x365   : > { %2806 = vmatpush3.bf16.msra.mxu0 %v2932_v52  ;;  %2821 = vmatprep.mubr.msk.bf16.mxu0 %vm3087_vm6, %v3086_v25 }
 0x366   : > { %2807 = vmatprep.subr.bf16.mxu0 %v3086_v25 }
 0x367   : > { %2788 = vmatpush3.bf16.msra.mxu1 %v2933_v37 }
 0x368   : > { %2789 = vmatprep.subr.bf16.mxu1 %v3086_v25 }
 0x369   : > { %2808 = vmatpush3.bf16.msra.mxu0 %v2934_v23 }
 0x36a   : > { %2809 = vmatprep.subr.bf16.mxu0 %v3086_v25 }
 0x36b   : > { %2790 = vmatpush3.bf16.msra.mxu1 %v2935_v5  ;;  %v2956_v14 = vpop.eup %2955  ;;  %v515_v5 = vld [vmem:[#allocation3] sm:$0xf] }
 0x36c   : > { %2791 = vmatprep.subr.bf16.mxu1 %v3086_v25  ;;  %v601_v44 = vadd.f32 1.0, %v2956_v14 }
 0x36d   : > { %2810 = vmatpush3.bf16.msra.mxu0 %v2936_v24 }
 0x36e   : > { %2811 = vmatprep.subr.bf16.mxu0 %v3086_v25  ;;  %2957 = vrcp.f32 %v601_v44 }
 0x36f   : > { %2792 = vmatpush3.bf16.msra.mxu1 %v2937_v27  ;;  %v529_v27 = vsub.s32 1, %v3246_v10 }
 0x370   : > { %2793 = vmatprep.subr.bf16.mxu1 %v3086_v25 }
 0x371   : > { %2812 = vmatpush3.bf16.msra.mxu0 %v2938_v40  ;;  %v2971_v40 = vld [vmem:[%s4135_s6] sm:$0x3] }
 0x372   : > { %2813 = vmatprep.subr.bf16.mxu0 %v3086_v25 }
 0x373   : > { %2794 = vmatpush3.bf16.msra.mxu1 %v2939_v57  ;;  %v530_v57 = vrot.slane %v2971_v40, %v529_v27 }
 0x374   : > { %2795 = vmatprep.subr.bf16.mxu1 %v3086_v25 }
 0x375   : > { %2814 = vmatpush3.bf16.msra.mxu0 %v2940_v55  ;;  %v594_v35 = vadd.f32 %v3260_v20, %v530_v57 }
 0x376   : > { %2815 = vmatprep.subr.bf16.mxu0 %v3086_v25 }
 0x377   : > { %2796 = vmatpush3.bf16.msra.mxu1 %v2941_v39 }
 0x378   : > { %2797 = vmatprep.subr.bf16.mxu1 %v3086_v25  ;;  %v2958_v22 = vpop.eup %2957 }
 0x379   : > { %2816 = vmatpush3.bf16.msra.mxu0 %v2942_v12 }
 0x37a   : > { %2817 = vmatprep.subr.bf16.mxu0 %v3086_v25 }
 0x37b   : > { %2798 = vmatpush3.bf16.msra.mxu1 %v2943_v3 }
 0x37c   : > { %2799 = vmatprep.subr.bf16.mxu1 %v3086_v25 }
 0x37d   : > { %2818 = vmatpush3.bf16.msra.mxu0 %v2944_v51 }
 0x37e   : > { %2819 = vmatprep.subr.bf16.mxu0 %v3086_v25 }
 0x37f   : > { %2800 = vmatpush3.bf16.msra.mxu1 %v2945_v17 }
 0x380   : > { %2825 = vmatprep.subr.bf16.mxu1 %v3086_v25 }
 0x381   : > { %2820 = vmatpush3.bf16.msra.mxu0 %v2946_v18 }
 0x382   : > { %2802 = vmatmul.mubr.bf16.vlgmr.msra.gmra.mrb[4].mxu1 %v1885_v26  ;;  %2833 = vmatprep.subr.bf16.mxu0 %v3086_v25 }
 0x383   : > { %2826 = vmatpush3.bf16.msra.mxu1 %v2947_v58  ;;  %2829 = vmatprep.mubr.msk.bf16.mxu1 %vm3087_vm6, %v3086_v25 }
 0x384   : > { %2822 = vmatmul.mubr.bf16.vlgmr.msra.gmra.mrb[8].mxu0 %v1979_v36  ;;  %2827 = vmatprep.subr.bf16.mxu1 %v3086_v25 }
 0x385   : > { %2837 = vmatprep.mubr.msk.bf16.mxu0 %vm3087_vm6, %v3086_v25  ;;  %2834 = vmatpush3.bf16.msra.mxu0 %v2949_v47 }
 0x386   : > { %2835 = vmatprep.subr.bf16.mxu0 %v3086_v25 }
 0x387   : > { %2828 = vmatpush3.bf16.msra.mxu1 %v2948_v59 }
 0x389   : > { %2836 = vmatpush3.bf16.msra.mxu0 %v2950_v16 }
 0x38a   : > { %2830 = vmatmul.mubr.msk.bf16.vlgmr.msra.gmra.mrb[8].mxu1 %vm4154_vm7, %v2083_v38 }
 0x435   : > { %v1781_v13 = vpop.f32.mrb[0].mxu1 }
 0x436   : > { %v2763_v60 = vpop.f32.mrb[1].mxu1 }
 0x437   : > { %v1784_v41 = vpop.f32.mrb[2].mxu1  ;;  %v1875_v9 = vpop.f32.mrb[4].mxu0 }
 0x438   : > { %v2073_v21 = vrot.slane %v1875_v9, 7  ;;  %v2764_v50 = vpop.f32.mrb[3].mxu1  ;;  %v2783_v63 = vpop.f32.mrb[5].mxu0  ;;  %v3091_v9 = vmov 1983009808  }
 0x439   : > { %v1878_v29 = vpop.f32.mrb[6].mxu0 }
 0x43a   : > { %v2074_v49 = vsel %vm1581_vm1, %v2073_v21, %v1781_v13  ;;  %v2784_v1 = vpop.f32.mrb[7].mxu0  ;;  %vm4155_vm1 = vmmov %vm4154_vm7  ;;  %v2266_v21 = vunpack.c.l.s4 %v3091_v9 }
 0x43c   : > { %v2267_v50 = vunpack.c.0.s8 %v2266_v21 }
 0x43e   : > { %v2270_v1 = vsub.s32 %v2267_v50, %v3246_v10 }
 0x455   : > { %v1969_v7 = vpop.f32.mrb[4].mxu1 }
 0x456   : > { %v2075_v42 = vrot.slane %v1969_v7, 6  ;;  %v2803_v2 = vpop.f32.mrb[5].mxu1 }
 0x457   : > { %v1972_v32 = vpop.f32.mrb[6].mxu1  ;;  %v2063_v43 = vpop.f32.mrb[8].mxu0 }
 0x458   : > { %v2077_v0 = vrot.slane %v2063_v43, 5  ;;  %v2804_v61 = vpop.f32.mrb[7].mxu1  ;;  %v2823_v45 = vpop.f32.mrb[9].mxu0  ;;  %v2076_v8 = vsel %vm1583_vm2, %v2075_v42, %v2074_v49 }
 0x459   : > { %v2066_v62 = vpop.f32.mrb[10].mxu0 }
 0x45a   : > { %v2824_v31 = vpop.f32.mrb[11].mxu0  ;;  %v2078_v33 = vsel %vm1585_vm3, %v2077_v0, %v2076_v8 }
 0x45b   : > { %2079 = vrot.lane.b32.xlu0 %v2078_v33, %s4146_s19 }
 0x45d   : > { %v2137_v11 = vpop.f32.mrb[8].mxu1 }
 0x45e   : > { %v2831_v28 = vpop.f32.mrb[9].mxu1 }
 0x45f   : > { %v2140_v56 = vpop.f32.mrb[10].mxu1 }
 0x460   : > { %v2832_v6 = vpop.f32.mrb[11].mxu1 }
 0x4cd   : > { %v2080_v54 = vpop.permute.xlu0 %2079 }
 0x4ce   : > { %v2082_v25 = vmul.f32 %v2958_v22, %v2080_v54 }
 0x4d0   : > { %v2149_v4 = vpack.c.bf16 %v2082_v25, %v2082_v25 }
 0x4d2   : > { %2155 = vrot.lane.b32.xlu1 %v2149_v4, %s3089_s23 }
 0x4d6   : > { %2144 = vrot.lane.b32.xlu1 %v2137_v11, %s3090_s24 }
 0x544   : > { %v2156_v52 = vpop.permute.xlu1 %2155 }
 0x545   : > { %2838 = vmatmul.mubr.msk.bf16.vlgmr.msra.gmra.mrb[12].mxu0 %vm4155_vm1, %v2156_v52 }
 0x548   : > { %v2145_v55 = vpop.permute.xlu1 %2144 }
 0x549   : > { %v2148_v39 = vadd.f32 %v2145_v55, %v594_v35  ;;  %v2147_v51 = vadd.f32 %v2145_v55, %v3258_v19 }
 0x618   : > { %v2206_v34 = vpop.f32.mrb[12].mxu0 }
 0x619   : > { %2213 = vrot.lane.b32.xlu1 %v2206_v34, %s3090_s24  ;;  %v2839_v37 = vpop.f32.mrb[13].mxu0 }
 0x61a   : > { %v2209_v23 = vpop.f32.mrb[14].mxu0 }
 0x61b   : > { %v2840_v24 = vpop.f32.mrb[15].mxu0 }
 0x61d   : > { %2232 = vrot.lane.b32.xlu1 %v515_v5, %s3089_s23 }
 0x68b   : > { %v2214_v12 = vpop.permute.xlu1 %2213 }
 0x68c   : > { %v2217_v48 = vadd.f32 %v2214_v12, %v2148_v39  ;;  %v2216_v30 = vadd.f32 %v2214_v12, %v2147_v51 }
 0x68e   : > { %2959 = vtanh.f32 %v2217_v48  ;;  %v2536_v17 = vmul.f32 -1.442695, %v2216_v30  ;;  %v2537_v19 = vmul.f32 -1.442695, %v2217_v48 }
 0x68f   : > { %v2233_v20 = vpop.permute.xlu1 %2232 }
 0x690   : > { %2961 = vpow2.f32 %v2536_v17 }
 0x698   : > { %v2960_v3 = vpop.eup %2959 }
 0x699   : > { %2237 = vrot.lane.b32.xlu0 %v2960_v3, %s3090_s24 }
 0x69a   : > { %v2962_v53 = vpop.eup %2961 }
 0x69b   : > { %v2221_v18 = vadd.f32 1.0, %v2962_v53 }
 0x69d   : > { %2963 = vrcp.f32 %v2221_v18 }
 0x6a7   : > { %v2964_v46 = vpop.eup %2963 }
 0x6a8   : > { %v2235_v36 = vmul.f32 %v2964_v46, %v2233_v20 }
 0x70b   : > { %v2238_v58 = vpop.permute.xlu0 %2237 }
 0x70c   : > { %v2240_v26 = vmul.f32 %v2964_v46, %v2238_v58 }
 0x70e   : > { %2242 = vrot.lane.b32.xlu0 %v2240_v26, %s4146_s19 }
 0x780   : > { %v2243_v59 = vpop.permute.xlu0 %2242 }
 0x781   : > { %v2245_v38 = vadd.f32 %v2243_v59, %v2235_v36 }
 0x783   : > { %2965 = vtanh.f32 %v2245_v38 }
 0x784   : > { %2967 = vpow2.f32 %v2537_v19 }
 0x78d   : > { %v2966_v13 = vpop.eup %2965 }
 0x78e   : > { %2248 = vrot.lane.b32.xlu1 %v2966_v13, %s3090_s24  ;;  %v2968_v60 = vpop.eup %2967  ;;  %s2972_s24 = scalar_lea.vmem %s4046_s16, 64 }
 0x78f   : > { %v2228_v41 = vadd.f32 1.0, %v2968_v60  ;;  %p2973_p13 = scmp.ne.s32.totalorder %s4046_s16, %s2972_s24  ;;  %p2980_p3 = scmp.lt.s32.totalorder %s2978_s13, %s2972_s24 }
 0x791   : > { %2969 = vrcp.f32 %v2228_v41  ;;  %p2974_p0 = pnand %p2973_p13, %p3194_p4  ;;  %p2981_p5 = por %p2980_p3, %p2979_p2 }
 0x793   : > { %p2975_p1 = pneg %p2974_p0 }
 0x795   : > { %p2982_p6 = pnand %p2981_p5, %p2975_p1 }
 0x79b   : > { %v2970_v63 = vpop.eup %2969 }
 0x800   : > { %v2249_v29 = vpop.permute.xlu1 %2248 }
 0x801   : > { %v2251_v49 = vmul.f32 %v2970_v63, %v2249_v29 }
 0x803   : > { %v2263_v7 = vpack.c.bf16 %v2251_v49, %v2251_v49  ;;  %2253 = vrot.lane.b32.xlu1 %v2251_v49, %s3089_s23 }
 0x804   : > { %2985 = shalt.err (!%p2982_p6)
}
 0x805   : > { %s2986_s14 = scalar_lea.hbm %s4044_s28, 64  ;;  %s2990_s25 = scalar_lea.hbm %s4140_s11, 512 }
 0x806   : > { %p2987_p7 = scmp.ne.s32.totalorder %s4044_s28, %s2986_s14  ;;  %p2991_p11 = scmp.lt.u32.totalorder %s4044_s28, %s4140_s11 }
 0x807   : > { %p2992_p12 = scmp.lt.u32.totalorder %s2990_s25, %s2986_s14  ;;  %p2994_p0 = scmp.lt.u32.totalorder %s2986_s14, %s4044_s28 }
 0x808   : > { %p2988_p9 = pnand %p2987_p7, %p3194_p4 }
 0x809   : > { %p2993_p13 = por %p2992_p12, %p2991_p11 }
 0x80a   : > { %p2989_p10 = pneg %p2988_p9 }
 0x80b   : > { %p2995_p1 = por %p2994_p0, %p2993_p13 }
 0x80d   : > { %p2996_p2 = pnand %p2995_p1, %p2989_p10 }
 0x80f   : > { %2999 = shalt.err (!%p2996_p2)
}
 0x810   : > { %2842 = dma.vmem_to_hbm [thread:$0]  (%p3194_p4), %s4046_s16, 64, %s4044_s28, %s2284_s18   ;;  %v2271_v10 = vrot.slane %v2263_v7, %v2270_v1  ;;  %vm2256_vm8 = vcmask 257024   ;;  %vm2275_vm9 = vcmask 254976  }
 0x811   : > { %s4156_s19 = smov 32   ;;  %s2540_s24 = sshll.u32 %s3074_s20, 5 }
 0x812   : > { %2272 = vrot.lane.b32.xlu0 %v2271_v10, %s3089_s23  ;;  %s2298_s13 = sshll.u32 %s3221_s26, 4  ;;  %s4079_s30 = scalar_lea.hbm %s4139_s10, %s2540_s24  ;;  %s4081_s13 = int_to_ptr.vmem [resolvable:$true] %s2298_s13 }
 0x813   : > { %s2279_s23 = scalar_lea.sflag [#allocation5], %s3210_s12  ;;  %s3000_s16 = scalar_lea.vmem %s4081_s13, 32 }
 0x814   : > { %p3001_p3 = scmp.ne.s32.totalorder %s4081_s13, %s3000_s16  ;;  %s3093_s20 = smov [#allocation4]  }
 0x815   : > { %s3004_s28 = sshll.u32 %s3093_s20, 4  ;;  %s3005_s28 = int_to_ptr.vmem [resolvable:$false] %s3004_s28 }
 0x816   : > { %2259 = vrot.lane.b32.xlu0 %v2245_v38, %s4156_s19  ;;  %p3002_p5 = pnand %p3001_p3, %p3194_p4  ;;  %s3006_s18 = scalar_lea.vmem %s3005_s28, 64 }
 0x817   : > { %p3007_p7 = scmp.lt.s32.totalorder %s4081_s13, %s3005_s28  ;;  %p3008_p9 = scmp.lt.s32.totalorder %s3006_s18, %s3000_s16 }
 0x818   : > { %p3003_p6 = pneg %p3002_p5 }
 0x819   : > { %p3009_p10 = por %p3008_p9, %p3007_p7 }
 0x81b   : > { %p3010_p11 = pnand %p3009_p10, %p3003_p6 }
 0x875   : > { %v2254_v42 = vpop.permute.xlu1 %2253 }
 0x876   : > { %2257 = vst.msk [vmem:[#allocation2] sm:$0xf] %vm2256_vm8, %v2254_v42 }
 0x884   : > { %v2273_v2 = vpop.permute.xlu0 %2272 }
 0x885   : > { %2276 = vst.msk [vmem:[%s3221_s26] sm:$0x3] %vm2275_vm9, %v2273_v2 }
 0x886   : > { %3013 = shalt.err (!%p3010_p11)
}
 0x887   : > { %s3014_s12 = scalar_lea.hbm %s4079_s30, 32  ;;  %s3018_s15 = scalar_lea.hbm %s4139_s10, 256 }
 0x888   : > { %p3015_p12 = scmp.ne.s32.totalorder %s4079_s30, %s3014_s12  ;;  %p3019_p1 = scmp.lt.u32.totalorder %s4079_s30, %s4139_s10 }
 0x889   : > { %p3020_p2 = scmp.lt.u32.totalorder %s3018_s15, %s3014_s12  ;;  %p3022_p5 = scmp.lt.u32.totalorder %s3014_s12, %s4079_s30 }
 0x88a   : > { %p3016_p13 = pnand %p3015_p12, %p3194_p4 }
 0x88b   : > { %p3021_p3 = por %p3020_p2, %p3019_p1 }
 0x88c   : > { %p3017_p0 = pneg %p3016_p13 }
 0x88d   : > { %p3023_p6 = por %p3022_p5, %p3021_p3 }
 0x88f   : > { %p3024_p7 = pnand %p3023_p6, %p3017_p0 }
 0x891   : > { %3027 = shalt.err (!%p3024_p7)
}
 0x892   : > { %2841 = dma.vmem_to_hbm [thread:$0]  (%p3194_p4), %s4081_s13, 32, %s4079_s30, %s2279_s23   ;;  %v2260_v47 = vpop.permute.xlu0 %2259 }
 0x893   : > { %2262 = vst.msk [vmem:[#allocation3] sm:$0xf] %vm2256_vm8, %v2260_v47 }
 0x894 PF: > { %p2852_p9 = scmp.ge.s32.totalorder %s3082_s22, 2  ;;  %s2324_s14 = sand.u32 1, %s3062_s17  }
 0x895   : > { %s2325_s21 = scalar_lea.sflag [#allocation5], %s2324_s14 }
 0x896   : > { %p2846_p10 = pnand %p2852_p9, %p3201_p8 }
 0x898   : > { %3053 = dma.done.wait (!%p2846_p10), %s2325_s21, 32  }
 0x899   : > { %3055 = vsyncadd (!%p2846_p10), %s2325_s21, 4294967264  ;;  %s2334_s16 = scalar_lea.sflag [#allocation7], %s2324_s14 }
 0x89a   : > { %3057 = dma.done.wait (!%p2846_p10), %s2334_s16, 64  }
 0x89b   : > { %3059 = vsyncadd (!%p2846_p10), %s2334_s16, 4294967232  ;;  %s28_s22 = sadd.s32 1, %s3082_s22   ;;  %s4157_s17 = sld [smem:[#allocation10_spill]] }
 0x89c   : > { %p25_p4 = scmp.ge.s32.totalorder %s28_s22, 10   ;;  %s4158_s18 = sld [smem:[#allocation11_spill]] }
 0x89d   : > { %s4159_s19 = sld [smem:[#allocation14_spill]]  ;;  %s4160_s20 = sld [smem:[#allocation12_spill]] }
 0x89e   : > { %s4161_s21 = sld [smem:[#allocation13_spill]]  ;;  %27 = sbr.rel (!%p25_p4) target bundleno = 6 (0x6), region = 128 }
 0x8a5   :  { %2339 = vsyncpa [#allocation5], 1 }
 0x8a6   :  { %2341 = vsyncpa [#allocation5 + $0x1], 1 }
 0x8a7   :  { %2342 = vsyncpa [#allocation7], 1 }
 0x8a8   :  { %2344 = vsyncpa [#allocation7 + $0x1], 1 }

// kernel: tpu_custom_call.1
= control target key start
LH: loop header
LB: loop body
LE: loop exit
PB: predicated region body
PF: predicated region fallthrough
CT: control target
= control target key end

     0   :  { %17 = vsyncpa [#allocation5], 0  ;;  %s4129_s0 = inlined_call_operand.vmem [shape: bf16[4,128,32], index: 0, kind: input, shape index: {}]   ;;  %s4130_s1 = inlined_call_operand.vmem [shape: bf16[4,128,32], index: 1, kind: input, shape index: {}]   ;;  %s4131_s2 = inlined_call_operand.vmem [shape: bf16[8,4,32], index: 2, kind: input, shape index: {}]   ;;  %s4132_s3 = inlined_call_operand.vmem [shape: f32[4,32], index: 3, kind: input, shape index: {}]   ;;  %s4133_s4 = inlined_call_operand.vmem [shape: f32[4,32], index: 4, kind: input, shape index: {}]   ;;  %s4134_s5 = inlined_call_operand.vmem [shape: bf16[32,192], index: 5, kind: input, shape index: {}]   ;;  %s4135_s6 = inlined_call_operand.vmem [shape: f32[1,192], index: 6, kind: input, shape index: {}]   ;;  %s4136_s7 = inlined_call_operand.vmem [shape: f32[1,32], index: 7, kind: input, shape index: {}]   ;;  %s4137_s8 = inlined_call_operand.vmem [shape: bf16[32,128], index: 8, kind: input, shape index: {}]   ;;  %s4138_s9 = inlined_call_operand.vmem [shape: bf16[32,128], index: 9, kind: input, shape index: {}]   ;;  %s4139_s10 = inlined_call_operand.hbm [shape: bf16[8,4,32], index: 10, kind: output, shape index: {0}]   ;;  %s4140_s11 = inlined_call_operand.hbm [shape: f32[8,4,128], index: 11, kind: output, shape index: {1}]  }
   0x1   :  { %19 = vsyncpa [#allocation5 + $0x1], 0 }
   0x2   :  { %20 = vsyncpa [#allocation7], 0 }
   0x3   :  { %22 = vsyncpa [#allocation7 + $0x1], 0  ;;  %s3154_s17 = smov 0   ;;  %s3156_s18 = smov 0  }
   0x4   :  { %s3158_s19 = smov 0   ;;  %s3160_s20 = smov 0  }
   0x5   :  { %s3162_s21 = smov 0   ;;  %s3164_s22 = smov 0  }
   0x6 LB: > { %4147 = sst [smem:[#allocation10_spill]] %s3066_s18  ;;  %s2476_s23 = sadd.s32 4294967295, %s3082_s22   ;;  %s3082_s22 = sphi %s3164_s22, %s28_s22   ;;  %s3078_s21 = sphi %s3162_s21, %s4161_s21   ;;  %s3074_s20 = sphi %s3160_s20, %s4160_s20   ;;  %s3070_s19 = sphi %s3158_s19, %s4159_s19   ;;  %s3066_s18 = sphi %s3156_s18, %s4158_s18   ;;  %s3062_s17 = sphi %s3154_s17, %s4157_s17  }
   0x7   : > { %4148 = sst [smem:[#allocation11_spill]] %s3070_s19  ;;  %s2477_s24 = sadd.s32 4294967294, %s3082_s22  }
   0x8   : > { %4149 = sst [smem:[#allocation12_spill]] %s3078_s21  ;;  %s37_s25 = sadd.s32 1, %s3078_s21 }
   0x9   : > { %s286_s26 = sadd.s32 1, %s3070_s19  ;;  %p38_p0 = scmp.ge.s32.totalorder %s37_s25, 8 }
   0xa   : > { %p296_p1 = scmp.ne.s32.totalorder %s3070_s19, %s3066_s18  ;;  %p297_p2 = scmp.eq.s32.totalorder %s2476_s23, 7 }
   0xb   : > { %p302_p3 = scmp.ne.s32.totalorder %s3066_s18, %s3062_s17  ;;  %s4163_s25 = smov (%p38_p0, %s37_s25), 0 }
   0xc   : > { %4150 = sst [smem:[#allocation13_spill]] %s4163_s25  ;;  %p3194_p4 = por %p297_p2, %p296_p1 }
   0xd   : > { %p303_p5 = scmp.eq.s32.totalorder %s2477_s24, 7  ;;  %s281_s28 = ssub.s32 %s3078_s21, %s4163_s25 }
   0xe   : > { %p2484_p6 = scmp.ge.s32.totalorder %s3082_s22, 1  ;;  %p284_p7 = scmp.eq.s32.totalorder %s281_s28, 0 }
   0xf   : > { %p3201_p8 = por %p303_p5, %p302_p3  ;;  %p408_p9 = scmp.lt.s32.totalorder %s3082_s22, 9 }
  0x10   : > { %s3207_s30 = scalar_select %p284_p7, %s3070_s19, %s286_s26  }
  0x11   : > { %p409_p10 = pnand %p2484_p6, %p408_p9 }
  0x12   : > { %4153 = sst [smem:[#allocation14_spill]] %s3207_s30  ;;  %s3210_s12 = sand.u32 (!%p409_p10), 1, %s3066_s18  }
  0x13   : > { %412 = sbr.rel (%p409_p10) target bundleno = 2196 (0x894), region = 60  ;;  %p489_p11 = scmp.lt.s32.totalorder (!%p409_p10), %s3074_s20, 7 }
  0x14   : > { %s2485_s13 = sshll.u32 (!%p409_p10), %s3210_s12, 1  ;;  %s2486_s14 = sshll.u32 (!%p409_p10), %s3210_s12, 2 }
  0x15   : > { %s3221_s26 = scalar_lea.vmem (!%p409_p10), [#allocation4], %s2485_s13  ;;  %s3223_s25 = scalar_lea.vmem (!%p409_p10), [#allocation6], %s2486_s14 }
  0x16   : > { %p2488_p12 = scmp.ne.s32.totalorder (!%p409_p10), %s3074_s20, 0 }
  0x1a   : > { %s490_s15 = scalar_select %p489_p11, %s3074_s20, 7 }
  0x1b   : > { %508 = sbr.rel (%p2488_p12) target bundleno = 34 (0x22), region = 64  ;;  %v509_v0 = vld [vmem:[%s4132_s3] sm:$0xf] (!%p2488_p12)  ;;  %vm510_vm0 = vcmask (!%p2488_p12), 257024  }
  0x1c   : > { %s2487_s16 = sshll.u32 %s490_s15, 1  ;;  %v512_v1 = vld [vmem:[%s4133_s4] sm:$0xf] (!%p2488_p12)  ;;  %511 = vst.msk [vmem:[#allocation2] sm:$0xf] (!%p2488_p12), %vm510_vm0, %v509_v0 }
  0x1d   : > { %s3219_s28 = scalar_lea.vmem %s4131_s2, %s2487_s16  ;;  %513 = vst.msk [vmem:[#allocation3] sm:$0xf] (!%p2488_p12), %vm510_vm0, %v512_v1 }
  0x22 PF: > { %v2909_v2 = vld [vmem:[%s4134_s5 + $0x4] ss:$8 sps:$4 sm:$0xff]   ;;  %v2911_v3 = vld [vmem:[%s4134_s5] ss:$8 sps:$4 sm:$0xff]   ;;  %v3084_v4 = vmov 0   ;;  %vm4145_vm1 = vcmask 261120   ;;  %v523_v9 = vlaneseq }
  0x23   : > { %589 = vmatprep.mubr.bf16.mxu0 %v3084_v4  ;;  %557 = vmatprep.subr.bf16.mxu0 %v2909_v2  ;;  %v2912_v5 = vld [vmem:[%s4134_s5 + $0x14] ss:$8 sps:$4 sm:$0xff]   ;;  %v2914_v6 = vld [vmem:[%s4134_s5 + $0x10] ss:$8 sps:$4 sm:$0xff]   ;;  %v514_v7 = vld [vmem:[#allocation2] sm:$0xf] }
  0x24   : > { %558 = vmatpush1.bf16.msra.mxu0 %v2911_v3  ;;  %v516_v8 = vpack.c.bf16 %v514_v7, %v514_v7  ;;  %v3246_v10 = vshrl.u32 %v523_v9, 7  ;;  %v3085_v11 = vmov 1966171168   ;;  %v521_v14 = vld [vmem:[%s4135_s6] sm:$0x3]  ;;  %v2673_v22 = vld [vmem:[%s4130_s1 + $0x10] sm:$0xff]  }
  0x25   : > { %559 = vmatprep.subr.bf16.mxu0 %v2912_v5  ;;  %v734_v12 = vunpack.c.l.s4 %v3085_v11  ;;  %v2545_v25 = vld [vmem:[%s4130_s1] sm:$0xff]   ;;  %v2674_v26 = vld [vmem:[%s4130_s1 + $0x18] sm:$0xff]   ;;  %v2554_v28 = vunpack.c.l.bf16 %v2673_v22  ;;  %v2672_v29 = vld [vmem:[%s4130_s1 + $0x8] sm:$0xff]   ;;  %v2555_v31 = vunpack.c.h.bf16 %v2673_v22  ;;  %vm1244_vm2 = vcmask 130112   ;;  %s4146_s19 = smov 32   ;;  %s3089_s23 = smov 96  }
  0x26   : > { %v3249_v13 = vsub.s32 0, %v3246_v10  ;;  %v2546_v30 = vunpack.c.l.bf16 %v2545_v25  ;;  %v2547_v32 = vunpack.c.h.bf16 %v2545_v25  ;;  %v2558_v34 = vunpack.c.l.bf16 %v2674_v26  ;;  %v3284_v38 = vld [vmem:[%s4136_s7] ss:$0 sm:$0xff]  ;;  %v3311_v62 = vld [vmem:[%s4130_s1 + $0x88] sm:$0xff]   ;;  %s3090_s24 = smov 64   ;;  %s2541_s14 = sshll.u32 %s3074_s20, 6 }
  0x27   : > { %v735_v15 = vunpack.c.0.s8 %v734_v12  ;;  %v2550_v35 = vunpack.c.l.bf16 %v2672_v29  ;;  %v2675_v42 = vld [vmem:[%s4130_s1 + $0x20] sm:$0xff]   ;;  %v2559_v45 = vunpack.c.h.bf16 %v2674_v26  ;;  %v2551_v46 = vunpack.c.h.bf16 %v2672_v29  ;;  %v2676_v12 = vld [vmem:[%s4130_s1 + $0x28] sm:$0xff]   ;;  %s2312_s16 = sshll.u32 %s3223_s25, 4  ;;  %s2284_s18 = scalar_lea.sflag [#allocation7], %s3210_s12  ;;  %s4046_s16 = int_to_ptr.vmem [resolvable:$true] %s2312_s16 }
  0x28   : > { %560 = vmatpush1.bf16.msra.mxu0 %v2914_v6  ;;  %v526_v16 = vrot.slane %v521_v14, %v3249_v13  ;;  %v3296_v47 = vld [vmem:[%s4130_s1 + $0x80] sm:$0xff]   ;;  %v2562_v53 = vunpack.c.l.bf16 %v2675_v42  ;;  %v2563_v4 = vunpack.c.h.bf16 %v2675_v42  ;;  %v2614_v5 = vunpack.c.l.bf16 %v3311_v62  ;;  %v2681_v14 = vld [vmem:[%s4130_s1 + $0x50] sm:$0xff]  }
  0x29   : > { %v3256_v17 = vsub.s32 %v735_v15, %v3246_v10  ;;  %v2610_v57 = vunpack.c.l.bf16 %v3296_v47  ;;  %vm1251_vm3 = vcmask 195712   ;;  %vm1258_vm4 = vcmask 261312  }
  0x2a   : > { %vm1265_vm5 = vcmask 326912   ;;  %vm1272_vm6 = vcmask 392512   ;;  %vm1279_vm7 = vcmask 458112   ;;  %vm1286_vm8 = vcmask 523712  }
  0x2b   : > { %2493 = vmatmul.mubr.msk.bf16.vlgmr.msra.gmra.mrb[0].mxu0 %vm4145_vm1, %v516_v8  ;;  %vm1293_vm9 = vcmask 589312   ;;  %vm1300_vm10 = vcmask 654912   ;;  %vm1307_vm11 = vcmask 720512   ;;  %vm1314_vm12 = vcmask 786112  }
  0x2c   : > { %vm1321_vm13 = vcmask 851712   ;;  %vm1328_vm14 = vcmask 917312   ;;  %vm1335_vm15 = vcmask 982912   ;;  %vm1342_vm0 = vcmask 1048512  }
  0xfe   : > { %v591_v18 = vpop.f32.mrb[0].mxu0 }
  0xff   : > { %v3258_v19 = vadd.f32 %v591_v18, %v526_v16  ;;  %v3260_v20 = vpop.f32.mrb[1].mxu0 }
 0x100   : > { %v595_v21 = vpop.f32.mrb[2].mxu0 }
 0x101   : > { %v739_v23 = vrot.slane %v3258_v19, %v3256_v17  ;;  %v596_v24 = vpop.f32.mrb[3].mxu0 }
 0x102   : > { %v2586_v24 = vunpack.c.l.bf16 %v2681_v14 }
 0x103   : > { %v747_v27 = vrot.slane %v739_v23, %v3256_v17  ;;  %v740_v54 = vcombine.high %v739_v23, %v739_v23  ;;  %v2566_v23 = vunpack.c.l.bf16 %v2676_v12 }
 0x105   : > { %v3278_v33 = vrot.slane %v747_v27, %v3249_v13  ;;  %v755_v37 = vcombine.high %v747_v27, %v747_v27  ;;  %v3317_v3 = vrot.slane %v740_v54, %v3256_v17 }
 0x107   : > { %v781_v36 = vadd.f32 %v2554_v28, %v3278_v33  ;;  %v777_v39 = vadd.f32 %v2546_v30, %v3278_v33  ;;  %v782_v40 = vadd.f32 %v2555_v31, %v3278_v33  ;;  %v778_v41 = vadd.f32 %v2547_v32, %v3278_v33 }
 0x108   : > { %v783_v44 = vadd.f32 %v2558_v34, %v3278_v33  ;;  %v779_v51 = vadd.f32 %v2550_v35, %v3278_v33  ;;  %v3301_v55 = vrot.slane %v755_v37, %v3249_v13  ;;  %v784_v61 = vadd.f32 %v2559_v45, %v3278_v33 }
 0x109   : > { %v845_v43 = vmax.f32 %v781_v36, 0.0  ;;  %v841_v48 = vmax.f32 %v777_v39, 0.0  ;;  %v846_v49 = vmax.f32 %v782_v40, 0.0  ;;  %v842_v50 = vmax.f32 %v778_v41, 0.0  ;;  %v2677_v41 = vld [vmem:[%s4130_s1 + $0x30] sm:$0xff]  }
 0x10a   : > { %v847_v60 = vmax.f32 %v783_v44, 0.0  ;;  %v843_v1 = vmax.f32 %v779_v51, 0.0  ;;  %v780_v2 = vadd.f32 %v2551_v46, %v3278_v33  ;;  %v848_v8 = vmax.f32 %v784_v61, 0.0  ;;  %v2682_v46 = vld [vmem:[%s4130_s1 + $0x58] sm:$0xff]  }
 0x10b   : > { %v916_v52 = vmul.f32 %v3284_v38, %v845_v43  ;;  %v912_v56 = vmul.f32 %v3284_v38, %v841_v48  ;;  %v917_v59 = vmul.f32 %v3284_v38, %v846_v49  ;;  %v913_v0 = vmul.f32 %v3284_v38, %v842_v50  ;;  %v3363_v61 = vld [vmem:[%s4130_s1 + $0x38] sm:$0xff]  }
 0x10c   : > { %v918_v7 = vmul.f32 %v3284_v38, %v847_v60  ;;  %v785_v11 = vadd.f32 %v2562_v53, %v3278_v33  ;;  %v914_v16 = vmul.f32 %v3284_v38, %v843_v1  ;;  %v844_v18 = vmax.f32 %v780_v2, 0.0 }
 0x10d   : > { %v988_v58 = vsel %vm4145_vm1, %v916_v52, 0.0  ;;  %v976_v63 = vsel %vm4145_vm1, %v912_v56, 0.0  ;;  %v991_v6 = vsel %vm4145_vm1, %v917_v59, 0.0  ;;  %v979_v15 = vsel %vm4145_vm1, %v913_v0, 0.0 }
 0x10e   : > { %989 = vadd.xlane.f32.xlu1 %v988_v58  ;;  %977 = vadd.xlane.f32.xlu0 %v976_v63  ;;  %v809_v21 = vadd.f32 %v2610_v57, %v3301_v55  ;;  %v3334_v22 = vrot.slane %v3317_v3, %v3249_v13  ;;  %v994_v25 = vsel %vm4145_vm1, %v918_v7, 0.0  ;;  %v919_v26 = vmul.f32 %v3284_v38, %v848_v8 }
 0x10f   : > { %v849_v27 = vmax.f32 %v785_v11, 0.0  ;;  %v786_v28 = vadd.f32 %v2563_v4, %v3278_v33  ;;  %v982_v29 = vsel %vm4145_vm1, %v914_v16, 0.0  ;;  %v915_v30 = vmul.f32 %v3284_v38, %v844_v18  ;;  %v2683_v4 = vld [vmem:[%s4130_s1 + $0x60] sm:$0xff]  }
 0x110   : > { %v873_v31 = vmax.f32 %v809_v21, 0.0  ;;  %v811_v32 = vadd.f32 %v2614_v5, %v3301_v55  ;;  %v2567_v34 = vunpack.c.h.bf16 %v2676_v12  ;;  %v2587_v35 = vunpack.c.h.bf16 %v2681_v14 }
 0x111   : > { %v997_v36 = vsel %vm4145_vm1, %v919_v26, 0.0  ;;  %v920_v37 = vmul.f32 %v3284_v38, %v849_v27  ;;  %v850_v39 = vmax.f32 %v786_v28, 0.0  ;;  %v787_v40 = vadd.f32 %v2566_v23, %v3278_v33  ;;  %v2679_v23 = vld [vmem:[%s4130_s1 + $0x40] sm:$0xff]  }
 0x112   : > { %992 = vadd.xlane.f32.xlu1 %v991_v6  ;;  %980 = vadd.xlane.f32.xlu0 %v979_v15  ;;  %v985_v42 = vsel %vm4145_vm1, %v915_v30, 0.0  ;;  %v944_v43 = vmul.f32 %v3284_v38, %v873_v31  ;;  %v875_v44 = vmax.f32 %v811_v32, 0.0  ;;  %v797_v45 = vadd.f32 %v2586_v24, %v3334_v22 }
 0x113   : > { %v788_v48 = vadd.f32 %v2567_v34, %v3278_v33  ;;  %v2570_v49 = vunpack.c.l.bf16 %v2677_v41  ;;  %v1000_v50 = vsel %vm4145_vm1, %v920_v37, 0.0  ;;  %v921_v51 = vmul.f32 %v3284_v38, %v850_v39  ;;  %v3396_v37 = vld [vmem:[%s4130_s1 + $0x98] sm:$0xff]   ;;  %v2691_v39 = vld [vmem:[%s4130_s1 + $0xa0] sm:$0xff]  }
 0x114   : > { %v851_v52 = vmax.f32 %v787_v40, 0.0  ;;  %v2590_v53 = vunpack.c.l.bf16 %v2682_v46  ;;  %v1072_v54 = vsel %vm4145_vm1, %v944_v43, 0.0  ;;  %v946_v56 = vmul.f32 %v3284_v38, %v875_v44 }
 0x115   : > { %v861_v57 = vmax.f32 %v797_v45, 0.0  ;;  %v798_v58 = vadd.f32 %v2587_v35, %v3334_v22  ;;  %v852_v59 = vmax.f32 %v788_v48, 0.0  ;;  %v2571_v60 = vunpack.c.h.bf16 %v2677_v41  ;;  %v3409_v48 = vld [vmem:[%s4130_s1 + $0x48] sm:$0xff]  }
 0x116   : > { %995 = vadd.xlane.f32.xlu1 %v994_v25  ;;  %983 = vadd.xlane.f32.xlu0 %v982_v29  ;;  %v1003_v63 = vsel %vm4145_vm1, %v921_v51, 0.0  ;;  %v922_v0 = vmul.f32 %v3284_v38, %v851_v52  ;;  %v789_v1 = vadd.f32 %v2570_v49, %v3278_v33  ;;  %v2591_v2 = vunpack.c.h.bf16 %v2682_v46  ;;  %v3388_v29 = vld [vmem:[%s4130_s1 + $0x68] sm:$0xff]   ;;  %v3414_v49 = vld [vmem:[%s4130_s1 + $0x70] sm:$0xff]  }
 0x117   : > { %v1078_v5 = vsel %vm4145_vm1, %v946_v56, 0.0  ;;  %v932_v6 = vmul.f32 %v3284_v38, %v861_v57  ;;  %v862_v7 = vmax.f32 %v798_v58, 0.0  ;;  %v799_v8 = vadd.f32 %v2590_v53, %v3334_v22 }
 0x118   : > { %v2574_v11 = vunpack.c.l.bf16 %v3363_v61  ;;  %v923_v12 = vmul.f32 %v3284_v38, %v852_v59  ;;  %v2594_v14 = vunpack.c.l.bf16 %v2683_v4  ;;  %v1006_v15 = vsel %vm4145_vm1, %v922_v0, 0.0 }
 0x119   : > { %v853_v16 = vmax.f32 %v789_v1, 0.0  ;;  %v790_v18 = vadd.f32 %v2571_v60, %v3278_v33  ;;  %v800_v21 = vadd.f32 %v2591_v2, %v3334_v22  ;;  %v1036_v24 = vsel %vm4145_vm1, %v932_v6, 0.0 }
 0x11a   : > { %998 = vadd.xlane.f32.xlu1 %v997_v36  ;;  %986 = vadd.xlane.f32.xlu0 %v985_v42  ;;  %v933_v25 = vmul.f32 %v3284_v38, %v862_v7  ;;  %v863_v26 = vmax.f32 %v799_v8, 0.0  ;;  %v791_v27 = vadd.f32 %v2574_v11, %v3278_v33  ;;  %v2595_v28 = vunpack.c.h.bf16 %v2683_v4 }
 0x11b   : > { %v801_v30 = vadd.f32 %v2594_v14, %v3334_v22  ;;  %v2578_v31 = vunpack.c.l.bf16 %v2679_v23  ;;  %v1009_v32 = vsel %vm4145_vm1, %v923_v12, 0.0  ;;  %v924_v34 = vmul.f32 %v3284_v38, %v853_v16  ;;  %v2693_v14 = vld [vmem:[%s4130_s1 + $0xb0] sm:$0xff]  }
 0x11c   : > { %v854_v35 = vmax.f32 %v790_v18, 0.0  ;;  %v864_v36 = vmax.f32 %v800_v21, 0.0  ;;  %v1039_v40 = vsel %vm4145_vm1, %v933_v25, 0.0  ;;  %v934_v41 = vmul.f32 %v3284_v38, %v863_v26 }
 0x11d   : > { %v2598_v42 = vunpack.c.l.bf16 %v3388_v29  ;;  %v855_v43 = vmax.f32 %v791_v27, 0.0  ;;  %v802_v44 = vadd.f32 %v2595_v28, %v3334_v22  ;;  %v2579_v45 = vunpack.c.h.bf16 %v2679_v23 }
 0x11e   : > { %1001 = vadd.xlane.f32.xlu1 %v1000_v50  ;;  %1073 = vadd.xlane.f32.xlu0 %v1072_v54  ;;  %v2599_v46 = vunpack.c.h.bf16 %v3388_v29  ;;  %v2692_v50 = vld [vmem:[%s4130_s1 + $0xa8] sm:$0xff]   ;;  %v865_v51 = vmax.f32 %v801_v30, 0.0  ;;  %v793_v52 = vadd.f32 %v2578_v31, %v3334_v22  ;;  %v2623_v53 = vunpack.c.h.bf16 %v3396_v37 }
 0x11f   : > { %v2626_v54 = vunpack.c.l.bf16 %v2691_v39  ;;  %v1012_v56 = vsel %vm4145_vm1, %v924_v34, 0.0  ;;  %v925_v57 = vmul.f32 %v3284_v38, %v854_v35  ;;  %v935_v58 = vmul.f32 %v3284_v38, %v864_v36 }
 0x120   : > { %v2627_v59 = vunpack.c.h.bf16 %v2691_v39  ;;  %v1042_v60 = vsel %vm4145_vm1, %v934_v41, 0.0  ;;  %v2602_v0 = vunpack.c.l.bf16 %v3414_v49  ;;  %v2630_v1 = vunpack.c.l.bf16 %v2692_v50 }
 0x121   : > { %v926_v2 = vmul.f32 %v3284_v38, %v855_v43  ;;  %v866_v4 = vmax.f32 %v802_v44, 0.0  ;;  %v2631_v6 = vunpack.c.h.bf16 %v2692_v50  ;;  %v936_v7 = vmul.f32 %v3284_v38, %v865_v51 }
 0x122   : > { %1004 = vadd.xlane.f32.xlu1 %v1003_v63  ;;  %1079 = vadd.xlane.f32.xlu0 %v1078_v5  ;;  %v2582_v63 = vunpack.c.l.bf16 %v3409_v48  ;;  %v2611_v5 = vunpack.c.h.bf16 %v3296_v47  ;;  %v857_v8 = vmax.f32 %v793_v52, 0.0  ;;  %v816_v11 = vadd.f32 %v2623_v53, %v3301_v55 }
 0x123   : > { %v817_v12 = vadd.f32 %v2626_v54, %v3301_v55  ;;  %v1045_v16 = vsel %vm4145_vm1, %v935_v58, 0.0  ;;  %v794_v18 = vadd.f32 %v2579_v45, %v3334_v22  ;;  %v818_v47 = vadd.f32 %v2627_v59, %v3301_v55 }
 0x124   : > { %v803_v21 = vadd.f32 %v2598_v42, %v3334_v22  ;;  %v880_v23 = vmax.f32 %v816_v11, 0.0  ;;  %v819_v25 = vadd.f32 %v2630_v1, %v3301_v55  ;;  %v937_v26 = vmul.f32 %v3284_v38, %v866_v4  ;;  %v2686_v4 = vld [vmem:[%s4130_s1 + $0x78] sm:$0xff]   ;;  %v2689_v11 = vld [vmem:[%s4130_s1 + $0x90] sm:$0xff]  }
 0x125   : > { %v882_v27 = vmax.f32 %v818_v47, 0.0  ;;  %v2634_v28 = vunpack.c.l.bf16 %v2693_v14  ;;  %v2635_v29 = vunpack.c.h.bf16 %v2693_v14  ;;  %v928_v30 = vmul.f32 %v3284_v38, %v857_v8 }
 0x126   : > { %1007 = vadd.xlane.f32.xlu1 %v1006_v15  ;;  %1037 = vadd.xlane.f32.xlu0 %v1036_v24  ;;  %v1015_v15 = vsel %vm4145_vm1, %v925_v57, 0.0  ;;  %v881_v24 = vmax.f32 %v817_v12, 0.0  ;;  %v3444_v31 = vmul.f32 %v3284_v38, %v880_v23  ;;  %v883_v34 = vmax.f32 %v819_v25, 0.0  ;;  %v2694_v57 = vld [vmem:[%s4130_s1 + $0xb8] sm:$0xff]  }
 0x127   : > { %v1018_v35 = vsel %vm4145_vm1, %v926_v2, 0.0  ;;  %v858_v36 = vmax.f32 %v794_v18, 0.0  ;;  %v795_v39 = vadd.f32 %v2582_v63, %v3334_v22  ;;  %v1048_v41 = vsel %vm4145_vm1, %v936_v7, 0.0 }
 0x128   : > { %v867_v42 = vmax.f32 %v803_v21, 0.0  ;;  %v804_v43 = vadd.f32 %v2599_v46, %v3334_v22  ;;  %v3457_v44 = vmul.f32 %v3284_v38, %v883_v34  ;;  %v1051_v45 = vsel %vm4145_vm1, %v937_v26, 0.0  ;;  %v3502_v34 = vld [vmem:[%s4130_s1 + $0xc0] sm:$0xff]  }
 0x129   : > { %v2603_v50 = vunpack.c.h.bf16 %v3414_v49  ;;  %v2583_v51 = vunpack.c.h.bf16 %v3409_v48  ;;  %v2615_v52 = vunpack.c.h.bf16 %v3311_v62  ;;  %v1024_v53 = vsel %vm4145_vm1, %v928_v30, 0.0 }
 0x12a   : > { %1010 = vadd.xlane.f32.xlu1 %v1009_v32  ;;  %1040 = vadd.xlane.f32.xlu0 %v1039_v40  ;;  %v3447_v32 = vmul.f32 %v3284_v38, %v881_v24  ;;  %v3452_v40 = vmul.f32 %v3284_v38, %v882_v27  ;;  %v810_v54 = vadd.f32 %v2611_v5, %v3301_v55  ;;  %v859_v59 = vmax.f32 %v795_v39, 0.0 }
 0x12b   : > { %v821_v46 = vadd.f32 %v2634_v28, %v3301_v55  ;;  %v929_v58 = vmul.f32 %v3284_v38, %v858_v36  ;;  %v805_v49 = vadd.f32 %v2602_v0, %v3334_v22  ;;  %v822_v48 = vadd.f32 %v2635_v29, %v3301_v55 }
 0x12c   : > { %v938_v62 = vmul.f32 %v3284_v38, %v867_v42  ;;  %v806_v2 = vadd.f32 %v2603_v50, %v3334_v22  ;;  %v2638_v7 = vunpack.c.l.bf16 %v2694_v57  ;;  %v874_v0 = vmax.f32 %v810_v54, 0.0 }
 0x12d   : > { %v885_v1 = vmax.f32 %v821_v46, 0.0  ;;  %v886_v5 = vmax.f32 %v822_v48, 0.0  ;;  %v796_v8 = vadd.f32 %v2583_v51, %v3334_v22  ;;  %v2639_v18 = vunpack.c.h.bf16 %v2694_v57 }
 0x12e   : > { %1013 = vadd.xlane.f32.xlu1 %v1012_v56  ;;  %1043 = vadd.xlane.f32.xlu0 %v1042_v60  ;;  %v820_v56 = vadd.f32 %v2631_v6, %v3301_v55  ;;  %v868_v60 = vmax.f32 %v804_v43, 0.0  ;;  %v2575_v6 = vunpack.c.h.bf16 %v3363_v61  ;;  %v1054_v47 = vsel %vm4145_vm1, %v938_v62, 0.0 }
 0x12f   : > { %v3487_v14 = vmul.f32 %v3284_v38, %v885_v1  ;;  %v3492_v61 = vmul.f32 %v3284_v38, %v886_v5  ;;  %v869_v23 = vmax.f32 %v805_v49, 0.0  ;;  %v2606_v24 = vunpack.c.l.bf16 %v2686_v4  ;;  %v2696_v49 = vld [vmem:[%s4130_s1 + $0xc8] sm:$0xff]  }
 0x130   : > { %v884_v63 = vmax.f32 %v820_v56, 0.0  ;;  %v939_v21 = vmul.f32 %v3284_v38, %v868_v60  ;;  %v756_v25 = vcombine.high %v3317_v3, %v3317_v3  ;;  %v2607_v26 = vunpack.c.h.bf16 %v2686_v4 }
 0x131   : > { %v2618_v27 = vunpack.c.l.bf16 %v2689_v11  ;;  %v945_v28 = vmul.f32 %v3284_v38, %v874_v0  ;;  %v870_v29 = vmax.f32 %v806_v2, 0.0  ;;  %v860_v30 = vmax.f32 %v796_v8, 0.0 }
 0x132   : > { %1016 = vadd.xlane.f32.xlu1 %v1015_v15  ;;  %1046 = vadd.xlane.f32.xlu0 %v1045_v16  ;;  %v3484_v12 = vmul.f32 %v3284_v38, %v884_v63  ;;  %v1027_v15 = vsel %vm4145_vm1, %v929_v58, 0.0  ;;  %v930_v16 = vmul.f32 %v3284_v38, %v859_v59  ;;  %v812_v39 = vadd.f32 %v2615_v52, %v3301_v55 }
 0x133   : > { %v823_v3 = vadd.f32 %v2638_v7, %v3301_v55  ;;  %v1057_v42 = vsel %vm4145_vm1, %v939_v21, 0.0  ;;  %v940_v43 = vmul.f32 %v3284_v38, %v869_v23  ;;  %v2619_v51 = vunpack.c.h.bf16 %v2689_v11 }
 0x134   : > { %v1030_v36 = vsel %vm4145_vm1, %v930_v16, 0.0  ;;  %v3514_v52 = vrot.slane %v756_v25, %v3249_v13  ;;  %v1075_v56 = vsel %vm4145_vm1, %v945_v28, 0.0  ;;  %v931_v46 = vmul.f32 %v3284_v38, %v860_v30  ;;  %v2697_v28 = vld [vmem:[%s4130_s1 + $0xd0] sm:$0xff]  }
 0x135   : > { %v876_v58 = vmax.f32 %v812_v39, 0.0  ;;  %v813_v59 = vadd.f32 %v2618_v27, %v3301_v55  ;;  %v1060_v60 = vsel %vm4145_vm1, %v940_v43, 0.0  ;;  %v941_v63 = vmul.f32 %v3284_v38, %v870_v29 }
 0x136   : > { %1019 = vadd.xlane.f32.xlu1 %v1018_v35  ;;  %1049 = vadd.xlane.f32.xlu0 %v1048_v41  ;;  %v792_v35 = vadd.f32 %v2575_v6, %v3278_v33  ;;  %v824_v41 = vadd.f32 %v2639_v18, %v3301_v55  ;;  %v2643_v33 = vunpack.c.h.bf16 %v3502_v34  ;;  %v808_v2 = vadd.f32 %v2607_v26, %v3334_v22 }
 0x137   : > { %v2622_v4 = vunpack.c.l.bf16 %v3396_v37  ;;  %v2646_v5 = vunpack.c.l.bf16 %v2696_v49  ;;  %v1033_v6 = vsel %vm4145_vm1, %v931_v46, 0.0  ;;  %v947_v7 = vmul.f32 %v3284_v38, %v876_v58 }
 0x138   : > { %v856_v50 = vmax.f32 %v792_v35, 0.0  ;;  %v888_v54 = vmax.f32 %v824_v41, 0.0  ;;  %v877_v0 = vmax.f32 %v813_v59, 0.0  ;;  %v814_v8 = vadd.f32 %v2619_v51, %v3301_v55 }
 0x139   : > { %v1063_v11 = vsel %vm4145_vm1, %v941_v63, 0.0  ;;  %v872_v16 = vmax.f32 %v808_v2, 0.0  ;;  %v826_v18 = vadd.f32 %v2643_v33, %v3514_v52  ;;  %v1081_v37 = vsel %vm4145_vm1, %v947_v7, 0.0  ;;  %v2699_v7 = vld [vmem:[%s4130_s1 + $0xe0] sm:$0xff]  }
 0x13a   : > { %1025 = vadd.xlane.f32.xlu1 %v1024_v53  ;;  %1052 = vadd.xlane.f32.xlu0 %v1051_v45  ;;  %v807_v45 = vadd.f32 %v2606_v24, %v3334_v22  ;;  %v887_v53 = vmax.f32 %v823_v3, 0.0  ;;  %v3519_v57 = vmul.f32 %v3284_v38, %v856_v50  ;;  %v3529_v62 = vmul.f32 %v3284_v38, %v888_v54  ;;  %v2698_v54 = vld [vmem:[%s4130_s1 + $0xd8] sm:$0xff]  }
 0x13b   : > { %v2647_v22 = vunpack.c.h.bf16 %v2696_v49  ;;  %v878_v21 = vmax.f32 %v814_v8, 0.0  ;;  %v815_v23 = vadd.f32 %v2622_v4, %v3301_v55  ;;  %v943_v25 = vmul.f32 %v3284_v38, %v872_v16 }
 0x13c   : > { %v3526_v48 = vmul.f32 %v3284_v38, %v887_v53  ;;  %v871_v1 = vmax.f32 %v807_v45, 0.0  ;;  %v890_v26 = vmax.f32 %v826_v18, 0.0  ;;  %v827_v27 = vadd.f32 %v2646_v5, %v3514_v52 }
 0x13d   : > { %v949_v30 = vmul.f32 %v3284_v38, %v878_v21  ;;  %v879_v35 = vmax.f32 %v815_v23, 0.0  ;;  %v1069_v55 = vsel %vm4145_vm1, %v943_v25, 0.0  ;;  %v828_v41 = vadd.f32 %v2647_v22, %v3514_v52  ;;  %v2700_v23 = vld [vmem:[%s4130_s1 + $0xe8] sm:$0xff]  }
 0x13e   : > { %1028 = vadd.xlane.f32.xlu1 %v1027_v15  ;;  %1055 = vadd.xlane.f32.xlu0 %v1054_v47  ;;  %v942_v15 = vmul.f32 %v3284_v38, %v871_v1  ;;  %v948_v47 = vmul.f32 %v3284_v38, %v877_v0  ;;  %v961_v39 = vmul.f32 %v3284_v38, %v890_v26  ;;  %v891_v3 = vmax.f32 %v827_v27, 0.0 }
 0x13f   : > { %v950_v43 = vmul.f32 %v3284_v38, %v879_v35  ;;  %v2651_v45 = vunpack.c.h.bf16 %v2697_v28  ;;  %v892_v33 = vmax.f32 %v828_v41, 0.0  ;;  %v2654_v46 = vunpack.c.l.bf16 %v2698_v54 }
 0x140   : > { %v1066_v24 = vsel %vm4145_vm1, %v942_v15, 0.0  ;;  %v1084_v29 = vsel %vm4145_vm1, %v948_v47, 0.0  ;;  %v1123_v50 = vsel %vm4145_vm1, %v961_v39, 0.0  ;;  %v962_v51 = vmul.f32 %v3284_v38, %v891_v3  ;;  %v2701_v3 = vld [vmem:[%s4130_s1 + $0xf0] sm:$0xff]  }
 0x141   : > { %v963_v59 = vmul.f32 %v3284_v38, %v892_v33  ;;  %v1093_v63 = vsel %vm4145_vm1, %v3444_v31, 0.0  ;;  %v2655_v1 = vunpack.c.h.bf16 %v2698_v54  ;;  %v1096_v0 = vsel %vm4145_vm1, %v3447_v32, 0.0 }
 0x142   : > { %1031 = vadd.xlane.f32.xlu1 %v1030_v36  ;;  %1058 = vadd.xlane.f32.xlu0 %v1057_v42  ;;  %v2650_v36 = vunpack.c.l.bf16 %v2697_v28  ;;  %v1087_v42 = vsel %vm4145_vm1, %v949_v30, 0.0  ;;  %v1126_v58 = vsel %vm4145_vm1, %v962_v51, 0.0  ;;  %v2658_v8 = vunpack.c.l.bf16 %v2699_v7 }
 0x143   : > { %v1129_v2 = vsel %vm4145_vm1, %v963_v59, 0.0  ;;  %v832_v16 = vadd.f32 %v2655_v1, %v3514_v52  ;;  %v1099_v18 = vsel %vm4145_vm1, %v3452_v40, 0.0  ;;  %v2659_v22 = vunpack.c.h.bf16 %v2699_v7  ;;  %v2702_v59 = vld [vmem:[%s4130_s1 + $0xf8] sm:$0xff]  }
 0x144   : > { %v829_v53 = vadd.f32 %v2650_v36, %v3514_v52  ;;  %v833_v21 = vadd.f32 %v2658_v8, %v3514_v52  ;;  %v2662_v25 = vunpack.c.l.bf16 %v2700_v23  ;;  %v2642_v40 = vunpack.c.l.bf16 %v3502_v34 }
 0x145   : > { %v896_v32 = vmax.f32 %v832_v16, 0.0  ;;  %v1105_v30 = vsel %vm4145_vm1, %v3484_v12, 0.0  ;;  %v2663_v36 = vunpack.c.h.bf16 %v2700_v23  ;;  %v1108_v41 = vsel %vm4145_vm1, %v3487_v14, 0.0 }
 0x146   : > { %1076 = vadd.xlane.f32.xlu1 %v1075_v56  ;;  %1061 = vadd.xlane.f32.xlu0 %v1060_v60  ;;  %v1090_v56 = vsel %vm4145_vm1, %v950_v43, 0.0  ;;  %v893_v49 = vmax.f32 %v829_v53, 0.0  ;;  %v830_v60 = vadd.f32 %v2651_v45, %v3514_v52  ;;  %v897_v28 = vmax.f32 %v833_v21, 0.0 }
 0x147   : > { %v967_v27 = vmul.f32 %v3284_v38, %v896_v32  ;;  %v825_v35 = vadd.f32 %v2642_v40, %v3514_v52  ;;  %v835_v39 = vadd.f32 %v2662_v25, %v3514_v52  ;;  %v836_v51 = vadd.f32 %v2663_v36, %v3514_v52 }
 0x148   : > { %v964_v4 = vmul.f32 %v3284_v38, %v893_v49  ;;  %v894_v5 = vmax.f32 %v830_v60, 0.0  ;;  %v968_v34 = vmul.f32 %v3284_v38, %v897_v28  ;;  %v1111_v33 = vsel %vm4145_vm1, %v3492_v61, 0.0 }
 0x149   : > { %v889_v12 = vmax.f32 %v825_v35, 0.0  ;;  %v2667_v54 = vunpack.c.h.bf16 %v2701_v3  ;;  %v2670_v60 = vunpack.c.l.bf16 %v2702_v59  ;;  %v2671_v61 = vunpack.c.h.bf16 %v2702_v59 }
 0x14a   : > { %1034 = vadd.xlane.f32.xlu1 %v1033_v6  ;;  %1064 = vadd.xlane.f32.xlu0 %v1063_v11  ;;  %v831_v6 = vadd.f32 %v2654_v46, %v3514_v52  ;;  %v1132_v31 = vsel %vm4145_vm1, %v964_v4, 0.0  ;;  %v965_v11 = vmul.f32 %v3284_v38, %v894_v5  ;;  %v1144_v43 = vsel %vm4145_vm1, %v968_v34, 0.0 }
 0x14b   : > { %v960_v53 = vmul.f32 %v3284_v38, %v889_v12  ;;  %v900_v46 = vmax.f32 %v836_v51, 0.0  ;;  %v838_v4 = vadd.f32 %v2667_v54, %v3514_v52  ;;  %v1021_v5 = vsel %vm4145_vm1, %v3519_v57, 0.0 }
 0x14c   : > { %v895_v15 = vmax.f32 %v831_v6, 0.0  ;;  %v840_v6 = vadd.f32 %v2671_v61, %v3514_v52  ;;  %v3639_v21 = vand.u32 127, %v523_v9 }
 0x14d   : > { %v1120_v49 = vsel %vm4145_vm1, %v960_v53, 0.0  ;;  %v971_v1 = vmul.f32 %v3284_v38, %v900_v46  ;;  %v902_v8 = vmax.f32 %v838_v4, 0.0 }
 0x14e   : > { %1082 = vadd.xlane.f32.xlu1 %v1081_v37  ;;  %1067 = vadd.xlane.f32.xlu0 %v1066_v24  ;;  %v1135_v37 = vsel %vm4145_vm1, %v965_v11, 0.0  ;;  %v966_v47 = vmul.f32 %v3284_v38, %v895_v15  ;;  %v1102_v24 = vsel %vm4145_vm1, %v3457_v44, 0.0  ;;  %v1141_v44 = vsel %vm4145_vm1, %v967_v27, 0.0 }
 0x14f   : > { %v1153_v7 = vsel %vm4145_vm1, %v971_v1, 0.0  ;;  %v1114_v11 = vsel %vm4145_vm1, %v3526_v48, 0.0  ;;  %v904_v15 = vmax.f32 %v840_v6, 0.0  ;;  %v973_v57 = vmul.f32 %v3284_v38, %v902_v8 }
 0x150   : > { %v1138_v26 = vsel %vm4145_vm1, %v966_v47, 0.0  ;;  %v1239_v23 = vadd.s32 4294967288, %v3639_v21  ;;  %v3644_v25 = vsub.s32 %v3639_v21, %v3246_v10  ;;  %v1246_v40 = vadd.s32 4294967280, %v3639_v21 }
 0x151   : > { %v1159_v47 = vsel %vm4145_vm1, %v973_v57, 0.0  ;;  %v1260_v35 = vadd.s32 4294967264, %v3639_v21  ;;  %v1267_v36 = vadd.s32 4294967256, %v3639_v21  ;;  %v1281_v12 = vadd.s32 4294967240, %v3639_v21 }
 0x152   : > { %1085 = vadd.xlane.f32.xlu1 %v1084_v29  ;;  %1070 = vadd.xlane.f32.xlu0 %v1069_v55  ;;  %v834_v29 = vadd.f32 %v2659_v22, %v3514_v52  ;;  %v1117_v22 = vsel %vm4145_vm1, %v3529_v62, 0.0  ;;  %v1302_v61 = vadd.s32 4294967216, %v3639_v21 }
 0x154   : > { %v898_v55 = vmax.f32 %v834_v29, 0.0  ;;  %v3653_v29 = vsub.s32 %v1246_v40, %v3246_v10  ;;  %v3703_v57 = vsub.s32 %v1302_v61, %v3246_v10 }
 0x156   : > { %1088 = vadd.xlane.f32.xlu1 %v1087_v42  ;;  %1124 = vadd.xlane.f32.xlu0 %v1123_v50  ;;  %v2666_v42 = vunpack.c.l.bf16 %v2701_v3  ;;  %v969_v45 = vmul.f32 %v3284_v38, %v898_v55  ;;  %v899_v50 = vmax.f32 %v835_v39, 0.0  ;;  %v1274_v55 = vadd.s32 4294967248, %v3639_v21 }
 0x157   : > { %v1288_v3 = vadd.s32 4294967232, %v3639_v21 }
 0x158   : > { %v1147_v14 = vsel %vm4145_vm1, %v969_v45, 0.0  ;;  %v3670_v45 = vsub.s32 %v1267_v36, %v3246_v10 }
 0x159   : > { %v3677_v54 = vsub.s32 %v1288_v3, %v3246_v10 }
 0x15a   : > { %1091 = vadd.xlane.f32.xlu1 %v1090_v56  ;;  %1127 = vadd.xlane.f32.xlu0 %v1126_v58  ;;  %v970_v56 = vmul.f32 %v3284_v38, %v899_v50  ;;  %v837_v58 = vadd.f32 %v2666_v42, %v3514_v52 }
 0x15e   : > { %1094 = vadd.xlane.f32.xlu1 %v1093_v63  ;;  %1130 = vadd.xlane.f32.xlu0 %v1129_v2  ;;  %v1150_v63 = vsel %vm4145_vm1, %v970_v56, 0.0  ;;  %v901_v2 = vmax.f32 %v837_v58, 0.0  ;;  %v3681_v56 = vsub.s32 %v1281_v12, %v3246_v10 }
 0x162   : > { %1097 = vadd.xlane.f32.xlu1 %v1096_v0  ;;  %1133 = vadd.xlane.f32.xlu0 %v1132_v31  ;;  %v972_v0 = vmul.f32 %v3284_v38, %v901_v2  ;;  %v839_v31 = vadd.f32 %v2670_v60, %v3514_v52 }
 0x164   : > { %v1156_v16 = vsel %vm4145_vm1, %v972_v0, 0.0 }
 0x166   : > { %1100 = vadd.xlane.f32.xlu1 %v1099_v18  ;;  %1136 = vadd.xlane.f32.xlu0 %v1135_v37  ;;  %v903_v18 = vmax.f32 %v839_v31, 0.0  ;;  %v975_v37 = vmul.f32 %v3284_v38, %v904_v15 }
 0x168   : > { %v974_v52 = vmul.f32 %v3284_v38, %v903_v18  ;;  %v1165_v48 = vsel %vm4145_vm1, %v975_v37, 0.0  ;;  %v3647_v38 = vsub.s32 %v1239_v23, %v3246_v10  ;;  %v1309_v18 = vadd.s32 4294967208, %v3639_v21 }
 0x16a   : > { %1103 = vadd.xlane.f32.xlu1 %v1102_v24  ;;  %1139 = vadd.xlane.f32.xlu0 %v1138_v26  ;;  %v1162_v32 = vsel %vm4145_vm1, %v974_v52, 0.0  ;;  %vm1581_vm1 = vcmask 1041409  }
 0x16e   : > { %1106 = vadd.xlane.f32.xlu1 %v1105_v30  ;;  %1142 = vadd.xlane.f32.xlu0 %v1141_v44  ;;  %v1253_v30 = vadd.s32 4294967272, %v3639_v21 }
 0x170   : > { %v3664_v42 = vsub.s32 %v1253_v30, %v3246_v10 }
 0x172   : > { %1109 = vadd.xlane.f32.xlu1 %v1108_v41  ;;  %1145 = vadd.xlane.f32.xlu0 %v1144_v43  ;;  %v3667_v43 = vsub.s32 %v1260_v35, %v3246_v10 }
 0x176   : > { %1112 = vadd.xlane.f32.xlu1 %v1111_v33  ;;  %1148 = vadd.xlane.f32.xlu0 %v1147_v14  ;;  %v3674_v33 = vsub.s32 %v1274_v55, %v3246_v10  ;;  %v1295_v14 = vadd.s32 4294967224, %v3639_v21 }
 0x17a   : > { %1121 = vadd.xlane.f32.xlu1 %v1120_v49  ;;  %1151 = vadd.xlane.f32.xlu0 %v1150_v63 }
 0x17e   : > { %1022 = vadd.xlane.f32.xlu1 %v1021_v5  ;;  %1154 = vadd.xlane.f32.xlu0 %v1153_v7  ;;  %v3694_v5 = vsub.s32 %v1295_v14, %v3246_v10 }
 0x182   : > { %1115 = vadd.xlane.f32.xlu1 %v1114_v11  ;;  %1157 = vadd.xlane.f32.xlu0 %v1156_v16 }
 0x186   : > { %1118 = vadd.xlane.f32.xlu1 %v1117_v22  ;;  %1160 = vadd.xlane.f32.xlu0 %v1159_v47 }
 0x18a   : > { %1166 = vadd.xlane.f32.xlu1 %v1165_v48  ;;  %1163 = vadd.xlane.f32.xlu0 %v1162_v32  ;;  %v3709_v48 = vsub.s32 %v1309_v18, %v3246_v10  ;;  %v1316_v32 = vadd.s32 4294967200, %v3639_v21 }
 0x19b   : > { %v990_v62 = vpop.xlane.xlu1 %989  ;;  %v978_v24 = vpop.xlane.xlu0 %977 }
 0x19c   : > { %v1238_v28 = vrot.slane %v978_v24, %v3644_v25  ;;  %v1264_v58 = vrot.slane %v990_v62, %v3667_v43 }
 0x19f   : > { %v993_v26 = vpop.xlane.xlu1 %992  ;;  %v981_v27 = vpop.xlane.xlu0 %980 }
 0x1a0   : > { %v1243_v9 = vrot.slane %v981_v27, %v3647_v38  ;;  %v1271_v59 = vrot.slane %v993_v26, %v3670_v45  ;;  %v3715_v26 = vsub.s32 %v1316_v32, %v3246_v10  ;;  %v1323_v27 = vadd.s32 4294967192, %v3639_v21 }
 0x1a2   : > { %v1245_v44 = vsel %vm1244_vm2, %v1243_v9, %v1238_v28  ;;  %v3721_v36 = vsub.s32 %v1323_v27, %v3246_v10 }
 0x1a3   : > { %v996_v34 = vpop.xlane.xlu1 %995  ;;  %v984_v39 = vpop.xlane.xlu0 %983 }
 0x1a4   : > { %v1250_v41 = vrot.slane %v984_v39, %v3653_v29  ;;  %v1278_v63 = vrot.slane %v996_v34, %v3674_v33 }
 0x1a6   : > { %v1252_v50 = vsel %vm1251_vm3, %v1250_v41, %v1245_v44  ;;  %v1330_v44 = vadd.s32 4294967184, %v3639_v21 }
 0x1a7   : > { %v999_v51 = vpop.xlane.xlu1 %998  ;;  %v987_v53 = vpop.xlane.xlu0 %986 }
 0x1a8   : > { %v1257_v46 = vrot.slane %v987_v53, %v3664_v42  ;;  %v1285_v6 = vrot.slane %v999_v51, %v3681_v56  ;;  %v3727_v41 = vsub.s32 %v1330_v44, %v3246_v10 }
 0x1aa   : > { %v1259_v49 = vsel %vm1258_vm4, %v1257_v46, %v1252_v50 }
 0x1ab   : > { %v1002_v60 = vpop.xlane.xlu1 %1001  ;;  %v1266_v1 = vsel %vm1265_vm5, %v1264_v58, %v1259_v49  ;;  %v3691_v4 = vpop.xlane.xlu0 %1073 }
 0x1ac   : > { %v1292_v2 = vrot.slane %v1002_v60, %v3677_v54  ;;  %v1273_v7 = vsel %vm1272_vm6, %v1271_v59, %v1266_v1  ;;  %v1426_v1 = vrot.slane %v3691_v4, %v3644_v25 }
 0x1ad   : > { %v1280_v0 = vsel %vm1279_vm7, %v1278_v63, %v1273_v7 }
 0x1ae   : > { %v1287_v8 = vsel %vm1286_vm8, %v1285_v6, %v1280_v0 }
 0x1af   : > { %v1005_v31 = vpop.xlane.xlu1 %1004  ;;  %v1294_v11 = vsel %vm1293_vm9, %v1292_v2, %v1287_v8  ;;  %v1080_v16 = vpop.xlane.xlu0 %1079 }
 0x1b0   : > { %v1299_v15 = vrot.slane %v1005_v31, %v3694_v5  ;;  %v1435_v0 = vrot.slane %v1080_v16, %v3653_v29 }
 0x1b2   : > { %v1301_v22 = vsel %vm1300_vm10, %v1299_v15, %v1294_v11 }
 0x1b3   : > { %v1008_v37 = vpop.xlane.xlu1 %1007  ;;  %v1038_v52 = vpop.xlane.xlu0 %1037 }
 0x1b4   : > { %v1306_v47 = vrot.slane %v1008_v37, %v3703_v57 }
 0x1b6   : > { %v1308_v23 = vsel %vm1307_vm11, %v1306_v47, %v1301_v22  ;;  %v1366_v47 = vrot.slane %v1038_v52, %v3667_v43 }
 0x1b7   : > { %v1011_v62 = vpop.xlane.xlu1 %1010  ;;  %v1041_v40 = vpop.xlane.xlu0 %1040 }
 0x1b8   : > { %v1313_v24 = vrot.slane %v1011_v62, %v3709_v48  ;;  %v1371_v16 = vrot.slane %v1041_v40, %v3670_v45 }
 0x1ba   : > { %v1315_v28 = vsel %vm1314_vm12, %v1313_v24, %v1308_v23 }
 0x1bb   : > { %v1014_v9 = vpop.xlane.xlu1 %1013  ;;  %v1044_v35 = vpop.xlane.xlu0 %1043 }
 0x1bc   : > { %v1320_v30 = vrot.slane %v1014_v9, %v3715_v26  ;;  %v1376_v62 = vrot.slane %v1044_v35, %v3674_v33 }
 0x1be   : > { %v1322_v34 = vsel %vm1321_vm13, %v1320_v30, %v1315_v28 }
 0x1bf   : > { %v1017_v55 = vpop.xlane.xlu1 %1016  ;;  %v1047_v3 = vpop.xlane.xlu0 %1046 }
 0x1c0   : > { %v1327_v39 = vrot.slane %v1017_v55, %v3721_v36  ;;  %v1381_v28 = vrot.slane %v1047_v3, %v3681_v56 }
 0x1c2   : > { %v1329_v12 = vsel %vm1328_vm14, %v1327_v39, %v1322_v34 }
 0x1c3   : > { %v1020_v50 = vpop.xlane.xlu1 %1019  ;;  %v1050_v53 = vpop.xlane.xlu0 %1049 }
 0x1c4   : > { %v1334_v51 = vrot.slane %v1020_v50, %v3727_v41  ;;  %v1386_v44 = vrot.slane %v1050_v53, %v3677_v54 }
 0x1c6   : > { %v3732_v14 = vsel %vm1335_vm15, %v1334_v51, %v1329_v12 }
 0x1c7   : > { %v1026_v46 = vpop.xlane.xlu1 %1025  ;;  %v1053_v58 = vpop.xlane.xlu0 %1052 }
 0x1c8   : > { %v1347_v31 = vrot.slane %v1026_v46, %v3644_v25  ;;  %v1391_v34 = vrot.slane %v1053_v58, %v3694_v5 }
 0x1cb   : > { %v1029_v59 = vpop.xlane.xlu1 %1028  ;;  %v1056_v49 = vpop.xlane.xlu0 %1055 }
 0x1cc   : > { %v1351_v2 = vrot.slane %v1029_v59, %v3647_v38  ;;  %v1396_v55 = vrot.slane %v1056_v49, %v3703_v57 }
 0x1ce   : > { %v1352_v22 = vsel %vm1244_vm2, %v1351_v2, %v1347_v31 }
 0x1cf   : > { %v1032_v60 = vpop.xlane.xlu1 %1031  ;;  %v1059_v61 = vpop.xlane.xlu0 %1058 }
 0x1d0   : > { %v1356_v8 = vrot.slane %v1032_v60, %v3653_v29  ;;  %v1401_v12 = vrot.slane %v1059_v61, %v3709_v48 }
 0x1d2   : > { %v1357_v32 = vsel %vm1251_vm3, %v1356_v8, %v1352_v22 }
 0x1d3   : > { %v1077_v63 = vpop.xlane.xlu1 %1076  ;;  %v1062_v6 = vpop.xlane.xlu0 %1061 }
 0x1d4   : > { %v1430_v7 = vrot.slane %v1077_v63, %v3647_v38  ;;  %v1406_v51 = vrot.slane %v1062_v6, %v3715_v26 }
 0x1d6   : > { %v1431_v11 = vsel %vm1244_vm2, %v1430_v7, %v1426_v1 }
 0x1d7   : > { %v1035_v15 = vpop.xlane.xlu1 %1034  ;;  %v1436_v18 = vsel %vm1251_vm3, %v1435_v0, %v1431_v11  ;;  %v1065_v37 = vpop.xlane.xlu0 %1064 }
 0x1d8   : > { %v1361_v4 = vrot.slane %v1035_v15, %v3664_v42 }
 0x1da   : > { %v1362_v23 = vsel %vm1258_vm4, %v1361_v4, %v1357_v32  ;;  %v1411_v32 = vrot.slane %v1065_v37, %v3721_v36 }
 0x1db   : > { %v1367_v24 = vsel %vm1265_vm5, %v1366_v47, %v1362_v23  ;;  %v1083_v27 = vpop.xlane.xlu1 %1082  ;;  %v1068_v30 = vpop.xlane.xlu0 %1067  ;;  %v1337_v47 = vadd.s32 4294967176, %v3639_v21 }
 0x1dc   : > { %v1372_v9 = vsel %vm1272_vm6, %v1371_v16, %v1367_v24  ;;  %v1440_v16 = vrot.slane %v1083_v27, %v3664_v42 }
 0x1dd   : > { %v1377_v52 = vsel %vm1279_vm7, %v1376_v62, %v1372_v9  ;;  %v3779_v9 = vsub.s32 %v1337_v47, %v3246_v10 }
 0x1de   : > { %v1382_v40 = vsel %vm1286_vm8, %v1381_v28, %v1377_v52  ;;  %v1416_v52 = vrot.slane %v1068_v30, %v3727_v41  ;;  %v1441_v37 = vsel %vm1258_vm4, %v1440_v16, %v1436_v18 }
 0x1df   : > { %v1387_v35 = vsel %vm1293_vm9, %v1386_v44, %v1382_v40  ;;  %v1086_v39 = vpop.xlane.xlu1 %1085  ;;  %v1071_v50 = vpop.xlane.xlu0 %1070 }
 0x1e0   : > { %v1392_v3 = vsel %vm1300_vm10, %v1391_v34, %v1387_v35  ;;  %v1445_v62 = vrot.slane %v1086_v39, %v3667_v43 }
 0x1e1   : > { %v1397_v53 = vsel %vm1307_vm11, %v1396_v55, %v1392_v3 }
 0x1e2   : > { %v1402_v46 = vsel %vm1314_vm12, %v1401_v12, %v1397_v53  ;;  %v1446_v35 = vsel %vm1265_vm5, %v1445_v62, %v1441_v37 }
 0x1e3   : > { %v1407_v58 = vsel %vm1321_vm13, %v1406_v51, %v1402_v46  ;;  %v1089_v59 = vpop.xlane.xlu1 %1088  ;;  %v1125_v60 = vpop.xlane.xlu0 %1124  ;;  %v1421_v51 = vrot.slane %v1071_v50, %v3779_v9 }
 0x1e4   : > { %v1412_v28 = vsel %vm1328_vm14, %v1411_v32, %v1407_v58  ;;  %v1450_v44 = vrot.slane %v1089_v59, %v3670_v45  ;;  %v1509_v39 = vrot.slane %v1125_v60, %v3647_v38 }
 0x1e5   : > { %v1417_v55 = vsel %vm1335_vm15, %v1416_v52, %v1412_v28 }
 0x1e6   : > { %v1451_v30 = vsel %vm1272_vm6, %v1450_v44, %v1446_v35  ;;  %v1422_v38 = vsel %vm1342_vm0, %v1421_v51, %v1417_v55 }
 0x1e7   : > { %v1092_v63 = vpop.xlane.xlu1 %1091  ;;  %v1128_v49 = vpop.xlane.xlu0 %1127 }
 0x1e8   : > { %v1455_v34 = vrot.slane %v1092_v63, %v3674_v33  ;;  %v1514_v53 = vrot.slane %v1128_v49, %v3653_v29 }
 0x1ea   : > { %v1456_v46 = vsel %vm1279_vm7, %v1455_v34, %v1451_v30 }
 0x1eb   : > { %v1095_v1 = vpop.xlane.xlu1 %1094  ;;  %v1131_v2 = vpop.xlane.xlu0 %1130 }
 0x1ec   : > { %v1460_v27 = vrot.slane %v1095_v1, %v3681_v56  ;;  %v1519_v58 = vrot.slane %v1131_v2, %v3664_v42 }
 0x1ee   : > { %v1461_v60 = vsel %vm1286_vm8, %v1460_v27, %v1456_v46 }
 0x1ef   : > { %v1098_v7 = vpop.xlane.xlu1 %1097  ;;  %v1134_v0 = vpop.xlane.xlu0 %1133 }
 0x1f0   : > { %v1465_v18 = vrot.slane %v1098_v7, %v3677_v54 }
 0x1f2   : > { %v1466_v2 = vsel %vm1293_vm9, %v1465_v18, %v1461_v60 }
 0x1f3   : > { %v1101_v61 = vpop.xlane.xlu1 %1100  ;;  %v1137_v8 = vpop.xlane.xlu0 %1136 }
 0x1f4   : > { %v1470_v29 = vrot.slane %v1101_v61, %v3694_v5  ;;  %v1529_v49 = vrot.slane %v1137_v8, %v3670_v45 }
 0x1f6   : > { %v1471_v28 = vsel %vm1300_vm10, %v1470_v29, %v1466_v2  ;;  %v2920_v2 = vld [vmem:[%s4129_s0 + $0x50] sm:$0xff]  }
 0x1f7   : > { %v3765_v31 = vpop.xlane.xlu1 %1103  ;;  %v1140_v11 = vpop.xlane.xlu0 %1139 }
 0x1f8   : > { %v1475_v47 = vrot.slane %v3765_v31, %v3703_v57  ;;  %v1534_v32 = vrot.slane %v1140_v11, %v3674_v33 }
 0x1fa   : > { %v1476_v44 = vsel %vm1307_vm11, %v1475_v47, %v1471_v28  ;;  %v2921_v47 = vld [vmem:[%s4129_s0 + $0x18] sm:$0xff]  }
 0x1fb   : > { %v3767_v6 = vpop.xlane.xlu1 %1106  ;;  %v1143_v15 = vpop.xlane.xlu0 %1142 }
 0x1fc   : > { %v1539_v61 = vrot.slane %v1143_v15, %v3681_v56 }
 0x1ff   : > { %v3769_v22 = vpop.xlane.xlu1 %1109  ;;  %v1146_v4 = vpop.xlane.xlu0 %1145 }
 0x200   : > { %v1485_v16 = vrot.slane %v3769_v22, %v3715_v26  ;;  %v1544_v62 = vrot.slane %v1146_v4, %v3677_v54 }
 0x203   : > { %v3774_v23 = vpop.xlane.xlu1 %1112  ;;  %v1149_v24 = vpop.xlane.xlu0 %1148 }
 0x204   : > { %v1490_v56 = vrot.slane %v3774_v23, %v3721_v36 }
 0x207   : > { %v1122_v40 = vpop.xlane.xlu1 %1121  ;;  %v1152_v12 = vpop.xlane.xlu0 %1151 }
 0x208   : > { %v1505_v3 = vrot.slane %v1122_v40, %v3644_v25  ;;  %v1524_v25 = vrot.slane %v1134_v0, %v3667_v43  ;;  %v1480_v0 = vrot.slane %v3767_v6, %v3709_v48  ;;  %v1549_v6 = vrot.slane %v1149_v24, %v3694_v5 }
 0x209   : > { %v1554_v22 = vrot.slane %v1152_v12, %v3703_v57 }
 0x20a   : > { %v1510_v59 = vsel %vm1244_vm2, %v1509_v39, %v1505_v3  ;;  %v1481_v52 = vsel %vm1314_vm12, %v1480_v0, %v1476_v44  ;;  %vm1583_vm2 = vcmask 1042434   ;;  %v2924_v0 = vld [vmem:[%s4129_s0 + $0x60] sm:$0xff]  }
 0x20b   : > { %v1515_v50 = vsel %vm1251_vm3, %v1514_v53, %v1510_v59  ;;  %v1023_v63 = vpop.xlane.xlu1 %1022  ;;  %v1155_v7 = vpop.xlane.xlu0 %1154  ;;  %v1486_v23 = vsel %vm1321_vm13, %v1485_v16, %v1481_v52  ;;  %vm1585_vm3 = vcmask 1043459   ;;  %v2928_v16 = vld [vmem:[%s4129_s0 + $0x70] sm:$0xff]   ;;  %v2932_v52 = vld [vmem:[%s4129_s0 + $0xc0] sm:$0xff]  }
 0x20c   : > { %v1520_v1 = vsel %vm1258_vm4, %v1519_v58, %v1515_v50  ;;  %v1341_v42 = vrot.slane %v1023_v63, %v3779_v9  ;;  %v1559_v37 = vrot.slane %v1155_v7, %v3709_v48  ;;  %v1491_v27 = vsel %vm1328_vm14, %v1490_v56, %v1486_v23  ;;  %v2918_v50 = vld [vmem:[%s4129_s0 + $0x48] sm:$0xff]   ;;  %v2919_v63 = vld [vmem:[%s4129_s0 + $0x10] sm:$0xff]  }
 0x20d   : > { %v1525_v43 = vsel %vm1265_vm5, %v1524_v25, %v1520_v1  ;;  %vm1170_vm4 = vcmp.lt.s32.totalorder %v3639_v21, 16  ;;  %vm1589_vm5 = vcmask 1043456   ;;  %v3086_v25 = vmov 0.0   ;;  %v2917_v21 = vld [vmem:[%s4129_s0 + $0x8] sm:$0xff]  }
 0x20e   : > { %v1530_v45 = vsel %vm1272_vm6, %v1529_v49, %v1525_v43  ;;  %v1343_v8 = vsel %vm1342_vm0, %v1341_v42, %v3732_v14  ;;  %2745 = vmatprep.subr.bf16.mxu1 %v3086_v25  ;;  %2765 = vmatprep.subr.bf16.mxu0 %v3086_v25  ;;  %vm3087_vm6 = vmmov 0   ;;  %v2923_v43 = vld [vmem:[%s4129_s0 + $0x20] sm:$0xff]   ;;  %v2934_v23 = vld [vmem:[%s4129_s0 + $0xc8] sm:$0xff]  }
 0x20f   : > { %v1535_v31 = vsel %vm1279_vm7, %v1534_v32, %v1530_v45  ;;  %v1116_v33 = vpop.xlane.xlu1 %1115  ;;  %v1582_v11 = vsel %vm1581_vm1, %v1422_v38, %v1343_v8  ;;  %v1158_v14 = vpop.xlane.xlu0 %1157  ;;  %2761 = vmatprep.mubr.msk.bf16.mxu1 %vm3087_vm6, %v3086_v25  ;;  %2781 = vmatprep.mubr.msk.bf16.mxu0 %vm3087_vm6, %v3086_v25  ;;  %v2922_v32 = vld [vmem:[%s4129_s0 + $0x58] sm:$0xff]   ;;  %v2926_v45 = vld [vmem:[%s4129_s0 + $0x68] sm:$0xff]   ;;  %v2927_v8 = vld [vmem:[%s4129_s0 + $0x30] sm:$0xff]   ;;  %vm4154_vm7 = vcmask 261120  }
 0x210   : > { %v1540_v15 = vsel %vm1286_vm8, %v1539_v61, %v1535_v31  ;;  %v1495_v4 = vrot.slane %v1116_v33, %v3727_v41  ;;  %v1564_v35 = vrot.slane %v1158_v14, %v3715_v26  ;;  %v2925_v61 = vld [vmem:[%s4129_s0 + $0x28] sm:$0xff]   ;;  %v2930_v31 = vld [vmem:[%s4129_s0 + $0x78] sm:$0xff]  }
 0x211   : > { %v1545_v54 = vsel %vm1293_vm9, %v1544_v62, %v1540_v15  ;;  %v2929_v62 = vld [vmem:[%s4129_s0 + $0x38] sm:$0xff]  }
 0x212   : > { %v1550_v34 = vsel %vm1300_vm10, %v1549_v6, %v1545_v54  ;;  %v1496_v39 = vsel %vm1335_vm15, %v1495_v4, %v1491_v27  ;;  %v2937_v27 = vld [vmem:[%s4129_s0 + $0x98] sm:$0xff]  }
 0x213   : > { %v1555_v5 = vsel %vm1307_vm11, %v1554_v22, %v1550_v34  ;;  %v1119_v24 = vpop.xlane.xlu1 %1118  ;;  %v1161_v57 = vpop.xlane.xlu0 %1160  ;;  %v2931_v22 = vld [vmem:[%s4129_s0 + $0x80] sm:$0xff]  }
 0x214   : > { %v1560_v40 = vsel %vm1314_vm12, %v1559_v37, %v1555_v5  ;;  %v1500_v55 = vrot.slane %v1119_v24, %v3779_v9  ;;  %v1569_v12 = vrot.slane %v1161_v57, %v3721_v36  ;;  %v2933_v37 = vld [vmem:[%s4129_s0 + $0x88] sm:$0xff]   ;;  %v2935_v5 = vld [vmem:[%s4129_s0 + $0x90] sm:$0xff]   ;;  %v2939_v57 = vld [vmem:[%s4129_s0 + $0xa0] sm:$0xff]  }
 0x215   : > { %v1565_v3 = vsel %vm1321_vm13, %v1564_v35, %v1560_v40  ;;  %v2936_v24 = vld [vmem:[%s4129_s0 + $0xd0] sm:$0xff]   ;;  %v2938_v40 = vld [vmem:[%s4129_s0 + $0xd8] sm:$0xff]  }
 0x216   : > { %v1501_v48 = vsel %vm1342_vm0, %v1500_v55, %v1496_v39  ;;  %v1570_v58 = vsel %vm1328_vm14, %v1569_v12, %v1565_v3  ;;  %v2940_v55 = vld [vmem:[%s4129_s0 + $0xe0] sm:$0xff]   ;;  %v2941_v39 = vld [vmem:[%s4129_s0 + $0xa8] sm:$0xff]   ;;  %v2943_v3 = vld [vmem:[%s4129_s0 + $0xb0] sm:$0xff]  }
 0x217   : > { %v1167_v51 = vpop.xlane.xlu1 %1166  ;;  %v1584_v30 = vsel %vm1583_vm2, %v1501_v48, %v1582_v11  ;;  %v1164_v53 = vpop.xlane.xlu0 %1163  ;;  %v2942_v12 = vld [vmem:[%s4129_s0 + $0xe8] sm:$0xff]  }
 0x218   : > { %v1579_v18 = vrot.slane %v1167_v51, %v3779_v9  ;;  %v1574_v46 = vrot.slane %v1164_v53, %v3727_v41  ;;  %v2915_v41 = vld [vmem:[%s4129_s0] sm:$0xff]   ;;  %v2944_v51 = vld [vmem:[%s4129_s0 + $0xf0] sm:$0xff]  }
 0x219   : > { %v2916_v9 = vld [vmem:[%s4129_s0 + $0x40] sm:$0xff]   ;;  %2746 = vmatpush3.bf16.msra.mxu1 %v2915_v41 }
 0x21a   : > { %v1575_v26 = vsel %vm1335_vm15, %v1574_v46, %v1570_v58  ;;  %2766 = vmatpush3.bf16.msra.mxu0 %v2916_v9  ;;  %2747 = vmatprep.subr.bf16.mxu1 %v3086_v25  ;;  %v2947_v58 = vld [vmem:[%s4137_s8] sm:$0xff]  }
 0x21b   : > { %v1580_v36 = vsel %vm1342_vm0, %v1579_v18, %v1575_v26  ;;  %2767 = vmatprep.subr.bf16.mxu0 %v3086_v25  ;;  %v2946_v18 = vld [vmem:[%s4129_s0 + $0xf8] sm:$0xff]  }
 0x21c   : > { %v1586_v59 = vsel %vm1585_vm3, %v1580_v36, %v1584_v30 }
 0x21d   : > { %v1588_v38 = vsel %vm1170_vm4, %v1586_v59, -1e+30  ;;  %2748 = vmatpush3.bf16.msra.mxu1 %v2917_v21  ;;  %v2948_v59 = vld [vmem:[%s4137_s8 + $0x8] sm:$0xff]  }
 0x21e   : > { %v1590_v60 = vsel %vm1589_vm5, %v1588_v38, -inf  ;;  %2768 = vmatpush3.bf16.msra.mxu0 %v2918_v50  ;;  %2749 = vmatprep.subr.bf16.mxu1 %v3086_v25 }
 0x21f   : > { %1591 = vmax.xlane.f32.xlu0 %v1590_v60  ;;  %2769 = vmatprep.subr.bf16.mxu0 %v3086_v25 }
 0x221   : > { %2750 = vmatpush3.bf16.msra.mxu1 %v2919_v63 }
 0x222   : > { %2751 = vmatprep.subr.bf16.mxu1 %v3086_v25  ;;  %2770 = vmatpush3.bf16.msra.mxu0 %v2920_v2 }
 0x223   : > { %2771 = vmatprep.subr.bf16.mxu0 %v3086_v25 }
 0x225   : > { %2752 = vmatpush3.bf16.msra.mxu1 %v2921_v47  ;;  %v2949_v47 = vld [vmem:[%s4138_s9] sm:$0xff]  }
 0x226   : > { %2753 = vmatprep.subr.bf16.mxu1 %v3086_v25  ;;  %2772 = vmatpush3.bf16.msra.mxu0 %v2922_v32 }
 0x227   : > { %2773 = vmatprep.subr.bf16.mxu0 %v3086_v25 }
 0x229   : > { %2754 = vmatpush3.bf16.msra.mxu1 %v2923_v43 }
 0x22a   : > { %2755 = vmatprep.subr.bf16.mxu1 %v3086_v25  ;;  %2774 = vmatpush3.bf16.msra.mxu0 %v2924_v0 }
 0x22b   : > { %2775 = vmatprep.subr.bf16.mxu0 %v3086_v25 }
 0x22d   : > { %2756 = vmatpush3.bf16.msra.mxu1 %v2925_v61 }
 0x22e   : > { %2757 = vmatprep.subr.bf16.mxu1 %v3086_v25  ;;  %2776 = vmatpush3.bf16.msra.mxu0 %v2926_v45 }
 0x22f   : > { %2777 = vmatprep.subr.bf16.mxu0 %v3086_v25 }
 0x231   : > { %2758 = vmatpush3.bf16.msra.mxu1 %v2927_v8 }
 0x232   : > { %2759 = vmatprep.subr.bf16.mxu1 %v3086_v25  ;;  %2778 = vmatpush3.bf16.msra.mxu0 %v2928_v16  ;;  %v2950_v16 = vld [vmem:[%s4138_s9 + $0x8] sm:$0xff]  }
 0x233   : > { %2779 = vmatprep.subr.bf16.mxu0 %v3086_v25 }
 0x235   : > { %2760 = vmatpush3.bf16.msra.mxu1 %v2929_v62 }
 0x236   : > { %2785 = vmatprep.subr.bf16.mxu1 %v3086_v25  ;;  %2780 = vmatpush3.bf16.msra.mxu0 %v2930_v31 }
 0x237   : > { %2805 = vmatprep.subr.bf16.mxu0 %v3086_v25 }
 0x2ac   : > { %v1592_v29 = vpop.xlane.xlu0 %1591 }
 0x2ad   : > { %v1593_v49 = vsub.f32 %v1588_v38, %v1592_v29  ;;  %v2083_v38 = vld [vmem:[%s3219_s28] sm:$0x3]  ;;  %s4044_s28 = scalar_lea.hbm %s4140_s11, %s2541_s14 }
 0x2af   : > { %v1594_v1 = vmul.f32 1.442695, %v1593_v49 }
 0x2b1   : > { %2951 = vpow2.f32 %v1594_v1 }
 0x2bb   : > { %v2952_v7 = vpop.eup %2951 }
 0x2bc   : > { %v1596_v42 = vsel %vm1589_vm5, %v2952_v7, 0.0 }
 0x2bd   : > { %1597 = vadd.xlane.f32.xlu1 %v1596_v42 }
 0x34a   : > { %v1598_v33 = vpop.xlane.xlu1 %1597 }
 0x34b   : > { %2953 = vrcp.f32 %v1598_v33 }
 0x355   : > { %v2954_v11 = vpop.eup %2953 }
 0x356   : > { %v1600_v28 = vmul.f32 %v2954_v11, %v2952_v7 }
 0x358   : > { %2277 = vst [vmem:[%s3223_s25] sm:$0xf] %v1600_v28  ;;  %v1601_v56 = vpack.c.bf16 %v1600_v28, %v1600_v28  ;;  %s3092_s25 = smov [#allocation6]  }
 0x359   : > { %s2976_s15 = sshll.u32 %s3092_s25, 4  ;;  %s2977_s15 = int_to_ptr.vmem [resolvable:$false] %s2976_s15 }
 0x35a   : > { %v1609_v6 = vrot.slane %v1601_v56, %v3256_v17  ;;  %s2978_s13 = scalar_lea.vmem %s2977_s15, 128  ;;  %p2979_p2 = scmp.lt.s32.totalorder %s4046_s16, %s2977_s15 }
 0x35c   : > { %v1617_v15 = vrot.slane %v1609_v6, %v3256_v17  ;;  %v1610_v35 = vcombine.high %v1609_v6, %v1609_v6 }
 0x35e   : > { %v2496_v14 = vpack.i.b16 %v1617_v15, %v1617_v15  ;;  %v1626_v44 = vunpack.i.h.s16 %v1617_v15  ;;  %v1624_v48 = vrot.slane %v1610_v35, %v3256_v17  ;;  %v2945_v17 = vld [vmem:[%s4129_s0 + $0xb8] sm:$0xff]   ;;  %v2494_v15 = vmul.f32 -1.442695, %v3258_v19 }
 0x360   : > { %v1697_v54 = vrot.slane %v2496_v14, %v3249_v13  ;;  %v1787_v4 = vpack.i.b16 %v1626_v44, %v1626_v44  ;;  %v1628_v30 = vunpack.i.h.s16 %v1624_v48  ;;  %v2513_v53 = vpack.i.b16 %v1624_v48, %v1624_v48 }
 0x361   : > { %2955 = vpow2.f32 %v2494_v15 }
 0x362   : > { %2762 = vmatmul.mubr.bf16.vlgmr.msra.gmra.mrb[0].mxu1 %v1697_v54  ;;  %v1791_v34 = vrot.slane %v1787_v4, %v3249_v13  ;;  %v1975_v46 = vpack.i.b16 %v1628_v30, %v1628_v30  ;;  %v1885_v26 = vrot.slane %v2513_v53, %v3249_v13 }
 0x363   : > { %2786 = vmatpush3.bf16.msra.mxu1 %v2931_v22  ;;  %2801 = vmatprep.mubr.msk.bf16.mxu1 %vm3087_vm6, %v3086_v25 }
 0x364   : > { %2782 = vmatmul.mubr.bf16.vlgmr.msra.gmra.mrb[4].mxu0 %v1791_v34  ;;  %2787 = vmatprep.subr.bf16.mxu1 %v3086_v25  ;;  %v1979_v36 = vrot.slane %v1975_v46, %v3249_v13 }
 0x365   : > { %2806 = vmatpush3.bf16.msra.mxu0 %v2932_v52  ;;  %2821 = vmatprep.mubr.msk.bf16.mxu0 %vm3087_vm6, %v3086_v25 }
 0x366   : > { %2807 = vmatprep.subr.bf16.mxu0 %v3086_v25 }
 0x367   : > { %2788 = vmatpush3.bf16.msra.mxu1 %v2933_v37 }
 0x368   : > { %2789 = vmatprep.subr.bf16.mxu1 %v3086_v25 }
 0x369   : > { %2808 = vmatpush3.bf16.msra.mxu0 %v2934_v23 }
 0x36a   : > { %2809 = vmatprep.subr.bf16.mxu0 %v3086_v25 }
 0x36b   : > { %2790 = vmatpush3.bf16.msra.mxu1 %v2935_v5  ;;  %v2956_v14 = vpop.eup %2955  ;;  %v515_v5 = vld [vmem:[#allocation3] sm:$0xf] }
 0x36c   : > { %2791 = vmatprep.subr.bf16.mxu1 %v3086_v25  ;;  %v601_v44 = vadd.f32 1.0, %v2956_v14 }
 0x36d   : > { %2810 = vmatpush3.bf16.msra.mxu0 %v2936_v24 }
 0x36e   : > { %2811 = vmatprep.subr.bf16.mxu0 %v3086_v25  ;;  %2957 = vrcp.f32 %v601_v44 }
 0x36f   : > { %2792 = vmatpush3.bf16.msra.mxu1 %v2937_v27  ;;  %v529_v27 = vsub.s32 1, %v3246_v10 }
 0x370   : > { %2793 = vmatprep.subr.bf16.mxu1 %v3086_v25 }
 0x371   : > { %2812 = vmatpush3.bf16.msra.mxu0 %v2938_v40  ;;  %v2971_v40 = vld [vmem:[%s4135_s6] sm:$0x3] }
 0x372   : > { %2813 = vmatprep.subr.bf16.mxu0 %v3086_v25 }
 0x373   : > { %2794 = vmatpush3.bf16.msra.mxu1 %v2939_v57  ;;  %v530_v57 = vrot.slane %v2971_v40, %v529_v27 }
 0x374   : > { %2795 = vmatprep.subr.bf16.mxu1 %v3086_v25 }
 0x375   : > { %2814 = vmatpush3.bf16.msra.mxu0 %v2940_v55  ;;  %v594_v35 = vadd.f32 %v3260_v20, %v530_v57 }
 0x376   : > { %2815 = vmatprep.subr.bf16.mxu0 %v3086_v25 }
 0x377   : > { %2796 = vmatpush3.bf16.msra.mxu1 %v2941_v39 }
 0x378   : > { %2797 = vmatprep.subr.bf16.mxu1 %v3086_v25  ;;  %v2958_v22 = vpop.eup %2957 }
 0x379   : > { %2816 = vmatpush3.bf16.msra.mxu0 %v2942_v12 }
 0x37a   : > { %2817 = vmatprep.subr.bf16.mxu0 %v3086_v25 }
 0x37b   : > { %2798 = vmatpush3.bf16.msra.mxu1 %v2943_v3 }
 0x37c   : > { %2799 = vmatprep.subr.bf16.mxu1 %v3086_v25 }
 0x37d   : > { %2818 = vmatpush3.bf16.msra.mxu0 %v2944_v51 }
 0x37e   : > { %2819 = vmatprep.subr.bf16.mxu0 %v3086_v25 }
 0x37f   : > { %2800 = vmatpush3.bf16.msra.mxu1 %v2945_v17 }
 0x380   : > { %2825 = vmatprep.subr.bf16.mxu1 %v3086_v25 }
 0x381   : > { %2820 = vmatpush3.bf16.msra.mxu0 %v2946_v18 }
 0x382   : > { %2802 = vmatmul.mubr.bf16.vlgmr.msra.gmra.mrb[4].mxu1 %v1885_v26  ;;  %2833 = vmatprep.subr.bf16.mxu0 %v3086_v25 }
 0x383   : > { %2826 = vmatpush3.bf16.msra.mxu1 %v2947_v58  ;;  %2829 = vmatprep.mubr.msk.bf16.mxu1 %vm3087_vm6, %v3086_v25 }
 0x384   : > { %2822 = vmatmul.mubr.bf16.vlgmr.msra.gmra.mrb[8].mxu0 %v1979_v36  ;;  %2827 = vmatprep.subr.bf16.mxu1 %v3086_v25 }
 0x385   : > { %2837 = vmatprep.mubr.msk.bf16.mxu0 %vm3087_vm6, %v3086_v25  ;;  %2834 = vmatpush3.bf16.msra.mxu0 %v2949_v47 }
 0x386   : > { %2835 = vmatprep.subr.bf16.mxu0 %v3086_v25 }
 0x387   : > { %2828 = vmatpush3.bf16.msra.mxu1 %v2948_v59 }
 0x389   : > { %2836 = vmatpush3.bf16.msra.mxu0 %v2950_v16 }
 0x38a   : > { %2830 = vmatmul.mubr.msk.bf16.vlgmr.msra.gmra.mrb[8].mxu1 %vm4154_vm7, %v2083_v38 }
 0x435   : > { %v1781_v13 = vpop.f32.mrb[0].mxu1 }
 0x436   : > { %v2763_v60 = vpop.f32.mrb[1].mxu1 }
 0x437   : > { %v1784_v41 = vpop.f32.mrb[2].mxu1  ;;  %v1875_v9 = vpop.f32.mrb[4].mxu0 }
 0x438   : > { %v2073_v21 = vrot.slane %v1875_v9, 7  ;;  %v2764_v50 = vpop.f32.mrb[3].mxu1  ;;  %v2783_v63 = vpop.f32.mrb[5].mxu0  ;;  %v3091_v9 = vmov 1983009808  }
 0x439   : > { %v1878_v29 = vpop.f32.mrb[6].mxu0 }
 0x43a   : > { %v2074_v49 = vsel %vm1581_vm1, %v2073_v21, %v1781_v13  ;;  %v2784_v1 = vpop.f32.mrb[7].mxu0  ;;  %vm4155_vm1 = vmmov %vm4154_vm7  ;;  %v2266_v21 = vunpack.c.l.s4 %v3091_v9 }
 0x43c   : > { %v2267_v50 = vunpack.c.0.s8 %v2266_v21 }
 0x43e   : > { %v2270_v1 = vsub.s32 %v2267_v50, %v3246_v10 }
 0x455   : > { %v1969_v7 = vpop.f32.mrb[4].mxu1 }
 0x456   : > { %v2075_v42 = vrot.slane %v1969_v7, 6  ;;  %v2803_v2 = vpop.f32.mrb[5].mxu1 }
 0x457   : > { %v1972_v32 = vpop.f32.mrb[6].mxu1  ;;  %v2063_v43 = vpop.f32.mrb[8].mxu0 }
 0x458   : > { %v2077_v0 = vrot.slane %v2063_v43, 5  ;;  %v2804_v61 = vpop.f32.mrb[7].mxu1  ;;  %v2823_v45 = vpop.f32.mrb[9].mxu0  ;;  %v2076_v8 = vsel %vm1583_vm2, %v2075_v42, %v2074_v49 }
 0x459   : > { %v2066_v62 = vpop.f32.mrb[10].mxu0 }
 0x45a   : > { %v2824_v31 = vpop.f32.mrb[11].mxu0  ;;  %v2078_v33 = vsel %vm1585_vm3, %v2077_v0, %v2076_v8 }
 0x45b   : > { %2079 = vrot.lane.b32.xlu0 %v2078_v33, %s4146_s19 }
 0x45d   : > { %v2137_v11 = vpop.f32.mrb[8].mxu1 }
 0x45e   : > { %v2831_v28 = vpop.f32.mrb[9].mxu1 }
 0x45f   : > { %v2140_v56 = vpop.f32.mrb[10].mxu1 }
 0x460   : > { %v2832_v6 = vpop.f32.mrb[11].mxu1 }
 0x4cd   : > { %v2080_v54 = vpop.permute.xlu0 %2079 }
 0x4ce   : > { %v2082_v25 = vmul.f32 %v2958_v22, %v2080_v54 }
 0x4d0   : > { %v2149_v4 = vpack.c.bf16 %v2082_v25, %v2082_v25 }
 0x4d2   : > { %2155 = vrot.lane.b32.xlu1 %v2149_v4, %s3089_s23 }
 0x4d6   : > { %2144 = vrot.lane.b32.xlu1 %v2137_v11, %s3090_s24 }
 0x544   : > { %v2156_v52 = vpop.permute.xlu1 %2155 }
 0x545   : > { %2838 = vmatmul.mubr.msk.bf16.vlgmr.msra.gmra.mrb[12].mxu0 %vm4155_vm1, %v2156_v52 }
 0x548   : > { %v2145_v55 = vpop.permute.xlu1 %2144 }
 0x549   : > { %v2148_v39 = vadd.f32 %v2145_v55, %v594_v35  ;;  %v2147_v51 = vadd.f32 %v2145_v55, %v3258_v19 }
 0x618   : > { %v2206_v34 = vpop.f32.mrb[12].mxu0 }
 0x619   : > { %2213 = vrot.lane.b32.xlu1 %v2206_v34, %s3090_s24  ;;  %v2839_v37 = vpop.f32.mrb[13].mxu0 }
 0x61a   : > { %v2209_v23 = vpop.f32.mrb[14].mxu0 }
 0x61b   : > { %v2840_v24 = vpop.f32.mrb[15].mxu0 }
 0x61d   : > { %2232 = vrot.lane.b32.xlu1 %v515_v5, %s3089_s23 }
 0x68b   : > { %v2214_v12 = vpop.permute.xlu1 %2213 }
 0x68c   : > { %v2217_v48 = vadd.f32 %v2214_v12, %v2148_v39  ;;  %v2216_v30 = vadd.f32 %v2214_v12, %v2147_v51 }
 0x68e   : > { %2959 = vtanh.f32 %v2217_v48  ;;  %v2536_v17 = vmul.f32 -1.442695, %v2216_v30  ;;  %v2537_v19 = vmul.f32 -1.442695, %v2217_v48 }
 0x68f   : > { %v2233_v20 = vpop.permute.xlu1 %2232 }
 0x690   : > { %2961 = vpow2.f32 %v2536_v17 }
 0x698   : > { %v2960_v3 = vpop.eup %2959 }
 0x699   : > { %2237 = vrot.lane.b32.xlu0 %v2960_v3, %s3090_s24 }
 0x69a   : > { %v2962_v53 = vpop.eup %2961 }
 0x69b   : > { %v2221_v18 = vadd.f32 1.0, %v2962_v53 }
 0x69d   : > { %2963 = vrcp.f32 %v2221_v18 }
 0x6a7   : > { %v2964_v46 = vpop.eup %2963 }
 0x6a8   : > { %v2235_v36 = vmul.f32 %v2964_v46, %v2233_v20 }
 0x70b   : > { %v2238_v58 = vpop.permute.xlu0 %2237 }
 0x70c   : > { %v2240_v26 = vmul.f32 %v2964_v46, %v2238_v58 }
 0x70e   : > { %2242 = vrot.lane.b32.xlu0 %v2240_v26, %s4146_s19 }
 0x780   : > { %v2243_v59 = vpop.permute.xlu0 %2242 }
 0x781   : > { %v2245_v38 = vadd.f32 %v2243_v59, %v2235_v36 }
 0x783   : > { %2965 = vtanh.f32 %v2245_v38 }
 0x784   : > { %2967 = vpow2.f32 %v2537_v19 }
 0x78d   : > { %v2966_v13 = vpop.eup %2965 }
 0x78e   : > { %2248 = vrot.lane.b32.xlu1 %v2966_v13, %s3090_s24  ;;  %v2968_v60 = vpop.eup %2967  ;;  %s2972_s24 = scalar_lea.vmem %s4046_s16, 64 }
 0x78f   : > { %v2228_v41 = vadd.f32 1.0, %v2968_v60  ;;  %p2973_p13 = scmp.ne.s32.totalorder %s4046_s16, %s2972_s24  ;;  %p2980_p3 = scmp.lt.s32.totalorder %s2978_s13, %s2972_s24 }
 0x791   : > { %2969 = vrcp.f32 %v2228_v41  ;;  %p2974_p0 = pnand %p2973_p13, %p3194_p4  ;;  %p2981_p5 = por %p2980_p3, %p2979_p2 }
 0x793   : > { %p2975_p1 = pneg %p2974_p0 }
 0x795   : > { %p2982_p6 = pnand %p2981_p5, %p2975_p1 }
 0x79b   : > { %v2970_v63 = vpop.eup %2969 }
 0x800   : > { %v2249_v29 = vpop.permute.xlu1 %2248 }
 0x801   : > { %v2251_v49 = vmul.f32 %v2970_v63, %v2249_v29 }
 0x803   : > { %v2263_v7 = vpack.c.bf16 %v2251_v49, %v2251_v49  ;;  %2253 = vrot.lane.b32.xlu1 %v2251_v49, %s3089_s23 }
 0x804   : > { %2985 = shalt.err (!%p2982_p6)
}
 0x805   : > { %s2986_s14 = scalar_lea.hbm %s4044_s28, 64  ;;  %s2990_s25 = scalar_lea.hbm %s4140_s11, 512 }
 0x806   : > { %p2987_p7 = scmp.ne.s32.totalorder %s4044_s28, %s2986_s14  ;;  %p2991_p11 = scmp.lt.u32.totalorder %s4044_s28, %s4140_s11 }
 0x807   : > { %p2992_p12 = scmp.lt.u32.totalorder %s2990_s25, %s2986_s14  ;;  %p2994_p0 = scmp.lt.u32.totalorder %s2986_s14, %s4044_s28 }
 0x808   : > { %p2988_p9 = pnand %p2987_p7, %p3194_p4 }
 0x809   : > { %p2993_p13 = por %p2992_p12, %p2991_p11 }
 0x80a   : > { %p2989_p10 = pneg %p2988_p9 }
 0x80b   : > { %p2995_p1 = por %p2994_p0, %p2993_p13 }
 0x80d   : > { %p2996_p2 = pnand %p2995_p1, %p2989_p10 }
 0x80f   : > { %2999 = shalt.err (!%p2996_p2)
}
 0x810   : > { %2842 = dma.vmem_to_hbm [thread:$0]  (%p3194_p4), %s4046_s16, 64, %s4044_s28, %s2284_s18   ;;  %v2271_v10 = vrot.slane %v2263_v7, %v2270_v1  ;;  %vm2256_vm8 = vcmask 257024   ;;  %vm2275_vm9 = vcmask 254976  }
 0x811   : > { %s4156_s19 = smov 32   ;;  %s2540_s24 = sshll.u32 %s3074_s20, 5 }
 0x812   : > { %2272 = vrot.lane.b32.xlu0 %v2271_v10, %s3089_s23  ;;  %s2298_s13 = sshll.u32 %s3221_s26, 4  ;;  %s4079_s30 = scalar_lea.hbm %s4139_s10, %s2540_s24  ;;  %s4081_s13 = int_to_ptr.vmem [resolvable:$true] %s2298_s13 }
 0x813   : > { %s2279_s23 = scalar_lea.sflag [#allocation5], %s3210_s12  ;;  %s3000_s16 = scalar_lea.vmem %s4081_s13, 32 }
 0x814   : > { %p3001_p3 = scmp.ne.s32.totalorder %s4081_s13, %s3000_s16  ;;  %s3093_s20 = smov [#allocation4]  }
 0x815   : > { %s3004_s28 = sshll.u32 %s3093_s20, 4  ;;  %s3005_s28 = int_to_ptr.vmem [resolvable:$false] %s3004_s28 }
 0x816   : > { %2259 = vrot.lane.b32.xlu0 %v2245_v38, %s4156_s19  ;;  %p3002_p5 = pnand %p3001_p3, %p3194_p4  ;;  %s3006_s18 = scalar_lea.vmem %s3005_s28, 64 }
 0x817   : > { %p3007_p7 = scmp.lt.s32.totalorder %s4081_s13, %s3005_s28  ;;  %p3008_p9 = scmp.lt.s32.totalorder %s3006_s18, %s3000_s16 }
 0x818   : > { %p3003_p6 = pneg %p3002_p5 }
 0x819   : > { %p3009_p10 = por %p3008_p9, %p3007_p7 }
 0x81b   : > { %p3010_p11 = pnand %p3009_p10, %p3003_p6 }
 0x875   : > { %v2254_v42 = vpop.permute.xlu1 %2253 }
 0x876   : > { %2257 = vst.msk [vmem:[#allocation2] sm:$0xf] %vm2256_vm8, %v2254_v42 }
 0x884   : > { %v2273_v2 = vpop.permute.xlu0 %2272 }
 0x885   : > { %2276 = vst.msk [vmem:[%s3221_s26] sm:$0x3] %vm2275_vm9, %v2273_v2 }
 0x886   : > { %3013 = shalt.err (!%p3010_p11)
}
 0x887   : > { %s3014_s12 = scalar_lea.hbm %s4079_s30, 32  ;;  %s3018_s15 = scalar_lea.hbm %s4139_s10, 256 }
 0x888   : > { %p3015_p12 = scmp.ne.s32.totalorder %s4079_s30, %s3014_s12  ;;  %p3019_p1 = scmp.lt.u32.totalorder %s4079_s30, %s4139_s10 }
 0x889   : > { %p3020_p2 = scmp.lt.u32.totalorder %s3018_s15, %s3014_s12  ;;  %p3022_p5 = scmp.lt.u32.totalorder %s3014_s12, %s4079_s30 }
 0x88a   : > { %p3016_p13 = pnand %p3015_p12, %p3194_p4 }
 0x88b   : > { %p3021_p3 = por %p3020_p2, %p3019_p1 }
 0x88c   : > { %p3017_p0 = pneg %p3016_p13 }
 0x88d   : > { %p3023_p6 = por %p3022_p5, %p3021_p3 }
 0x88f   : > { %p3024_p7 = pnand %p3023_p6, %p3017_p0 }
 0x891   : > { %3027 = shalt.err (!%p3024_p7)
}
 0x892   : > { %2841 = dma.vmem_to_hbm [thread:$0]  (%p3194_p4), %s4081_s13, 32, %s4079_s30, %s2279_s23   ;;  %v2260_v47 = vpop.permute.xlu0 %2259 }
 0x893   : > { %2262 = vst.msk [vmem:[#allocation3] sm:$0xf] %vm2256_vm8, %v2260_v47 }
 0x894 PF: > { %p2852_p9 = scmp.ge.s32.totalorder %s3082_s22, 2  ;;  %s2324_s14 = sand.u32 1, %s3062_s17  }
 0x895   : > { %s2325_s21 = scalar_lea.sflag [#allocation5], %s2324_s14 }
 0x896   : > { %p2846_p10 = pnand %p2852_p9, %p3201_p8 }
 0x898   : > { %3053 = dma.done.wait (!%p2846_p10), %s2325_s21, 32  }
 0x899   : > { %3055 = vsyncadd (!%p2846_p10), %s2325_s21, 4294967264  ;;  %s2334_s16 = scalar_lea.sflag [#allocation7], %s2324_s14 }
 0x89a   : > { %3057 = dma.done.wait (!%p2846_p10), %s2334_s16, 64  }
 0x89b   : > { %3059 = vsyncadd (!%p2846_p10), %s2334_s16, 4294967232  ;;  %s28_s22 = sadd.s32 1, %s3082_s22   ;;  %s4157_s17 = sld [smem:[#allocation10_spill]] }
 0x89c   : > { %p25_p4 = scmp.ge.s32.totalorder %s28_s22, 10   ;;  %s4158_s18 = sld [smem:[#allocation11_spill]] }
 0x89d   : > { %s4159_s19 = sld [smem:[#allocation14_spill]]  ;;  %s4160_s20 = sld [smem:[#allocation12_spill]] }
 0x89e   : > { %s4161_s21 = sld [smem:[#allocation13_spill]]  ;;  %27 = sbr.rel (!%p25_p4) target bundleno = 6 (0x6), region = 128 }
 0x8a5   :  { %2339 = vsyncpa [#allocation5], 1 }
 0x8a6   :  { %2341 = vsyncpa [#allocation5 + $0x1], 1 }
 0x8a7   :  { %2342 = vsyncpa [#allocation7], 1 }
 0x8a8   :  { %2344 = vsyncpa [#allocation7 + $0x1], 1 }

</bundles_post_ra>
